<compile_context>
chip_gen: v6e
topology: v6e:2x2x1
jax: 0.10.0
libtpu: 0.0.40
codegen_flags: <defaults>
</compile_context>

<pallas_src>
import math
import functools

import jax
import jax.numpy as jnp
from jax.experimental import pallas as pl
from jax.experimental.pallas import tpu as pltpu


LANE = 128
SUBLANE = 16          # bf16 sublane packing (also covers f32's 8)


def _round_up(v, m):
    return (v + m - 1) // m * m


# ---------------------------------------------------------------------------
# In-kernel helpers
# ---------------------------------------------------------------------------
def _layernorm(x, g, b, inv_d, feat_mask, eps=1e-5):
    """LayerNorm over the (padded) feature dim, statistics over real lanes.

    Centered two-pass variance; `feat_mask` zeroes the centered values on
    padded lanes (pass None when Dp == d_real)."""
    mu = jnp.sum(x, axis=-1, keepdims=True) * inv_d
    xc = x - mu
    if feat_mask is not None:
        xc = xc * feat_mask
    var = jnp.sum(xc * xc, axis=-1, keepdims=True) * inv_d
    return xc * jax.lax.rsqrt(var + eps) * g + b


def _gelu_exact(x):
    # PyTorch F.gelu default (erf-based, approximate='none')
    return 0.5 * x * (1.0 + jax.lax.erf(x * (1.0 / math.sqrt(2.0))))


# ---------------------------------------------------------------------------
# Pallas kernel: full encoder layer + final norm for a TB-sized batch block
# ---------------------------------------------------------------------------
def atms_encoder_kernel(n_heads, d_real, n_real, n_tok,
                        x_ref,
                        wqkv_ref, bqkv_ref, wo_ref, bo_ref,
                        g1_ref, be1_ref,
                        w1_ref, b1_ref, w2_ref, b2_ref,
                        g2_ref, be2_ref,
                        g3_ref, be3_ref,
                        o_ref,
                        heads_ref):
    TB, Np, Dp = x_ref.shape
    Ep = Dp // n_heads
    M = TB * Np
    inv_d = 1.0 / d_real

    # hoisted masks (static shapes / static predicates)
    feat_mask = None
    if Dp > d_real:
        feat_mask = (jax.lax.broadcasted_iota(jnp.int32, (1, Dp), 1)
                     < d_real).astype(jnp.float32)
    key_bias = None
    if Np > n_real:
        key_bias = jnp.where(
            jax.lax.broadcasted_iota(jnp.int32, (1, 1, Np), 2) < n_real,
            0.0, -1e30).astype(jnp.float32)

    x_lo = x_ref[...].reshape(M, Dp)          # bf16 MXU operand (Np % 16 == 0)
    x32 = x_lo.astype(jnp.float32)

    # --- multi-head attention ----------------------------------------------
    # Per-head fused QKV projection ((Dp, 3*Ep) slab -> one wide matmul per
    # head). Each head's output is stored into its lane slice of a bf16 VMEM
    # scratch slab (bounds live ranges), so the out-projection is a single
    # full-depth (M, Dp) x (Dp, Dp) matmul.
    for h in range(n_heads):                  # static; temps die at the store
        qkv = jnp.dot(x_lo, wqkv_ref[h],
                      preferred_element_type=jnp.float32) + bqkv_ref[h]
        q = qkv[:, :Ep].reshape(TB, Np, Ep).astype(jnp.bfloat16)
        k = qkv[:, Ep:2 * Ep].reshape(TB, Np, Ep).astype(jnp.bfloat16)
        v = qkv[:, 2 * Ep:].reshape(TB, Np, Ep).astype(jnp.bfloat16)

        # FullAttention: 1/sqrt(E) already folded into Wq/bq; no attn mask
        # (only padded-key masking); eval dropout = identity.
        s = jnp.einsum('bqe,bke->bqk', q, k,
                       preferred_element_type=jnp.float32)
        if key_bias is not None:
            s = s + key_bias
        s = s - jnp.max(s, axis=-1, keepdims=True)
        p = jnp.exp(s)
        p = p * pl.reciprocal(jnp.sum(p, axis=-1, keepdims=True), approx=True)

        oh = jnp.einsum('bqk,bke->bqe', p.astype(jnp.bfloat16), v,
                        preferred_element_type=jnp.float32)
        heads_ref[:, h * Ep:(h + 1) * Ep] = (
            oh.reshape(M, Ep).astype(jnp.bfloat16))

    o_acc = jnp.dot(heads_ref[...], wo_ref[...],
                    preferred_element_type=jnp.float32) + bo_ref[...]

    # --- residual + norm1 ----------------------------------------------------
    x1n = _layernorm(x32 + o_acc, g1_ref[...], be1_ref[...], inv_d, feat_mask)

    # --- FFN: conv1d(k=1) == Linear, GELU, conv1d(k=1) == Linear -------------
    y = _gelu_exact(jnp.dot(x1n.astype(jnp.bfloat16), w1_ref[...],
                            preferred_element_type=jnp.float32) + b1_ref[...])
    z = jnp.dot(y.astype(jnp.bfloat16), w2_ref[...],
                preferred_element_type=jnp.float32) + b2_ref[...]

    # --- residual + norm2 + final encoder norm -------------------------------
    x2 = _layernorm(x1n + z, g2_ref[...], be2_ref[...], inv_d, feat_mask)
    out = _layernorm(x2, g3_ref[...], be3_ref[...], inv_d, feat_mask)

    # modal token slice done in-kernel: only n_tok tokens are written back
    o_ref[...] = out.reshape(TB, Np, Dp)[:, :n_tok, :].astype(o_ref.dtype)


# ---------------------------------------------------------------------------
# One-time parameter preparation (cache this at model-load time)
# ---------------------------------------------------------------------------
_PARAM_ORDER = ('wqkv', 'bqkv', 'wo', 'bo', 'g1', 'be1',
                'w1', 'b1', 'w2', 'b2', 'g2', 'be2', 'g3', 'be3')


def prepare_params(params, *, n_heads, lane=LANE):
    """Pad to lane multiples, fold 1/sqrt(E) into Wq/bq, fuse per-head Q/K/V
    into a (H, Dp, 3*Ep) slab, build a full (Dp, Dp) out-projection, cast
    matmul weights to bf16.

    Padded lanes are zero everywhere (including LayerNorm gamma/beta), so the
    padded lanes of every intermediate stay exactly zero inside the kernel.
    Call ONCE and reuse the result for every forward (per perf review)."""
    D = params['wq'].shape[0]
    F = params['w1'].shape[1]
    assert D % n_heads == 0, "d_model must be divisible by n_heads"
    E = D // n_heads
    Dp = _round_up(D, lane)
    assert Dp % n_heads == 0, "padded d_model must stay divisible by n_heads"
    Ep = Dp // n_heads
    Fp = _round_up(F, lane)
    scale = 1.0 / math.sqrt(E)          # FullAttention scale, folded into Wq/bq

    def head_split(w, b, s=1.0):
        w = (w * s).reshape(D, n_heads, E)
        w = jnp.pad(w, ((0, Dp - D), (0, 0), (0, Ep - E)))
        w = jnp.transpose(w, (1, 0, 2))                              # (H, Dp, Ep)
        b = jnp.pad((b * s).reshape(1, n_heads, E),
                    ((0, 0), (0, 0), (0, Ep - E)))
        b = jnp.transpose(b, (1, 0, 2))                              # (H, 1, Ep)
        return w, b

    wq, bq = head_split(params['wq'], params['bq'], scale)
    wk, bk = head_split(params['wk'], params['bk'])
    wv, bv = head_split(params['wv'], params['bv'])
    wqkv = jnp.concatenate([wq, wk, wv], axis=-1).astype(jnp.bfloat16)  # (H,Dp,3Ep)
    bqkv = jnp.concatenate([bq, bk, bv], axis=-1).astype(jnp.float32)   # (H,1,3Ep)

    # out-projection rows are the head-concatenated dim -> full (Dp, Dp)
    wo = params['wo'].reshape(n_heads, E, D)
    wo = jnp.pad(wo, ((0, 0), (0, Ep - E), (0, Dp - D)))
    wo = wo.reshape(n_heads * Ep, Dp).astype(jnp.bfloat16)              # (Dp, Dp)

    def pad2(a, shape, dt):
        return jnp.pad(a, [(0, t - s) for s, t in zip(a.shape, shape)]).astype(dt)

    kp = dict(
        wqkv=wqkv, bqkv=bqkv, wo=wo,
        bo=pad2(params['bo'], (1, Dp), jnp.float32),
        g1=pad2(params['g1'], (1, Dp), jnp.float32),
        be1=pad2(params['be1'], (1, Dp), jnp.float32),
        w1=pad2(params['w1'], (Dp, Fp), jnp.bfloat16),
        b1=pad2(params['b1'], (1, Fp), jnp.float32),
        w2=pad2(params['w2'], (Fp, Dp), jnp.bfloat16),
        b2=pad2(params['b2'], (1, Dp), jnp.float32),
        g2=pad2(params['g2'], (1, Dp), jnp.float32),
        be2=pad2(params['be2'], (1, Dp), jnp.float32),
        g3=pad2(params['g3'], (1, Dp), jnp.float32),
        be3=pad2(params['be3'], (1, Dp), jnp.float32),
    )
    meta = dict(D=D, Dp=Dp, E=E, Ep=Ep, F=F, Fp=Fp, n_heads=n_heads)
    return kp, meta


# ---------------------------------------------------------------------------
# Wrapper
# ---------------------------------------------------------------------------
def _vmem_capacity_bytes():
    try:
        return int(pltpu.get_tpu_info().vmem_capacity_bytes)
    except Exception:
        return 128 << 20        # v5e/v6e physical; v7x handled by the 0.6 cap


def atms_forward(x, kparams, meta, *, modal='eeg', batch_block=None):
    """ATMS.forward == iTransformer encoder stack + modal token slice."""
    B, N, D = x.shape
    assert D == meta['D'], "x feature dim must match prepared params"
    Dp, Ep, Fp, n_heads = meta['Dp'], meta['Ep'], meta['Fp'], meta['n_heads']
    n_tok = min({'eeg': 54, 'meg': 262, 'fmri': 8}[modal], N)
    Np = _round_up(N, SUBLANE)     # sublane-align tokens (kills reshape copies)

    weight_bytes = sum(int(a.size) * a.dtype.itemsize for a in kparams.values())

    # --- generation-aware VMEM / batch-block sizing --------------------------
    cap = _vmem_capacity_bytes()
    vmem_limit = min(48 << 20, int(cap * 0.6))    # ~38 MiB on v7x (64 MiB VMEM)

    if batch_block is None:
        batch_block = max(1, 512 // Np)           # aim for M = TB*Np ~ 512 rows
    TB = max(1, min(batch_block, B))
    if B >= 2:
        TB = min(TB, -(-B // 2))                  # >= 2 grid steps (v7x megacore)

    def est_bytes(tb):
        m = tb * Np
        x_blk = tb * Np * Dp * 2                  # bf16 input block
        out_blk = tb * n_tok * Dp * 4             # f32 output block
        scratch = m * Dp * 2                      # bf16 head-slab scratch
        tmp = (4 * m * Dp * 4                     # x32 / o_acc / x1n / z (f32)
               + m * Fp * 4                       # FFN hidden
               + m * 3 * Ep * 4                   # per-head fused qkv
               + 2 * tb * Np * Np * 4)            # attention scores / probs
        return 2 * x_blk + 2 * out_blk + weight_bytes + scratch + tmp

    while TB > 1 and est_bytes(TB) > vmem_limit:
        TB = max(1, TB // 2)
    if est_bytes(TB) > vmem_limit:                # tiny-TB fallback: raise the cap
        vmem_limit = min(int(cap * 3 // 4), est_bytes(TB) + (8 << 20))

    B_pad = pl.cdiv(B, TB) * TB

    # stream activations in bf16 (halves input DMA; f32 math inside the kernel)
    xp = jnp.pad(x.astype(jnp.bfloat16),
                 ((0, B_pad - B), (0, Np - N), (0, Dp - D)))

    args = [kparams[k] for k in _PARAM_ORDER]
    x_spec = pl.BlockSpec((TB, Np, Dp), lambda b: (b, 0, 0))
    out_spec = pl.BlockSpec((TB, n_tok, Dp), lambda b: (b, 0, 0))

    def run(single_buffered):
        weight_specs = []
        for a in args:
            imap = (lambda b, _nd=a.ndim: (0,) * _nd)   # constant: resident weights
            if single_buffered:
                # double-buffering buys nothing for constant index maps; halve VMEM
                spec = pl.BlockSpec(a.shape, imap, pipeline_mode=pl.Buffered(1))
            else:
                spec = pl.BlockSpec(a.shape, imap)
            weight_specs.append(spec)
        call = pl.pallas_call(
            functools.partial(atms_encoder_kernel, n_heads, D, N, n_tok),
            out_shape=jax.ShapeDtypeStruct((B_pad, n_tok, Dp), jnp.float32),
            grid=(B_pad // TB,),
            in_specs=[x_spec] + weight_specs,
            out_specs=out_spec,
            scratch_shapes=[pltpu.VMEM((TB * Np, Dp), jnp.bfloat16)],
            compiler_params=pltpu.CompilerParams(
                dimension_semantics=("parallel",),
                vmem_limit_bytes=int(vmem_limit)),
        )
        return call(xp, *args)

    try:
        out = run(True)            # single-buffered resident weights
    except Exception:              # fallback if this jax rejects Buffered(1)
        out = run(False)

    # un-pad only when needed (the lane slice forces an extra HBM copy)
    if B_pad != B:
        out = out[:B]
    if Dp != D:
        out = out[..., :D]
    return out


# ---------------------------------------------------------------------------
# Deterministic parameter init (shapes from ATMS.__init__ / Config, scaled down)
# ---------------------------------------------------------------------------
def init_params(key, d_model, d_ff):
    def lin(k, fin, fout):
        # nn.Linear / 1x1-conv default init: U(-1/sqrt(fan_in), 1/sqrt(fan_in))
        # NOTE: weights here are stored (in, out); real PyTorch checkpoints
        # store nn.Linear as (out, in) / Conv1d as (out, in, 1) and must be
        # transposed / squeezed before prepare_params.
        bound = 1.0 / math.sqrt(fin)
        kw, kb = jax.random.split(k)
        w = jax.random.uniform(kw, (fin, fout), jnp.float32, -bound, bound)
        b = jax.random.uniform(kb, (1, fout), jnp.float32, -bound, bound)
        return w, b

    keys = jax.random.split(key, 6)
    wq, bq = lin(keys[0], d_model, d_model)
    wk, bk = lin(keys[1], d_model, d_model)
    wv, bv = lin(keys[2], d_model, d_model)
    wo, bo = lin(keys[3], d_model, d_model)
    w1, b1 = lin(keys[4], d_model, d_ff)     # conv1 (kernel_size=1)
    w2, b2 = lin(keys[5], d_ff, d_model)     # conv2 (kernel_size=1)

    ones = lambda: jnp.ones((1, d_model), jnp.float32)
    zeros = lambda: jnp.zeros((1, d_model), jnp.float32)
    return dict(wq=wq, bq=bq, wk=wk, bk=bk, wv=wv, bv=bv, wo=wo, bo=bo,
                g1=ones(), be1=zeros(),           # EncoderLayer.norm1
                w1=w1, b1=b1, w2=w2, b2=b2,
                g2=ones(), be2=zeros(),           # EncoderLayer.norm2
                g3=ones(), be3=zeros())           # Encoder final norm


# NOTE: ATMS also constructs enc_eeg / proj_eeg / logit_scale / ClipLoss (and
# the iTransformer enc_embedding) in __init__, but its forward() only calls
# the encoder stack, so those submodules are intentionally not in the kernel.

if __name__ == "__main__":
    # small shapes consistent with the forward: (B, tokens, d_model), 4 heads
    B, N, D, H, D_FF = 2, 8, 32, 4, 16

    key = jax.random.PRNGKey(0)
    kx, kp = jax.random.split(key)
    x = jax.random.normal(kx, (B, N, D), jnp.float32)
    params = init_params(kp, D, D_FF)

    # one-time prep (cache this in real use — per perf review)
    kparams, meta = prepare_params(params, n_heads=H)

    subject_ids = jnp.zeros((B,), jnp.int32)   # unused by forward (as in PyTorch)
    out = atms_forward(x, kparams, meta, modal='eeg')
    jax.block_until_ready(out)

    assert out.shape == (B, min(54, N), D)
    assert bool(jnp.all(jnp.isfinite(out)))
    print("KERNEL_OK")
</pallas_src>

<mosaic_0001>
module attributes {stable_mosaic.version = 11 : i64} {
  func.func @atms_encoder_kernel(%arg0: i32, %arg1: memref<1x16x128xbf16, #tpu.memory_space<vmem>>, %arg2: memref<4x128x96xbf16, #tpu.memory_space<vmem>>, %arg3: memref<4x1x96xf32, #tpu.memory_space<vmem>>, %arg4: memref<128x128xbf16, #tpu.memory_space<vmem>>, %arg5: memref<1x128xf32, #tpu.memory_space<vmem>>, %arg6: memref<1x128xf32, #tpu.memory_space<vmem>>, %arg7: memref<1x128xf32, #tpu.memory_space<vmem>>, %arg8: memref<128x128xbf16, #tpu.memory_space<vmem>>, %arg9: memref<1x128xf32, #tpu.memory_space<vmem>>, %arg10: memref<128x128xbf16, #tpu.memory_space<vmem>>, %arg11: memref<1x128xf32, #tpu.memory_space<vmem>>, %arg12: memref<1x128xf32, #tpu.memory_space<vmem>>, %arg13: memref<1x128xf32, #tpu.memory_space<vmem>>, %arg14: memref<1x128xf32, #tpu.memory_space<vmem>>, %arg15: memref<1x128xf32, #tpu.memory_space<vmem>>, %arg16: memref<1x8x128xf32, #tpu.memory_space<vmem>>, %arg17: memref<16x128xbf16, #tpu.memory_space<vmem>>) attributes {dimension_semantics = [#tpu.dimension_semantics<parallel>], iteration_bounds = array<i64: 2>, scalar_prefetch = 0 : i64, scratch_operands = 1 : i64, tpu.core_type = #tpu.core_type<tc>, window_params = [{transform_indices = @transform_0, window_bounds = array<i64: 1, 16, 128>}, {pipeline_mode = #tpu.pipeline_mode<synchronous>, transform_indices = @transform_1, window_bounds = array<i64: 4, 128, 96>}, {pipeline_mode = #tpu.pipeline_mode<synchronous>, transform_indices = @transform_2, window_bounds = array<i64: 4, 1, 96>}, {pipeline_mode = #tpu.pipeline_mode<synchronous>, transform_indices = @transform_3, window_bounds = array<i64: 128, 128>}, {pipeline_mode = #tpu.pipeline_mode<synchronous>, transform_indices = @transform_4, window_bounds = array<i64: 1, 128>}, {pipeline_mode = #tpu.pipeline_mode<synchronous>, transform_indices = @transform_5, window_bounds = array<i64: 1, 128>}, {pipeline_mode = #tpu.pipeline_mode<synchronous>, transform_indices = @transform_6, window_bounds = array<i64: 1, 128>}, {pipeline_mode = #tpu.pipeline_mode<synchronous>, transform_indices = @transform_7, window_bounds = array<i64: 128, 128>}, {pipeline_mode = #tpu.pipeline_mode<synchronous>, transform_indices = @transform_8, window_bounds = array<i64: 1, 128>}, {pipeline_mode = #tpu.pipeline_mode<synchronous>, transform_indices = @transform_9, window_bounds = array<i64: 128, 128>}, {pipeline_mode = #tpu.pipeline_mode<synchronous>, transform_indices = @transform_10, window_bounds = array<i64: 1, 128>}, {pipeline_mode = #tpu.pipeline_mode<synchronous>, transform_indices = @transform_11, window_bounds = array<i64: 1, 128>}, {pipeline_mode = #tpu.pipeline_mode<synchronous>, transform_indices = @transform_12, window_bounds = array<i64: 1, 128>}, {pipeline_mode = #tpu.pipeline_mode<synchronous>, transform_indices = @transform_13, window_bounds = array<i64: 1, 128>}, {pipeline_mode = #tpu.pipeline_mode<synchronous>, transform_indices = @transform_14, window_bounds = array<i64: 1, 128>}, {transform_indices = @transform_15, window_bounds = array<i64: 1, 8, 128>}]} {
    %0 = tpu.iota {dimensions = array<i32: 1>} : vector<1x128xi32>
    %c32_i32 = arith.constant 32 : i32
    %1 = vector.broadcast %c32_i32 : i32 to vector<1x128xi32>
    %2 = arith.cmpi slt, %0, %1 : vector<1x128xi32>
    %3 = arith.extui %2 : vector<1x128xi1> to vector<1x128xi32>
    %4 = arith.sitofp %3 : vector<1x128xi32> to vector<1x128xf32>
    %5 = tpu.iota {dimensions = array<i32: 2>} : vector<1x1x16xi32>
    %c8_i32 = arith.constant 8 : i32
    %6 = vector.broadcast %c8_i32 : i32 to vector<1x1x16xi32>
    %7 = arith.cmpi slt, %5, %6 : vector<1x1x16xi32>
    %cst = arith.constant 0.000000e+00 : f32
    %cst_0 = arith.constant -1.000000e+30 : f32
    %8 = vector.broadcast %cst : f32 to vector<1x1x16xf32>
    %9 = vector.broadcast %cst_0 : f32 to vector<1x1x16xf32>
    %10 = arith.select %7, %8, %9 : vector<1x1x16xi1>, vector<1x1x16xf32>
    %c0 = arith.constant 0 : index
    %c0_1 = arith.constant 0 : index
    %c0_2 = arith.constant 0 : index
    %11 = vector.load %arg1[%c0, %c0_1, %c0_2] : memref<1x16x128xbf16, #tpu.memory_space<vmem>>, vector<1x16x128xbf16>
    %12 = vector.shape_cast %11 : vector<1x16x128xbf16> to vector<16x128xbf16>
    %13 = arith.extf %12 : vector<16x128xbf16> to vector<16x128xf32>
    %c0_3 = arith.constant 0 : index
    %c0_4 = arith.constant 0 : index
    %c0_5 = arith.constant 0 : index
    %14 = vector.load %arg2[%c0_3, %c0_4, %c0_5] : memref<4x128x96xbf16, #tpu.memory_space<vmem>>, vector<1x128x96xbf16>
    %15 = vector.shape_cast %14 : vector<1x128x96xbf16> to vector<128x96xbf16>
    %cst_6 = arith.constant dense<0.000000e+00> : vector<16x96xf32>
    %16 = tpu.matmul %12, %15, %cst_6 {dimension_numbers = #tpu.dot_dimension_numbers<[1], [0], [0], [1], [0, 0, 1, 1], [], []>} : vector<16x128xbf16>, vector<128x96xbf16>, vector<16x96xf32> -> vector<16x96xf32>
    %c0_7 = arith.constant 0 : index
    %c0_8 = arith.constant 0 : index
    %c0_9 = arith.constant 0 : index
    %17 = vector.load %arg3[%c0_7, %c0_8, %c0_9] : memref<4x1x96xf32, #tpu.memory_space<vmem>>, vector<1x1x96xf32>
    %18 = vector.shape_cast %17 : vector<1x1x96xf32> to vector<1x96xf32>
    %19 = vector.broadcast %18 : vector<1x96xf32> to vector<16x96xf32>
    %20 = arith.addf %16, %19 : vector<16x96xf32>
    %21 = vector.extract_strided_slice %20 {offsets = [0, 0], sizes = [16, 32], strides = [1, 1]} : vector<16x96xf32> to vector<16x32xf32>
    %22 = vector.shape_cast %21 : vector<16x32xf32> to vector<1x16x32xf32>
    %23 = arith.truncf %22 : vector<1x16x32xf32> to vector<1x16x32xbf16>
    %24 = vector.extract_strided_slice %20 {offsets = [0, 32], sizes = [16, 32], strides = [1, 1]} : vector<16x96xf32> to vector<16x32xf32>
    %25 = vector.shape_cast %24 : vector<16x32xf32> to vector<1x16x32xf32>
    %26 = arith.truncf %25 : vector<1x16x32xf32> to vector<1x16x32xbf16>
    %27 = vector.extract_strided_slice %20 {offsets = [0, 64], sizes = [16, 32], strides = [1, 1]} : vector<16x96xf32> to vector<16x32xf32>
    %28 = vector.shape_cast %27 : vector<16x32xf32> to vector<1x16x32xf32>
    %29 = arith.truncf %28 : vector<1x16x32xf32> to vector<1x16x32xbf16>
    "tpu.trace_start"() <{level = 10 : i32, message = "bqe,bke->bqk"}> : () -> ()
    %cst_10 = arith.constant dense<0.000000e+00> : vector<1x16x16xf32>
    %30 = tpu.matmul %23, %26, %cst_10 {dimension_numbers = #tpu.dot_dimension_numbers<[2], [2], [1], [1], [0, 0, 0, 1, 1, 1], [0], [0]>} : vector<1x16x32xbf16>, vector<1x16x32xbf16>, vector<1x16x16xf32> -> vector<1x16x16xf32>
    "tpu.trace_stop"() : () -> ()
    %31 = vector.broadcast %10 : vector<1x1x16xf32> to vector<1x16x16xf32>
    %32 = arith.addf %30, %31 : vector<1x16x16xf32>
    %cst_11 = arith.constant dense<0xFF800000> : vector<1x16xf32>
    %33 = vector.multi_reduction <maximumf>, %32, %cst_11 [2] : vector<1x16x16xf32> to vector<1x16xf32>
    %34 = vector.shape_cast %33 : vector<1x16xf32> to vector<1x16x1xf32>
    %35 = vector.broadcast %34 : vector<1x16x1xf32> to vector<1x16x16xf32>
    %36 = arith.subf %32, %35 : vector<1x16x16xf32>
    %37 = math.exp %36 : vector<1x16x16xf32>
    %cst_12 = arith.constant dense<0.000000e+00> : vector<1x16xf32>
    %38 = vector.multi_reduction <add>, %37, %cst_12 [2] : vector<1x16x16xf32> to vector<1x16xf32>
    %39 = vector.shape_cast %38 : vector<1x16xf32> to vector<1x16x1xf32>
    %40 = tpu.reciprocal %39 {approx = true} : vector<1x16x1xf32> -> vector<1x16x1xf32>
    %41 = vector.broadcast %40 : vector<1x16x1xf32> to vector<1x16x16xf32>
    %42 = arith.mulf %37, %41 : vector<1x16x16xf32>
    %43 = arith.truncf %42 : vector<1x16x16xf32> to vector<1x16x16xbf16>
    "tpu.trace_start"() <{level = 10 : i32, message = "bqk,bke->bqe"}> : () -> ()
    %cst_13 = arith.constant dense<0.000000e+00> : vector<1x16x32xf32>
    %44 = tpu.matmul %43, %29, %cst_13 {dimension_numbers = #tpu.dot_dimension_numbers<[2], [1], [1], [2], [0, 0, 0, 1, 1, 2], [0], [0]>} : vector<1x16x16xbf16>, vector<1x16x32xbf16>, vector<1x16x32xf32> -> vector<1x16x32xf32>
    "tpu.trace_stop"() : () -> ()
    %45 = vector.shape_cast %44 : vector<1x16x32xf32> to vector<16x32xf32>
    %46 = arith.truncf %45 : vector<16x32xf32> to vector<16x32xbf16>
    %c0_14 = arith.constant 0 : index
    %c0_15 = arith.constant 0 : index
    %47 = vector.load %arg17[%c0_14, %c0_15] : memref<16x128xbf16, #tpu.memory_space<vmem>>, vector<16x32xbf16>
    tpu.vector_store %arg17[%c0_14, %c0_15], %46 {strides = array<i32>} : memref<16x128xbf16, #tpu.memory_space<vmem>>, vector<16x32xbf16>,
    %c1 = arith.constant 1 : index
    %c0_16 = arith.constant 0 : index
    %c0_17 = arith.constant 0 : index
    %48 = vector.load %arg2[%c1, %c0_16, %c0_17] : memref<4x128x96xbf16, #tpu.memory_space<vmem>>, vector<1x128x96xbf16>
    %49 = vector.shape_cast %48 : vector<1x128x96xbf16> to vector<128x96xbf16>
    %cst_18 = arith.constant dense<0.000000e+00> : vector<16x96xf32>
    %50 = tpu.matmul %12, %49, %cst_18 {dimension_numbers = #tpu.dot_dimension_numbers<[1], [0], [0], [1], [0, 0, 1, 1], [], []>} : vector<16x128xbf16>, vector<128x96xbf16>, vector<16x96xf32> -> vector<16x96xf32>
    %c1_19 = arith.constant 1 : index
    %c0_20 = arith.constant 0 : index
    %c0_21 = arith.constant 0 : index
    %51 = vector.load %arg3[%c1_19, %c0_20, %c0_21] : memref<4x1x96xf32, #tpu.memory_space<vmem>>, vector<1x1x96xf32>
    %52 = vector.shape_cast %51 : vector<1x1x96xf32> to vector<1x96xf32>
    %53 = vector.broadcast %52 : vector<1x96xf32> to vector<16x96xf32>
    %54 = arith.addf %50, %53 : vector<16x96xf32>
    %55 = vector.extract_strided_slice %54 {offsets = [0, 0], sizes = [16, 32], strides = [1, 1]} : vector<16x96xf32> to vector<16x32xf32>
    %56 = vector.shape_cast %55 : vector<16x32xf32> to vector<1x16x32xf32>
    %57 = arith.truncf %56 : vector<1x16x32xf32> to vector<1x16x32xbf16>
    %58 = vector.extract_strided_slice %54 {offsets = [0, 32], sizes = [16, 32], strides = [1, 1]} : vector<16x96xf32> to vector<16x32xf32>
    %59 = vector.shape_cast %58 : vector<16x32xf32> to vector<1x16x32xf32>
    %60 = arith.truncf %59 : vector<1x16x32xf32> to vector<1x16x32xbf16>
    %61 = vector.extract_strided_slice %54 {offsets = [0, 64], sizes = [16, 32], strides = [1, 1]} : vector<16x96xf32> to vector<16x32xf32>
    %62 = vector.shape_cast %61 : vector<16x32xf32> to vector<1x16x32xf32>
    %63 = arith.truncf %62 : vector<1x16x32xf32> to vector<1x16x32xbf16>
    "tpu.trace_start"() <{level = 10 : i32, message = "bqe,bke->bqk"}> : () -> ()
    %cst_22 = arith.constant dense<0.000000e+00> : vector<1x16x16xf32>
    %64 = tpu.matmul %57, %60, %cst_22 {dimension_numbers = #tpu.dot_dimension_numbers<[2], [2], [1], [1], [0, 0, 0, 1, 1, 1], [0], [0]>} : vector<1x16x32xbf16>, vector<1x16x32xbf16>, vector<1x16x16xf32> -> vector<1x16x16xf32>
    "tpu.trace_stop"() : () -> ()
    %65 = vector.broadcast %10 : vector<1x1x16xf32> to vector<1x16x16xf32>
    %66 = arith.addf %64, %65 : vector<1x16x16xf32>
    %cst_23 = arith.constant dense<0xFF800000> : vector<1x16xf32>
    %67 = vector.multi_reduction <maximumf>, %66, %cst_23 [2] : vector<1x16x16xf32> to vector<1x16xf32>
    %68 = vector.shape_cast %67 : vector<1x16xf32> to vector<1x16x1xf32>
    %69 = vector.broadcast %68 : vector<1x16x1xf32> to vector<1x16x16xf32>
    %70 = arith.subf %66, %69 : vector<1x16x16xf32>
    %71 = math.exp %70 : vector<1x16x16xf32>
    %cst_24 = arith.constant dense<0.000000e+00> : vector<1x16xf32>
    %72 = vector.multi_reduction <add>, %71, %cst_24 [2] : vector<1x16x16xf32> to vector<1x16xf32>
    %73 = vector.shape_cast %72 : vector<1x16xf32> to vector<1x16x1xf32>
    %74 = tpu.reciprocal %73 {approx = true} : vector<1x16x1xf32> -> vector<1x16x1xf32>
    %75 = vector.broadcast %74 : vector<1x16x1xf32> to vector<1x16x16xf32>
    %76 = arith.mulf %71, %75 : vector<1x16x16xf32>
    %77 = arith.truncf %76 : vector<1x16x16xf32> to vector<1x16x16xbf16>
    "tpu.trace_start"() <{level = 10 : i32, message = "bqk,bke->bqe"}> : () -> ()
    %cst_25 = arith.constant dense<0.000000e+00> : vector<1x16x32xf32>
    %78 = tpu.matmul %77, %63, %cst_25 {dimension_numbers = #tpu.dot_dimension_numbers<[2], [1], [1], [2], [0, 0, 0, 1, 1, 2], [0], [0]>} : vector<1x16x16xbf16>, vector<1x16x32xbf16>, vector<1x16x32xf32> -> vector<1x16x32xf32>
    "tpu.trace_stop"() : () -> ()
    %79 = vector.shape_cast %78 : vector<1x16x32xf32> to vector<16x32xf32>
    %80 = arith.truncf %79 : vector<16x32xf32> to vector<16x32xbf16>
    %c0_26 = arith.constant 0 : index
    %c32 = arith.constant 32 : index
    %81 = vector.load %arg17[%c0_26, %c32] : memref<16x128xbf16, #tpu.memory_space<vmem>>, vector<16x32xbf16>
    tpu.vector_store %arg17[%c0_26, %c32], %80 {strides = array<i32>} : memref<16x128xbf16, #tpu.memory_space<vmem>>, vector<16x32xbf16>,
    %c2 = arith.constant 2 : index
    %c0_27 = arith.constant 0 : index
    %c0_28 = arith.constant 0 : index
    %82 = vector.load %arg2[%c2, %c0_27, %c0_28] : memref<4x128x96xbf16, #tpu.memory_space<vmem>>, vector<1x128x96xbf16>
    %83 = vector.shape_cast %82 : vector<1x128x96xbf16> to vector<128x96xbf16>
    %cst_29 = arith.constant dense<0.000000e+00> : vector<16x96xf32>
    %84 = tpu.matmul %12, %83, %cst_29 {dimension_numbers = #tpu.dot_dimension_numbers<[1], [0], [0], [1], [0, 0, 1, 1], [], []>} : vector<16x128xbf16>, vector<128x96xbf16>, vector<16x96xf32> -> vector<16x96xf32>
    %c2_30 = arith.constant 2 : index
    %c0_31 = arith.constant 0 : index
    %c0_32 = arith.constant 0 : index
    %85 = vector.load %arg3[%c2_30, %c0_31, %c0_32] : memref<4x1x96xf32, #tpu.memory_space<vmem>>, vector<1x1x96xf32>
    %86 = vector.shape_cast %85 : vector<1x1x96xf32> to vector<1x96xf32>
    %87 = vector.broadcast %86 : vector<1x96xf32> to vector<16x96xf32>
    %88 = arith.addf %84, %87 : vector<16x96xf32>
    %89 = vector.extract_strided_slice %88 {offsets = [0, 0], sizes = [16, 32], strides = [1, 1]} : vector<16x96xf32> to vector<16x32xf32>
    %90 = vector.shape_cast %89 : vector<16x32xf32> to vector<1x16x32xf32>
    %91 = arith.truncf %90 : vector<1x16x32xf32> to vector<1x16x32xbf16>
    %92 = vector.extract_strided_slice %88 {offsets = [0, 32], sizes = [16, 32], strides = [1, 1]} : vector<16x96xf32> to vector<16x32xf32>
    %93 = vector.shape_cast %92 : vector<16x32xf32> to vector<1x16x32xf32>
    %94 = arith.truncf %93 : vector<1x16x32xf32> to vector<1x16x32xbf16>
    %95 = vector.extract_strided_slice %88 {offsets = [0, 64], sizes = [16, 32], strides = [1, 1]} : vector<16x96xf32> to vector<16x32xf32>
    %96 = vector.shape_cast %95 : vector<16x32xf32> to vector<1x16x32xf32>
    %97 = arith.truncf %96 : vector<1x16x32xf32> to vector<1x16x32xbf16>
    "tpu.trace_start"() <{level = 10 : i32, message = "bqe,bke->bqk"}> : () -> ()
    %cst_33 = arith.constant dense<0.000000e+00> : vector<1x16x16xf32>
    %98 = tpu.matmul %91, %94, %cst_33 {dimension_numbers = #tpu.dot_dimension_numbers<[2], [2], [1], [1], [0, 0, 0, 1, 1, 1], [0], [0]>} : vector<1x16x32xbf16>, vector<1x16x32xbf16>, vector<1x16x16xf32> -> vector<1x16x16xf32>
    "tpu.trace_stop"() : () -> ()
    %99 = vector.broadcast %10 : vector<1x1x16xf32> to vector<1x16x16xf32>
    %100 = arith.addf %98, %99 : vector<1x16x16xf32>
    %cst_34 = arith.constant dense<0xFF800000> : vector<1x16xf32>
    %101 = vector.multi_reduction <maximumf>, %100, %cst_34 [2] : vector<1x16x16xf32> to vector<1x16xf32>
    %102 = vector.shape_cast %101 : vector<1x16xf32> to vector<1x16x1xf32>
    %103 = vector.broadcast %102 : vector<1x16x1xf32> to vector<1x16x16xf32>
    %104 = arith.subf %100, %103 : vector<1x16x16xf32>
    %105 = math.exp %104 : vector<1x16x16xf32>
    %cst_35 = arith.constant dense<0.000000e+00> : vector<1x16xf32>
    %106 = vector.multi_reduction <add>, %105, %cst_35 [2] : vector<1x16x16xf32> to vector<1x16xf32>
    %107 = vector.shape_cast %106 : vector<1x16xf32> to vector<1x16x1xf32>
    %108 = tpu.reciprocal %107 {approx = true} : vector<1x16x1xf32> -> vector<1x16x1xf32>
    %109 = vector.broadcast %108 : vector<1x16x1xf32> to vector<1x16x16xf32>
    %110 = arith.mulf %105, %109 : vector<1x16x16xf32>
    %111 = arith.truncf %110 : vector<1x16x16xf32> to vector<1x16x16xbf16>
    "tpu.trace_start"() <{level = 10 : i32, message = "bqk,bke->bqe"}> : () -> ()
    %cst_36 = arith.constant dense<0.000000e+00> : vector<1x16x32xf32>
    %112 = tpu.matmul %111, %97, %cst_36 {dimension_numbers = #tpu.dot_dimension_numbers<[2], [1], [1], [2], [0, 0, 0, 1, 1, 2], [0], [0]>} : vector<1x16x16xbf16>, vector<1x16x32xbf16>, vector<1x16x32xf32> -> vector<1x16x32xf32>
    "tpu.trace_stop"() : () -> ()
    %113 = vector.shape_cast %112 : vector<1x16x32xf32> to vector<16x32xf32>
    %114 = arith.truncf %113 : vector<16x32xf32> to vector<16x32xbf16>
    %c0_37 = arith.constant 0 : index
    %c64 = arith.constant 64 : index
    %115 = vector.load %arg17[%c0_37, %c64] : memref<16x128xbf16, #tpu.memory_space<vmem>>, vector<16x32xbf16>
    tpu.vector_store %arg17[%c0_37, %c64], %114 {strides = array<i32>} : memref<16x128xbf16, #tpu.memory_space<vmem>>, vector<16x32xbf16>,
    %c3 = arith.constant 3 : index
    %c0_38 = arith.constant 0 : index
    %c0_39 = arith.constant 0 : index
    %116 = vector.load %arg2[%c3, %c0_38, %c0_39] : memref<4x128x96xbf16, #tpu.memory_space<vmem>>, vector<1x128x96xbf16>
    %117 = vector.shape_cast %116 : vector<1x128x96xbf16> to vector<128x96xbf16>
    %cst_40 = arith.constant dense<0.000000e+00> : vector<16x96xf32>
    %118 = tpu.matmul %12, %117, %cst_40 {dimension_numbers = #tpu.dot_dimension_numbers<[1], [0], [0], [1], [0, 0, 1, 1], [], []>} : vector<16x128xbf16>, vector<128x96xbf16>, vector<16x96xf32> -> vector<16x96xf32>
    %c3_41 = arith.constant 3 : index
    %c0_42 = arith.constant 0 : index
    %c0_43 = arith.constant 0 : index
    %119 = vector.load %arg3[%c3_41, %c0_42, %c0_43] : memref<4x1x96xf32, #tpu.memory_space<vmem>>, vector<1x1x96xf32>
    %120 = vector.shape_cast %119 : vector<1x1x96xf32> to vector<1x96xf32>
    %121 = vector.broadcast %120 : vector<1x96xf32> to vector<16x96xf32>
    %122 = arith.addf %118, %121 : vector<16x96xf32>
    %123 = vector.extract_strided_slice %122 {offsets = [0, 0], sizes = [16, 32], strides = [1, 1]} : vector<16x96xf32> to vector<16x32xf32>
    %124 = vector.shape_cast %123 : vector<16x32xf32> to vector<1x16x32xf32>
    %125 = arith.truncf %124 : vector<1x16x32xf32> to vector<1x16x32xbf16>
    %126 = vector.extract_strided_slice %122 {offsets = [0, 32], sizes = [16, 32], strides = [1, 1]} : vector<16x96xf32> to vector<16x32xf32>
    %127 = vector.shape_cast %126 : vector<16x32xf32> to vector<1x16x32xf32>
    %128 = arith.truncf %127 : vector<1x16x32xf32> to vector<1x16x32xbf16>
    %129 = vector.extract_strided_slice %122 {offsets = [0, 64], sizes = [16, 32], strides = [1, 1]} : vector<16x96xf32> to vector<16x32xf32>
    %130 = vector.shape_cast %129 : vector<16x32xf32> to vector<1x16x32xf32>
    %131 = arith.truncf %130 : vector<1x16x32xf32> to vector<1x16x32xbf16>
    "tpu.trace_start"() <{level = 10 : i32, message = "bqe,bke->bqk"}> : () -> ()
    %cst_44 = arith.constant dense<0.000000e+00> : vector<1x16x16xf32>
    %132 = tpu.matmul %125, %128, %cst_44 {dimension_numbers = #tpu.dot_dimension_numbers<[2], [2], [1], [1], [0, 0, 0, 1, 1, 1], [0], [0]>} : vector<1x16x32xbf16>, vector<1x16x32xbf16>, vector<1x16x16xf32> -> vector<1x16x16xf32>
    "tpu.trace_stop"() : () -> ()
    %133 = vector.broadcast %10 : vector<1x1x16xf32> to vector<1x16x16xf32>
    %134 = arith.addf %132, %133 : vector<1x16x16xf32>
    %cst_45 = arith.constant dense<0xFF800000> : vector<1x16xf32>
    %135 = vector.multi_reduction <maximumf>, %134, %cst_45 [2] : vector<1x16x16xf32> to vector<1x16xf32>
    %136 = vector.shape_cast %135 : vector<1x16xf32> to vector<1x16x1xf32>
    %137 = vector.broadcast %136 : vector<1x16x1xf32> to vector<1x16x16xf32>
    %138 = arith.subf %134, %137 : vector<1x16x16xf32>
    %139 = math.exp %138 : vector<1x16x16xf32>
    %cst_46 = arith.constant dense<0.000000e+00> : vector<1x16xf32>
    %140 = vector.multi_reduction <add>, %139, %cst_46 [2] : vector<1x16x16xf32> to vector<1x16xf32>
    %141 = vector.shape_cast %140 : vector<1x16xf32> to vector<1x16x1xf32>
    %142 = tpu.reciprocal %141 {approx = true} : vector<1x16x1xf32> -> vector<1x16x1xf32>
    %143 = vector.broadcast %142 : vector<1x16x1xf32> to vector<1x16x16xf32>
    %144 = arith.mulf %139, %143 : vector<1x16x16xf32>
    %145 = arith.truncf %144 : vector<1x16x16xf32> to vector<1x16x16xbf16>
    "tpu.trace_start"() <{level = 10 : i32, message = "bqk,bke->bqe"}> : () -> ()
    %cst_47 = arith.constant dense<0.000000e+00> : vector<1x16x32xf32>
    %146 = tpu.matmul %145, %131, %cst_47 {dimension_numbers = #tpu.dot_dimension_numbers<[2], [1], [1], [2], [0, 0, 0, 1, 1, 2], [0], [0]>} : vector<1x16x16xbf16>, vector<1x16x32xbf16>, vector<1x16x32xf32> -> vector<1x16x32xf32>
    "tpu.trace_stop"() : () -> ()
    %147 = vector.shape_cast %146 : vector<1x16x32xf32> to vector<16x32xf32>
    %148 = arith.truncf %147 : vector<16x32xf32> to vector<16x32xbf16>
    %c0_48 = arith.constant 0 : index
    %c96 = arith.constant 96 : index
    %149 = vector.load %arg17[%c0_48, %c96] : memref<16x128xbf16, #tpu.memory_space<vmem>>, vector<16x32xbf16>
    tpu.vector_store %arg17[%c0_48, %c96], %148 {strides = array<i32>} : memref<16x128xbf16, #tpu.memory_space<vmem>>, vector<16x32xbf16>,
    %c0_49 = arith.constant 0 : index
    %c0_50 = arith.constant 0 : index
    %150 = vector.load %arg17[%c0_49, %c0_50] : memref<16x128xbf16, #tpu.memory_space<vmem>>, vector<16x128xbf16>
    %c0_51 = arith.constant 0 : index
    %c0_52 = arith.constant 0 : index
    %151 = vector.load %arg4[%c0_51, %c0_52] : memref<128x128xbf16, #tpu.memory_space<vmem>>, vector<128x128xbf16>
    %cst_53 = arith.constant dense<0.000000e+00> : vector<16x128xf32>
    %152 = tpu.matmul %150, %151, %cst_53 {dimension_numbers = #tpu.dot_dimension_numbers<[1], [0], [0], [1], [0, 0, 1, 1], [], []>} : vector<16x128xbf16>, vector<128x128xbf16>, vector<16x128xf32> -> vector<16x128xf32>
    %c0_54 = arith.constant 0 : index
    %c0_55 = arith.constant 0 : index
    %153 = vector.load %arg5[%c0_54, %c0_55] : memref<1x128xf32, #tpu.memory_space<vmem>>, vector<1x128xf32>
    %154 = vector.broadcast %153 : vector<1x128xf32> to vector<16x128xf32>
    %155 = arith.addf %152, %154 : vector<16x128xf32>
    %156 = arith.addf %13, %155 : vector<16x128xf32>
    %c0_56 = arith.constant 0 : index
    %c0_57 = arith.constant 0 : index
    %157 = vector.load %arg6[%c0_56, %c0_57] : memref<1x128xf32, #tpu.memory_space<vmem>>, vector<1x128xf32>
    %c0_58 = arith.constant 0 : index
    %c0_59 = arith.constant 0 : index
    %158 = vector.load %arg7[%c0_58, %c0_59] : memref<1x128xf32, #tpu.memory_space<vmem>>, vector<1x128xf32>
    %cst_60 = arith.constant dense<0.000000e+00> : vector<16xf32>
    %159 = vector.multi_reduction <add>, %156, %cst_60 [1] : vector<16x128xf32> to vector<16xf32>
    %160 = vector.shape_cast %159 : vector<16xf32> to vector<16x1xf32>
    %cst_61 = arith.constant 3.125000e-02 : f32
    %161 = vector.broadcast %cst_61 : f32 to vector<16x1xf32>
    %162 = arith.mulf %160, %161 : vector<16x1xf32>
    %163 = vector.broadcast %162 : vector<16x1xf32> to vector<16x128xf32>
    %164 = arith.subf %156, %163 : vector<16x128xf32>
    %165 = vector.broadcast %4 : vector<1x128xf32> to vector<16x128xf32>
    %166 = arith.mulf %164, %165 : vector<16x128xf32>
    %167 = arith.mulf %166, %166 : vector<16x128xf32>
    %cst_62 = arith.constant dense<0.000000e+00> : vector<16xf32>
    %168 = vector.multi_reduction <add>, %167, %cst_62 [1] : vector<16x128xf32> to vector<16xf32>
    %169 = vector.shape_cast %168 : vector<16xf32> to vector<16x1xf32>
    %cst_63 = arith.constant 3.125000e-02 : f32
    %170 = vector.broadcast %cst_63 : f32 to vector<16x1xf32>
    %171 = arith.mulf %169, %170 : vector<16x1xf32>
    %cst_64 = arith.constant 9.99999974E-6 : f32
    %172 = vector.broadcast %cst_64 : f32 to vector<16x1xf32>
    %173 = arith.addf %171, %172 : vector<16x1xf32>
    %174 = math.rsqrt %173 : vector<16x1xf32>
    %175 = vector.broadcast %174 : vector<16x1xf32> to vector<16x128xf32>
    %176 = arith.mulf %166, %175 : vector<16x128xf32>
    %177 = vector.broadcast %157 : vector<1x128xf32> to vector<16x128xf32>
    %178 = arith.mulf %176, %177 : vector<16x128xf32>
    %179 = vector.broadcast %158 : vector<1x128xf32> to vector<16x128xf32>
    %180 = arith.addf %178, %179 : vector<16x128xf32>
    %181 = arith.truncf %180 : vector<16x128xf32> to vector<16x128xbf16>
    %c0_65 = arith.constant 0 : index
    %c0_66 = arith.constant 0 : index
    %182 = vector.load %arg8[%c0_65, %c0_66] : memref<128x128xbf16, #tpu.memory_space<vmem>>, vector<128x128xbf16>
    %cst_67 = arith.constant dense<0.000000e+00> : vector<16x128xf32>
    %183 = tpu.matmul %181, %182, %cst_67 {dimension_numbers = #tpu.dot_dimension_numbers<[1], [0], [0], [1], [0, 0, 1, 1], [], []>} : vector<16x128xbf16>, vector<128x128xbf16>, vector<16x128xf32> -> vector<16x128xf32>
    %c0_68 = arith.constant 0 : index
    %c0_69 = arith.constant 0 : index
    %184 = vector.load %arg9[%c0_68, %c0_69] : memref<1x128xf32, #tpu.memory_space<vmem>>, vector<1x128xf32>
    %185 = vector.broadcast %184 : vector<1x128xf32> to vector<16x128xf32>
    %186 = arith.addf %183, %185 : vector<16x128xf32>
    %cst_70 = arith.constant 5.000000e-01 : f32
    %187 = vector.broadcast %cst_70 : f32 to vector<16x128xf32>
    %188 = arith.mulf %187, %186 : vector<16x128xf32>
    %cst_71 = arith.constant 0.707106769 : f32
    %189 = vector.broadcast %cst_71 : f32 to vector<16x128xf32>
    %190 = arith.mulf %186, %189 : vector<16x128xf32>
    %191 = math.erf %190 : vector<16x128xf32>
    %cst_72 = arith.constant 1.000000e+00 : f32
    %192 = vector.broadcast %cst_72 : f32 to vector<16x128xf32>
    %193 = arith.addf %192, %191 : vector<16x128xf32>
    %194 = arith.mulf %188, %193 : vector<16x128xf32>
    %195 = arith.truncf %194 : vector<16x128xf32> to vector<16x128xbf16>
    %c0_73 = arith.constant 0 : index
    %c0_74 = arith.constant 0 : index
    %196 = vector.load %arg10[%c0_73, %c0_74] : memref<128x128xbf16, #tpu.memory_space<vmem>>, vector<128x128xbf16>
    %cst_75 = arith.constant dense<0.000000e+00> : vector<16x128xf32>
    %197 = tpu.matmul %195, %196, %cst_75 {dimension_numbers = #tpu.dot_dimension_numbers<[1], [0], [0], [1], [0, 0, 1, 1], [], []>} : vector<16x128xbf16>, vector<128x128xbf16>, vector<16x128xf32> -> vector<16x128xf32>
    %c0_76 = arith.constant 0 : index
    %c0_77 = arith.constant 0 : index
    %198 = vector.load %arg11[%c0_76, %c0_77] : memref<1x128xf32, #tpu.memory_space<vmem>>, vector<1x128xf32>
    %199 = vector.broadcast %198 : vector<1x128xf32> to vector<16x128xf32>
    %200 = arith.addf %197, %199 : vector<16x128xf32>
    %201 = arith.addf %180, %200 : vector<16x128xf32>
    %c0_78 = arith.constant 0 : index
    %c0_79 = arith.constant 0 : index
    %202 = vector.load %arg12[%c0_78, %c0_79] : memref<1x128xf32, #tpu.memory_space<vmem>>, vector<1x128xf32>
    %c0_80 = arith.constant 0 : index
    %c0_81 = arith.constant 0 : index
    %203 = vector.load %arg13[%c0_80, %c0_81] : memref<1x128xf32, #tpu.memory_space<vmem>>, vector<1x128xf32>
    %cst_82 = arith.constant dense<0.000000e+00> : vector<16xf32>
    %204 = vector.multi_reduction <add>, %201, %cst_82 [1] : vector<16x128xf32> to vector<16xf32>
    %205 = vector.shape_cast %204 : vector<16xf32> to vector<16x1xf32>
    %cst_83 = arith.constant 3.125000e-02 : f32
    %206 = vector.broadcast %cst_83 : f32 to vector<16x1xf32>
    %207 = arith.mulf %205, %206 : vector<16x1xf32>
    %208 = vector.broadcast %207 : vector<16x1xf32> to vector<16x128xf32>
    %209 = arith.subf %201, %208 : vector<16x128xf32>
    %210 = vector.broadcast %4 : vector<1x128xf32> to vector<16x128xf32>
    %211 = arith.mulf %209, %210 : vector<16x128xf32>
    %212 = arith.mulf %211, %211 : vector<16x128xf32>
    %cst_84 = arith.constant dense<0.000000e+00> : vector<16xf32>
    %213 = vector.multi_reduction <add>, %212, %cst_84 [1] : vector<16x128xf32> to vector<16xf32>
    %214 = vector.shape_cast %213 : vector<16xf32> to vector<16x1xf32>
    %cst_85 = arith.constant 3.125000e-02 : f32
    %215 = vector.broadcast %cst_85 : f32 to vector<16x1xf32>
    %216 = arith.mulf %214, %215 : vector<16x1xf32>
    %cst_86 = arith.constant 9.99999974E-6 : f32
    %217 = vector.broadcast %cst_86 : f32 to vector<16x1xf32>
    %218 = arith.addf %216, %217 : vector<16x1xf32>
    %219 = math.rsqrt %218 : vector<16x1xf32>
    %220 = vector.broadcast %219 : vector<16x1xf32> to vector<16x128xf32>
    %221 = arith.mulf %211, %220 : vector<16x128xf32>
    %222 = vector.broadcast %202 : vector<1x128xf32> to vector<16x128xf32>
    %223 = arith.mulf %221, %222 : vector<16x128xf32>
    %224 = vector.broadcast %203 : vector<1x128xf32> to vector<16x128xf32>
    %225 = arith.addf %223, %224 : vector<16x128xf32>
    %c0_87 = arith.constant 0 : index
    %c0_88 = arith.constant 0 : index
    %226 = vector.load %arg14[%c0_87, %c0_88] : memref<1x128xf32, #tpu.memory_space<vmem>>, vector<1x128xf32>
    %c0_89 = arith.constant 0 : index
    %c0_90 = arith.constant 0 : index
    %227 = vector.load %arg15[%c0_89, %c0_90] : memref<1x128xf32, #tpu.memory_space<vmem>>, vector<1x128xf32>
    %cst_91 = arith.constant dense<0.000000e+00> : vector<16xf32>
    %228 = vector.multi_reduction <add>, %225, %cst_91 [1] : vector<16x128xf32> to vector<16xf32>
    %229 = vector.shape_cast %228 : vector<16xf32> to vector<16x1xf32>
    %cst_92 = arith.constant 3.125000e-02 : f32
    %230 = vector.broadcast %cst_92 : f32 to vector<16x1xf32>
    %231 = arith.mulf %229, %230 : vector<16x1xf32>
    %232 = vector.broadcast %231 : vector<16x1xf32> to vector<16x128xf32>
    %233 = arith.subf %225, %232 : vector<16x128xf32>
    %234 = vector.broadcast %4 : vector<1x128xf32> to vector<16x128xf32>
    %235 = arith.mulf %233, %234 : vector<16x128xf32>
    %236 = arith.mulf %235, %235 : vector<16x128xf32>
    %cst_93 = arith.constant dense<0.000000e+00> : vector<16xf32>
    %237 = vector.multi_reduction <add>, %236, %cst_93 [1] : vector<16x128xf32> to vector<16xf32>
    %238 = vector.shape_cast %237 : vector<16xf32> to vector<16x1xf32>
    %cst_94 = arith.constant 3.125000e-02 : f32
    %239 = vector.broadcast %cst_94 : f32 to vector<16x1xf32>
    %240 = arith.mulf %238, %239 : vector<16x1xf32>
    %cst_95 = arith.constant 9.99999974E-6 : f32
    %241 = vector.broadcast %cst_95 : f32 to vector<16x1xf32>
    %242 = arith.addf %240, %241 : vector<16x1xf32>
    %243 = math.rsqrt %242 : vector<16x1xf32>
    %244 = vector.broadcast %243 : vector<16x1xf32> to vector<16x128xf32>
    %245 = arith.mulf %235, %244 : vector<16x128xf32>
    %246 = vector.broadcast %226 : vector<1x128xf32> to vector<16x128xf32>
    %247 = arith.mulf %245, %246 : vector<16x128xf32>
    %248 = vector.broadcast %227 : vector<1x128xf32> to vector<16x128xf32>
    %249 = arith.addf %247, %248 : vector<16x128xf32>
    %250 = vector.shape_cast %249 : vector<16x128xf32> to vector<1x16x128xf32>
    %251 = vector.extract_strided_slice %250 {offsets = [0, 0, 0], sizes = [1, 8, 128], strides = [1, 1, 1]} : vector<1x16x128xf32> to vector<1x8x128xf32>
    %c0_96 = arith.constant 0 : index
    %c0_97 = arith.constant 0 : index
    %c0_98 = arith.constant 0 : index
    %252 = vector.load %arg16[%c0_96, %c0_97, %c0_98] : memref<1x8x128xf32, #tpu.memory_space<vmem>>, vector<1x8x128xf32>
    tpu.vector_store %arg16[%c0_96, %c0_97, %c0_98], %251 {strides = array<i32>} : memref<1x8x128xf32, #tpu.memory_space<vmem>>, vector<1x8x128xf32>,
    return
  }
  func.func @transform_0(%arg0: i32) -> (i32, i32, i32) {
    %c0_i32 = arith.constant 0 : i32
    %c0_i32_0 = arith.constant 0 : i32
    %c0_i32_1 = arith.constant 0 : i32
    return %arg0, %c0_i32, %c0_i32_0 : i32, i32, i32
  }
  func.func @transform_1(%arg0: i32) -> (i32, i32, i32) {
    %c0_i32 = arith.constant 0 : i32
    %c0_i32_0 = arith.constant 0 : i32
    %c0_i32_1 = arith.constant 0 : i32
    %c0_i32_2 = arith.constant 0 : i32
    return %c0_i32, %c0_i32_0, %c0_i32_1 : i32, i32, i32
  }
  func.func @transform_2(%arg0: i32) -> (i32, i32, i32) {
    %c0_i32 = arith.constant 0 : i32
    %c0_i32_0 = arith.constant 0 : i32
    %c0_i32_1 = arith.constant 0 : i32
    %c0_i32_2 = arith.constant 0 : i32
    return %c0_i32, %c0_i32_0, %c0_i32_1 : i32, i32, i32
  }
  func.func @transform_3(%arg0: i32) -> (i32, i32) {
    %c0_i32 = arith.constant 0 : i32
    %c0_i32_0 = arith.constant 0 : i32
    %c0_i32_1 = arith.constant 0 : i32
    return %c0_i32, %c0_i32_0 : i32, i32
  }
  func.func @transform_4(%arg0: i32) -> (i32, i32) {
    %c0_i32 = arith.constant 0 : i32
    %c0_i32_0 = arith.constant 0 : i32
    %c0_i32_1 = arith.constant 0 : i32
    return %c0_i32, %c0_i32_0 : i32, i32
  }
  func.func @transform_5(%arg0: i32) -> (i32, i32) {
    %c0_i32 = arith.constant 0 : i32
    %c0_i32_0 = arith.constant 0 : i32
    %c0_i32_1 = arith.constant 0 : i32
    return %c0_i32, %c0_i32_0 : i32, i32
  }
  func.func @transform_6(%arg0: i32) -> (i32, i32) {
    %c0_i32 = arith.constant 0 : i32
    %c0_i32_0 = arith.constant 0 : i32
    %c0_i32_1 = arith.constant 0 : i32
    return %c0_i32, %c0_i32_0 : i32, i32
  }
  func.func @transform_7(%arg0: i32) -> (i32, i32) {
    %c0_i32 = arith.constant 0 : i32
    %c0_i32_0 = arith.constant 0 : i32
    %c0_i32_1 = arith.constant 0 : i32
    return %c0_i32, %c0_i32_0 : i32, i32
  }
  func.func @transform_8(%arg0: i32) -> (i32, i32) {
    %c0_i32 = arith.constant 0 : i32
    %c0_i32_0 = arith.constant 0 : i32
    %c0_i32_1 = arith.constant 0 : i32
    return %c0_i32, %c0_i32_0 : i32, i32
  }
  func.func @transform_9(%arg0: i32) -> (i32, i32) {
    %c0_i32 = arith.constant 0 : i32
    %c0_i32_0 = arith.constant 0 : i32
    %c0_i32_1 = arith.constant 0 : i32
    return %c0_i32, %c0_i32_0 : i32, i32
  }
  func.func @transform_10(%arg0: i32) -> (i32, i32) {
    %c0_i32 = arith.constant 0 : i32
    %c0_i32_0 = arith.constant 0 : i32
    %c0_i32_1 = arith.constant 0 : i32
    return %c0_i32, %c0_i32_0 : i32, i32
  }
  func.func @transform_11(%arg0: i32) -> (i32, i32) {
    %c0_i32 = arith.constant 0 : i32
    %c0_i32_0 = arith.constant 0 : i32
    %c0_i32_1 = arith.constant 0 : i32
    return %c0_i32, %c0_i32_0 : i32, i32
  }
  func.func @transform_12(%arg0: i32) -> (i32, i32) {
    %c0_i32 = arith.constant 0 : i32
    %c0_i32_0 = arith.constant 0 : i32
    %c0_i32_1 = arith.constant 0 : i32
    return %c0_i32, %c0_i32_0 : i32, i32
  }
  func.func @transform_13(%arg0: i32) -> (i32, i32) {
    %c0_i32 = arith.constant 0 : i32
    %c0_i32_0 = arith.constant 0 : i32
    %c0_i32_1 = arith.constant 0 : i32
    return %c0_i32, %c0_i32_0 : i32, i32
  }
  func.func @transform_14(%arg0: i32) -> (i32, i32) {
    %c0_i32 = arith.constant 0 : i32
    %c0_i32_0 = arith.constant 0 : i32
    %c0_i32_1 = arith.constant 0 : i32
    return %c0_i32, %c0_i32_0 : i32, i32
  }
  func.func @transform_15(%arg0: i32) -> (i32, i32, i32) {
    %c0_i32 = arith.constant 0 : i32
    %c0_i32_0 = arith.constant 0 : i32
    %c0_i32_1 = arith.constant 0 : i32
    return %arg0, %c0_i32, %c0_i32_0 : i32, i32, i32
  }
}

module attributes {stable_mosaic.version = 11 : i64} {
  func.func @atms_encoder_kernel(%arg0: i32, %arg1: memref<1x16x128xbf16, #tpu.memory_space<vmem>>, %arg2: memref<4x128x96xbf16, #tpu.memory_space<vmem>>, %arg3: memref<4x1x96xf32, #tpu.memory_space<vmem>>, %arg4: memref<128x128xbf16, #tpu.memory_space<vmem>>, %arg5: memref<1x128xf32, #tpu.memory_space<vmem>>, %arg6: memref<1x128xf32, #tpu.memory_space<vmem>>, %arg7: memref<1x128xf32, #tpu.memory_space<vmem>>, %arg8: memref<128x128xbf16, #tpu.memory_space<vmem>>, %arg9: memref<1x128xf32, #tpu.memory_space<vmem>>, %arg10: memref<128x128xbf16, #tpu.memory_space<vmem>>, %arg11: memref<1x128xf32, #tpu.memory_space<vmem>>, %arg12: memref<1x128xf32, #tpu.memory_space<vmem>>, %arg13: memref<1x128xf32, #tpu.memory_space<vmem>>, %arg14: memref<1x128xf32, #tpu.memory_space<vmem>>, %arg15: memref<1x128xf32, #tpu.memory_space<vmem>>, %arg16: memref<1x8x128xf32, #tpu.memory_space<vmem>>, %arg17: memref<16x128xbf16, #tpu.memory_space<vmem>>) attributes {dimension_semantics = [#tpu.dimension_semantics<parallel>], iteration_bounds = array<i64: 2>, scalar_prefetch = 0 : i64, scratch_operands = 1 : i64, tpu.core_type = #tpu.core_type<tc>, window_params = [{transform_indices = @transform_0, window_bounds = array<i64: 1, 16, 128>}, {pipeline_mode = #tpu.pipeline_mode<synchronous>, transform_indices = @transform_1, window_bounds = array<i64: 4, 128, 96>}, {pipeline_mode = #tpu.pipeline_mode<synchronous>, transform_indices = @transform_2, window_bounds = array<i64: 4, 1, 96>}, {pipeline_mode = #tpu.pipeline_mode<synchronous>, transform_indices = @transform_3, window_bounds = array<i64: 128, 128>}, {pipeline_mode = #tpu.pipeline_mode<synchronous>, transform_indices = @transform_4, window_bounds = array<i64: 1, 128>}, {pipeline_mode = #tpu.pipeline_mode<synchronous>, transform_indices = @transform_5, window_bounds = array<i64: 1, 128>}, {pipeline_mode = #tpu.pipeline_mode<synchronous>, transform_indices = @transform_6, window_bounds = array<i64: 1, 128>}, {pipeline_mode = #tpu.pipeline_mode<synchronous>, transform_indices = @transform_7, window_bounds = array<i64: 128, 128>}, {pipeline_mode = #tpu.pipeline_mode<synchronous>, transform_indices = @transform_8, window_bounds = array<i64: 1, 128>}, {pipeline_mode = #tpu.pipeline_mode<synchronous>, transform_indices = @transform_9, window_bounds = array<i64: 128, 128>}, {pipeline_mode = #tpu.pipeline_mode<synchronous>, transform_indices = @transform_10, window_bounds = array<i64: 1, 128>}, {pipeline_mode = #tpu.pipeline_mode<synchronous>, transform_indices = @transform_11, window_bounds = array<i64: 1, 128>}, {pipeline_mode = #tpu.pipeline_mode<synchronous>, transform_indices = @transform_12, window_bounds = array<i64: 1, 128>}, {pipeline_mode = #tpu.pipeline_mode<synchronous>, transform_indices = @transform_13, window_bounds = array<i64: 1, 128>}, {pipeline_mode = #tpu.pipeline_mode<synchronous>, transform_indices = @transform_14, window_bounds = array<i64: 1, 128>}, {transform_indices = @transform_15, window_bounds = array<i64: 1, 8, 128>}]} {
    %0 = tpu.iota {dimensions = array<i32: 1>} : vector<1x128xi32>
    %c32_i32 = arith.constant 32 : i32
    %1 = vector.broadcast %c32_i32 : i32 to vector<1x128xi32>
    %2 = arith.cmpi slt, %0, %1 : vector<1x128xi32>
    %3 = arith.extui %2 : vector<1x128xi1> to vector<1x128xi32>
    %4 = arith.sitofp %3 : vector<1x128xi32> to vector<1x128xf32>
    %5 = tpu.iota {dimensions = array<i32: 2>} : vector<1x1x16xi32>
    %c8_i32 = arith.constant 8 : i32
    %6 = vector.broadcast %c8_i32 : i32 to vector<1x1x16xi32>
    %7 = arith.cmpi slt, %5, %6 : vector<1x1x16xi32>
    %cst = arith.constant 0.000000e+00 : f32
    %cst_0 = arith.constant -1.000000e+30 : f32
    %8 = vector.broadcast %cst : f32 to vector<1x1x16xf32>
    %9 = vector.broadcast %cst_0 : f32 to vector<1x1x16xf32>
    %10 = arith.select %7, %8, %9 : vector<1x1x16xi1>, vector<1x1x16xf32>
    %c0 = arith.constant 0 : index
    %c0_1 = arith.constant 0 : index
    %c0_2 = arith.constant 0 : index
    %11 = vector.load %arg1[%c0, %c0_1, %c0_2] : memref<1x16x128xbf16, #tpu.memory_space<vmem>>, vector<1x16x128xbf16>
    %12 = vector.shape_cast %11 : vector<1x16x128xbf16> to vector<16x128xbf16>
    %13 = arith.extf %12 : vector<16x128xbf16> to vector<16x128xf32>
    %c0_3 = arith.constant 0 : index
    %c0_4 = arith.constant 0 : index
    %c0_5 = arith.constant 0 : index
    %14 = vector.load %arg2[%c0_3, %c0_4, %c0_5] : memref<4x128x96xbf16, #tpu.memory_space<vmem>>, vector<1x128x96xbf16>
    %15 = vector.shape_cast %14 : vector<1x128x96xbf16> to vector<128x96xbf16>
    %cst_6 = arith.constant dense<0.000000e+00> : vector<16x96xf32>
    %16 = tpu.matmul %12, %15, %cst_6 {dimension_numbers = #tpu.dot_dimension_numbers<[1], [0], [0], [1], [0, 0, 1, 1], [], []>} : vector<16x128xbf16>, vector<128x96xbf16>, vector<16x96xf32> -> vector<16x96xf32>
    %c0_7 = arith.constant 0 : index
    %c0_8 = arith.constant 0 : index
    %c0_9 = arith.constant 0 : index
    %17 = vector.load %arg3[%c0_7, %c0_8, %c0_9] : memref<4x1x96xf32, #tpu.memory_space<vmem>>, vector<1x1x96xf32>
    %18 = vector.shape_cast %17 : vector<1x1x96xf32> to vector<1x96xf32>
    %19 = vector.broadcast %18 : vector<1x96xf32> to vector<16x96xf32>
    %20 = arith.addf %16, %19 : vector<16x96xf32>
    %21 = vector.extract_strided_slice %20 {offsets = [0, 0], sizes = [16, 32], strides = [1, 1]} : vector<16x96xf32> to vector<16x32xf32>
    %22 = vector.shape_cast %21 : vector<16x32xf32> to vector<1x16x32xf32>
    %23 = arith.truncf %22 : vector<1x16x32xf32> to vector<1x16x32xbf16>
    %24 = vector.extract_strided_slice %20 {offsets = [0, 32], sizes = [16, 32], strides = [1, 1]} : vector<16x96xf32> to vector<16x32xf32>
    %25 = vector.shape_cast %24 : vector<16x32xf32> to vector<1x16x32xf32>
    %26 = arith.truncf %25 : vector<1x16x32xf32> to vector<1x16x32xbf16>
    %27 = vector.extract_strided_slice %20 {offsets = [0, 64], sizes = [16, 32], strides = [1, 1]} : vector<16x96xf32> to vector<16x32xf32>
    %28 = vector.shape_cast %27 : vector<16x32xf32> to vector<1x16x32xf32>
    %29 = arith.truncf %28 : vector<1x16x32xf32> to vector<1x16x32xbf16>
    "tpu.trace_start"() <{level = 10 : i32, message = "bqe,bke->bqk"}> : () -> ()
    %cst_10 = arith.constant dense<0.000000e+00> : vector<1x16x16xf32>
    %30 = tpu.matmul %23, %26, %cst_10 {dimension_numbers = #tpu.dot_dimension_numbers<[2], [2], [1], [1], [0, 0, 0, 1, 1, 1], [0], [0]>} : vector<1x16x32xbf16>, vector<1x16x32xbf16>, vector<1x16x16xf32> -> vector<1x16x16xf32>
    "tpu.trace_stop"() : () -> ()
    %31 = vector.broadcast %10 : vector<1x1x16xf32> to vector<1x16x16xf32>
    %32 = arith.addf %30, %31 : vector<1x16x16xf32>
    %cst_11 = arith.constant dense<0xFF800000> : vector<1x16xf32>
    %33 = vector.multi_reduction <maximumf>, %32, %cst_11 [2] : vector<1x16x16xf32> to vector<1x16xf32>
    %34 = vector.shape_cast %33 : vector<1x16xf32> to vector<1x16x1xf32>
    %35 = vector.broadcast %34 : vector<1x16x1xf32> to vector<1x16x16xf32>
    %36 = arith.subf %32, %35 : vector<1x16x16xf32>
    %37 = math.exp %36 : vector<1x16x16xf32>
    %cst_12 = arith.constant dense<0.000000e+00> : vector<1x16xf32>
    %38 = vector.multi_reduction <add>, %37, %cst_12 [2] : vector<1x16x16xf32> to vector<1x16xf32>
    %39 = vector.shape_cast %38 : vector<1x16xf32> to vector<1x16x1xf32>
    %40 = tpu.reciprocal %39 {approx = true} : vector<1x16x1xf32> -> vector<1x16x1xf32>
    %41 = vector.broadcast %40 : vector<1x16x1xf32> to vector<1x16x16xf32>
    %42 = arith.mulf %37, %41 : vector<1x16x16xf32>
    %43 = arith.truncf %42 : vector<1x16x16xf32> to vector<1x16x16xbf16>
    "tpu.trace_start"() <{level = 10 : i32, message = "bqk,bke->bqe"}> : () -> ()
    %cst_13 = arith.constant dense<0.000000e+00> : vector<1x16x32xf32>
    %44 = tpu.matmul %43, %29, %cst_13 {dimension_numbers = #tpu.dot_dimension_numbers<[2], [1], [1], [2], [0, 0, 0, 1, 1, 2], [0], [0]>} : vector<1x16x16xbf16>, vector<1x16x32xbf16>, vector<1x16x32xf32> -> vector<1x16x32xf32>
    "tpu.trace_stop"() : () -> ()
    %45 = vector.shape_cast %44 : vector<1x16x32xf32> to vector<16x32xf32>
    %46 = arith.truncf %45 : vector<16x32xf32> to vector<16x32xbf16>
    %c0_14 = arith.constant 0 : index
    %c0_15 = arith.constant 0 : index
    %47 = vector.load %arg17[%c0_14, %c0_15] : memref<16x128xbf16, #tpu.memory_space<vmem>>, vector<16x32xbf16>
    tpu.vector_store %arg17[%c0_14, %c0_15], %46 {strides = array<i32>} : memref<16x128xbf16, #tpu.memory_space<vmem>>, vector<16x32xbf16>,
    %c1 = arith.constant 1 : index
    %c0_16 = arith.constant 0 : index
    %c0_17 = arith.constant 0 : index
    %48 = vector.load %arg2[%c1, %c0_16, %c0_17] : memref<4x128x96xbf16, #tpu.memory_space<vmem>>, vector<1x128x96xbf16>
    %49 = vector.shape_cast %48 : vector<1x128x96xbf16> to vector<128x96xbf16>
    %cst_18 = arith.constant dense<0.000000e+00> : vector<16x96xf32>
    %50 = tpu.matmul %12, %49, %cst_18 {dimension_numbers = #tpu.dot_dimension_numbers<[1], [0], [0], [1], [0, 0, 1, 1], [], []>} : vector<16x128xbf16>, vector<128x96xbf16>, vector<16x96xf32> -> vector<16x96xf32>
    %c1_19 = arith.constant 1 : index
    %c0_20 = arith.constant 0 : index
    %c0_21 = arith.constant 0 : index
    %51 = vector.load %arg3[%c1_19, %c0_20, %c0_21] : memref<4x1x96xf32, #tpu.memory_space<vmem>>, vector<1x1x96xf32>
    %52 = vector.shape_cast %51 : vector<1x1x96xf32> to vector<1x96xf32>
    %53 = vector.broadcast %52 : vector<1x96xf32> to vector<16x96xf32>
    %54 = arith.addf %50, %53 : vector<16x96xf32>
    %55 = vector.extract_strided_slice %54 {offsets = [0, 0], sizes = [16, 32], strides = [1, 1]} : vector<16x96xf32> to vector<16x32xf32>
    %56 = vector.shape_cast %55 : vector<16x32xf32> to vector<1x16x32xf32>
    %57 = arith.truncf %56 : vector<1x16x32xf32> to vector<1x16x32xbf16>
    %58 = vector.extract_strided_slice %54 {offsets = [0, 32], sizes = [16, 32], strides = [1, 1]} : vector<16x96xf32> to vector<16x32xf32>
    %59 = vector.shape_cast %58 : vector<16x32xf32> to vector<1x16x32xf32>
    %60 = arith.truncf %59 : vector<1x16x32xf32> to vector<1x16x32xbf16>
    %61 = vector.extract_strided_slice %54 {offsets = [0, 64], sizes = [16, 32], strides = [1, 1]} : vector<16x96xf32> to vector<16x32xf32>
    %62 = vector.shape_cast %61 : vector<16x32xf32> to vector<1x16x32xf32>
    %63 = arith.truncf %62 : vector<1x16x32xf32> to vector<1x16x32xbf16>
    "tpu.trace_start"() <{level = 10 : i32, message = "bqe,bke->bqk"}> : () -> ()
    %cst_22 = arith.constant dense<0.000000e+00> : vector<1x16x16xf32>
    %64 = tpu.matmul %57, %60, %cst_22 {dimension_numbers = #tpu.dot_dimension_numbers<[2], [2], [1], [1], [0, 0, 0, 1, 1, 1], [0], [0]>} : vector<1x16x32xbf16>, vector<1x16x32xbf16>, vector<1x16x16xf32> -> vector<1x16x16xf32>
    "tpu.trace_stop"() : () -> ()
    %65 = vector.broadcast %10 : vector<1x1x16xf32> to vector<1x16x16xf32>
    %66 = arith.addf %64, %65 : vector<1x16x16xf32>
    %cst_23 = arith.constant dense<0xFF800000> : vector<1x16xf32>
    %67 = vector.multi_reduction <maximumf>, %66, %cst_23 [2] : vector<1x16x16xf32> to vector<1x16xf32>
    %68 = vector.shape_cast %67 : vector<1x16xf32> to vector<1x16x1xf32>
    %69 = vector.broadcast %68 : vector<1x16x1xf32> to vector<1x16x16xf32>
    %70 = arith.subf %66, %69 : vector<1x16x16xf32>
    %71 = math.exp %70 : vector<1x16x16xf32>
    %cst_24 = arith.constant dense<0.000000e+00> : vector<1x16xf32>
    %72 = vector.multi_reduction <add>, %71, %cst_24 [2] : vector<1x16x16xf32> to vector<1x16xf32>
    %73 = vector.shape_cast %72 : vector<1x16xf32> to vector<1x16x1xf32>
    %74 = tpu.reciprocal %73 {approx = true} : vector<1x16x1xf32> -> vector<1x16x1xf32>
    %75 = vector.broadcast %74 : vector<1x16x1xf32> to vector<1x16x16xf32>
    %76 = arith.mulf %71, %75 : vector<1x16x16xf32>
    %77 = arith.truncf %76 : vector<1x16x16xf32> to vector<1x16x16xbf16>
    "tpu.trace_start"() <{level = 10 : i32, message = "bqk,bke->bqe"}> : () -> ()
    %cst_25 = arith.constant dense<0.000000e+00> : vector<1x16x32xf32>
    %78 = tpu.matmul %77, %63, %cst_25 {dimension_numbers = #tpu.dot_dimension_numbers<[2], [1], [1], [2], [0, 0, 0, 1, 1, 2], [0], [0]>} : vector<1x16x16xbf16>, vector<1x16x32xbf16>, vector<1x16x32xf32> -> vector<1x16x32xf32>
    "tpu.trace_stop"() : () -> ()
    %79 = vector.shape_cast %78 : vector<1x16x32xf32> to vector<16x32xf32>
    %80 = arith.truncf %79 : vector<16x32xf32> to vector<16x32xbf16>
    %c0_26 = arith.constant 0 : index
    %c32 = arith.constant 32 : index
    %81 = vector.load %arg17[%c0_26, %c32] : memref<16x128xbf16, #tpu.memory_space<vmem>>, vector<16x32xbf16>
    tpu.vector_store %arg17[%c0_26, %c32], %80 {strides = array<i32>} : memref<16x128xbf16, #tpu.memory_space<vmem>>, vector<16x32xbf16>,
    %c2 = arith.constant 2 : index
    %c0_27 = arith.constant 0 : index
    %c0_28 = arith.constant 0 : index
    %82 = vector.load %arg2[%c2, %c0_27, %c0_28] : memref<4x128x96xbf16, #tpu.memory_space<vmem>>, vector<1x128x96xbf16>
    %83 = vector.shape_cast %82 : vector<1x128x96xbf16> to vector<128x96xbf16>
    %cst_29 = arith.constant dense<0.000000e+00> : vector<16x96xf32>
    %84 = tpu.matmul %12, %83, %cst_29 {dimension_numbers = #tpu.dot_dimension_numbers<[1], [0], [0], [1], [0, 0, 1, 1], [], []>} : vector<16x128xbf16>, vector<128x96xbf16>, vector<16x96xf32> -> vector<16x96xf32>
    %c2_30 = arith.constant 2 : index
    %c0_31 = arith.constant 0 : index
    %c0_32 = arith.constant 0 : index
    %85 = vector.load %arg3[%c2_30, %c0_31, %c0_32] : memref<4x1x96xf32, #tpu.memory_space<vmem>>, vector<1x1x96xf32>
    %86 = vector.shape_cast %85 : vector<1x1x96xf32> to vector<1x96xf32>
    %87 = vector.broadcast %86 : vector<1x96xf32> to vector<16x96xf32>
    %88 = arith.addf %84, %87 : vector<16x96xf32>
    %89 = vector.extract_strided_slice %88 {offsets = [0, 0], sizes = [16, 32], strides = [1, 1]} : vector<16x96xf32> to vector<16x32xf32>
    %90 = vector.shape_cast %89 : vector<16x32xf32> to vector<1x16x32xf32>
    %91 = arith.truncf %90 : vector<1x16x32xf32> to vector<1x16x32xbf16>
    %92 = vector.extract_strided_slice %88 {offsets = [0, 32], sizes = [16, 32], strides = [1, 1]} : vector<16x96xf32> to vector<16x32xf32>
    %93 = vector.shape_cast %92 : vector<16x32xf32> to vector<1x16x32xf32>
    %94 = arith.truncf %93 : vector<1x16x32xf32> to vector<1x16x32xbf16>
    %95 = vector.extract_strided_slice %88 {offsets = [0, 64], sizes = [16, 32], strides = [1, 1]} : vector<16x96xf32> to vector<16x32xf32>
    %96 = vector.shape_cast %95 : vector<16x32xf32> to vector<1x16x32xf32>
    %97 = arith.truncf %96 : vector<1x16x32xf32> to vector<1x16x32xbf16>
    "tpu.trace_start"() <{level = 10 : i32, message = "bqe,bke->bqk"}> : () -> ()
    %cst_33 = arith.constant dense<0.000000e+00> : vector<1x16x16xf32>
    %98 = tpu.matmul %91, %94, %cst_33 {dimension_numbers = #tpu.dot_dimension_numbers<[2], [2], [1], [1], [0, 0, 0, 1, 1, 1], [0], [0]>} : vector<1x16x32xbf16>, vector<1x16x32xbf16>, vector<1x16x16xf32> -> vector<1x16x16xf32>
    "tpu.trace_stop"() : () -> ()
    %99 = vector.broadcast %10 : vector<1x1x16xf32> to vector<1x16x16xf32>
    %100 = arith.addf %98, %99 : vector<1x16x16xf32>
    %cst_34 = arith.constant dense<0xFF800000> : vector<1x16xf32>
    %101 = vector.multi_reduction <maximumf>, %100, %cst_34 [2] : vector<1x16x16xf32> to vector<1x16xf32>
    %102 = vector.shape_cast %101 : vector<1x16xf32> to vector<1x16x1xf32>
    %103 = vector.broadcast %102 : vector<1x16x1xf32> to vector<1x16x16xf32>
    %104 = arith.subf %100, %103 : vector<1x16x16xf32>
    %105 = math.exp %104 : vector<1x16x16xf32>
    %cst_35 = arith.constant dense<0.000000e+00> : vector<1x16xf32>
    %106 = vector.multi_reduction <add>, %105, %cst_35 [2] : vector<1x16x16xf32> to vector<1x16xf32>
    %107 = vector.shape_cast %106 : vector<1x16xf32> to vector<1x16x1xf32>
    %108 = tpu.reciprocal %107 {approx = true} : vector<1x16x1xf32> -> vector<1x16x1xf32>
    %109 = vector.broadcast %108 : vector<1x16x1xf32> to vector<1x16x16xf32>
    %110 = arith.mulf %105, %109 : vector<1x16x16xf32>
    %111 = arith.truncf %110 : vector<1x16x16xf32> to vector<1x16x16xbf16>
    "tpu.trace_start"() <{level = 10 : i32, message = "bqk,bke->bqe"}> : () -> ()
    %cst_36 = arith.constant dense<0.000000e+00> : vector<1x16x32xf32>
    %112 = tpu.matmul %111, %97, %cst_36 {dimension_numbers = #tpu.dot_dimension_numbers<[2], [1], [1], [2], [0, 0, 0, 1, 1, 2], [0], [0]>} : vector<1x16x16xbf16>, vector<1x16x32xbf16>, vector<1x16x32xf32> -> vector<1x16x32xf32>
    "tpu.trace_stop"() : () -> ()
    %113 = vector.shape_cast %112 : vector<1x16x32xf32> to vector<16x32xf32>
    %114 = arith.truncf %113 : vector<16x32xf32> to vector<16x32xbf16>
    %c0_37 = arith.constant 0 : index
    %c64 = arith.constant 64 : index
    %115 = vector.load %arg17[%c0_37, %c64] : memref<16x128xbf16, #tpu.memory_space<vmem>>, vector<16x32xbf16>
    tpu.vector_store %arg17[%c0_37, %c64], %114 {strides = array<i32>} : memref<16x128xbf16, #tpu.memory_space<vmem>>, vector<16x32xbf16>,
    %c3 = arith.constant 3 : index
    %c0_38 = arith.constant 0 : index
    %c0_39 = arith.constant 0 : index
    %116 = vector.load %arg2[%c3, %c0_38, %c0_39] : memref<4x128x96xbf16, #tpu.memory_space<vmem>>, vector<1x128x96xbf16>
    %117 = vector.shape_cast %116 : vector<1x128x96xbf16> to vector<128x96xbf16>
    %cst_40 = arith.constant dense<0.000000e+00> : vector<16x96xf32>
    %118 = tpu.matmul %12, %117, %cst_40 {dimension_numbers = #tpu.dot_dimension_numbers<[1], [0], [0], [1], [0, 0, 1, 1], [], []>} : vector<16x128xbf16>, vector<128x96xbf16>, vector<16x96xf32> -> vector<16x96xf32>
    %c3_41 = arith.constant 3 : index
    %c0_42 = arith.constant 0 : index
    %c0_43 = arith.constant 0 : index
    %119 = vector.load %arg3[%c3_41, %c0_42, %c0_43] : memref<4x1x96xf32, #tpu.memory_space<vmem>>, vector<1x1x96xf32>
    %120 = vector.shape_cast %119 : vector<1x1x96xf32> to vector<1x96xf32>
    %121 = vector.broadcast %120 : vector<1x96xf32> to vector<16x96xf32>
    %122 = arith.addf %118, %121 : vector<16x96xf32>
    %123 = vector.extract_strided_slice %122 {offsets = [0, 0], sizes = [16, 32], strides = [1, 1]} : vector<16x96xf32> to vector<16x32xf32>
    %124 = vector.shape_cast %123 : vector<16x32xf32> to vector<1x16x32xf32>
    %125 = arith.truncf %124 : vector<1x16x32xf32> to vector<1x16x32xbf16>
    %126 = vector.extract_strided_slice %122 {offsets = [0, 32], sizes = [16, 32], strides = [1, 1]} : vector<16x96xf32> to vector<16x32xf32>
    %127 = vector.shape_cast %126 : vector<16x32xf32> to vector<1x16x32xf32>
    %128 = arith.truncf %127 : vector<1x16x32xf32> to vector<1x16x32xbf16>
    %129 = vector.extract_strided_slice %122 {offsets = [0, 64], sizes = [16, 32], strides = [1, 1]} : vector<16x96xf32> to vector<16x32xf32>
    %130 = vector.shape_cast %129 : vector<16x32xf32> to vector<1x16x32xf32>
    %131 = arith.truncf %130 : vector<1x16x32xf32> to vector<1x16x32xbf16>
    "tpu.trace_start"() <{level = 10 : i32, message = "bqe,bke->bqk"}> : () -> ()
    %cst_44 = arith.constant dense<0.000000e+00> : vector<1x16x16xf32>
    %132 = tpu.matmul %125, %128, %cst_44 {dimension_numbers = #tpu.dot_dimension_numbers<[2], [2], [1], [1], [0, 0, 0, 1, 1, 1], [0], [0]>} : vector<1x16x32xbf16>, vector<1x16x32xbf16>, vector<1x16x16xf32> -> vector<1x16x16xf32>
    "tpu.trace_stop"() : () -> ()
    %133 = vector.broadcast %10 : vector<1x1x16xf32> to vector<1x16x16xf32>
    %134 = arith.addf %132, %133 : vector<1x16x16xf32>
    %cst_45 = arith.constant dense<0xFF800000> : vector<1x16xf32>
    %135 = vector.multi_reduction <maximumf>, %134, %cst_45 [2] : vector<1x16x16xf32> to vector<1x16xf32>
    %136 = vector.shape_cast %135 : vector<1x16xf32> to vector<1x16x1xf32>
    %137 = vector.broadcast %136 : vector<1x16x1xf32> to vector<1x16x16xf32>
    %138 = arith.subf %134, %137 : vector<1x16x16xf32>
    %139 = math.exp %138 : vector<1x16x16xf32>
    %cst_46 = arith.constant dense<0.000000e+00> : vector<1x16xf32>
    %140 = vector.multi_reduction <add>, %139, %cst_46 [2] : vector<1x16x16xf32> to vector<1x16xf32>
    %141 = vector.shape_cast %140 : vector<1x16xf32> to vector<1x16x1xf32>
    %142 = tpu.reciprocal %141 {approx = true} : vector<1x16x1xf32> -> vector<1x16x1xf32>
    %143 = vector.broadcast %142 : vector<1x16x1xf32> to vector<1x16x16xf32>
    %144 = arith.mulf %139, %143 : vector<1x16x16xf32>
    %145 = arith.truncf %144 : vector<1x16x16xf32> to vector<1x16x16xbf16>
    "tpu.trace_start"() <{level = 10 : i32, message = "bqk,bke->bqe"}> : () -> ()
    %cst_47 = arith.constant dense<0.000000e+00> : vector<1x16x32xf32>
    %146 = tpu.matmul %145, %131, %cst_47 {dimension_numbers = #tpu.dot_dimension_numbers<[2], [1], [1], [2], [0, 0, 0, 1, 1, 2], [0], [0]>} : vector<1x16x16xbf16>, vector<1x16x32xbf16>, vector<1x16x32xf32> -> vector<1x16x32xf32>
    "tpu.trace_stop"() : () -> ()
    %147 = vector.shape_cast %146 : vector<1x16x32xf32> to vector<16x32xf32>
    %148 = arith.truncf %147 : vector<16x32xf32> to vector<16x32xbf16>
    %c0_48 = arith.constant 0 : index
    %c96 = arith.constant 96 : index
    %149 = vector.load %arg17[%c0_48, %c96] : memref<16x128xbf16, #tpu.memory_space<vmem>>, vector<16x32xbf16>
    tpu.vector_store %arg17[%c0_48, %c96], %148 {strides = array<i32>} : memref<16x128xbf16, #tpu.memory_space<vmem>>, vector<16x32xbf16>,
    %c0_49 = arith.constant 0 : index
    %c0_50 = arith.constant 0 : index
    %150 = vector.load %arg17[%c0_49, %c0_50] : memref<16x128xbf16, #tpu.memory_space<vmem>>, vector<16x128xbf16>
    %c0_51 = arith.constant 0 : index
    %c0_52 = arith.constant 0 : index
    %151 = vector.load %arg4[%c0_51, %c0_52] : memref<128x128xbf16, #tpu.memory_space<vmem>>, vector<128x128xbf16>
    %cst_53 = arith.constant dense<0.000000e+00> : vector<16x128xf32>
    %152 = tpu.matmul %150, %151, %cst_53 {dimension_numbers = #tpu.dot_dimension_numbers<[1], [0], [0], [1], [0, 0, 1, 1], [], []>} : vector<16x128xbf16>, vector<128x128xbf16>, vector<16x128xf32> -> vector<16x128xf32>
    %c0_54 = arith.constant 0 : index
    %c0_55 = arith.constant 0 : index
    %153 = vector.load %arg5[%c0_54, %c0_55] : memref<1x128xf32, #tpu.memory_space<vmem>>, vector<1x128xf32>
    %154 = vector.broadcast %153 : vector<1x128xf32> to vector<16x128xf32>
    %155 = arith.addf %152, %154 : vector<16x128xf32>
    %156 = arith.addf %13, %155 : vector<16x128xf32>
    %c0_56 = arith.constant 0 : index
    %c0_57 = arith.constant 0 : index
    %157 = vector.load %arg6[%c0_56, %c0_57] : memref<1x128xf32, #tpu.memory_space<vmem>>, vector<1x128xf32>
    %c0_58 = arith.constant 0 : index
    %c0_59 = arith.constant 0 : index
    %158 = vector.load %arg7[%c0_58, %c0_59] : memref<1x128xf32, #tpu.memory_space<vmem>>, vector<1x128xf32>
    %cst_60 = arith.constant dense<0.000000e+00> : vector<16xf32>
    %159 = vector.multi_reduction <add>, %156, %cst_60 [1] : vector<16x128xf32> to vector<16xf32>
    %160 = vector.shape_cast %159 : vector<16xf32> to vector<16x1xf32>
    %cst_61 = arith.constant 3.125000e-02 : f32
    %161 = vector.broadcast %cst_61 : f32 to vector<16x1xf32>
    %162 = arith.mulf %160, %161 : vector<16x1xf32>
    %163 = vector.broadcast %162 : vector<16x1xf32> to vector<16x128xf32>
    %164 = arith.subf %156, %163 : vector<16x128xf32>
    %165 = vector.broadcast %4 : vector<1x128xf32> to vector<16x128xf32>
    %166 = arith.mulf %164, %165 : vector<16x128xf32>
    %167 = arith.mulf %166, %166 : vector<16x128xf32>
    %cst_62 = arith.constant dense<0.000000e+00> : vector<16xf32>
    %168 = vector.multi_reduction <add>, %167, %cst_62 [1] : vector<16x128xf32> to vector<16xf32>
    %169 = vector.shape_cast %168 : vector<16xf32> to vector<16x1xf32>
    %cst_63 = arith.constant 3.125000e-02 : f32
    %170 = vector.broadcast %cst_63 : f32 to vector<16x1xf32>
    %171 = arith.mulf %169, %170 : vector<16x1xf32>
    %cst_64 = arith.constant 9.99999974E-6 : f32
    %172 = vector.broadcast %cst_64 : f32 to vector<16x1xf32>
    %173 = arith.addf %171, %172 : vector<16x1xf32>
    %174 = math.rsqrt %173 : vector<16x1xf32>
    %175 = vector.broadcast %174 : vector<16x1xf32> to vector<16x128xf32>
    %176 = arith.mulf %166, %175 : vector<16x128xf32>
    %177 = vector.broadcast %157 : vector<1x128xf32> to vector<16x128xf32>
    %178 = arith.mulf %176, %177 : vector<16x128xf32>
    %179 = vector.broadcast %158 : vector<1x128xf32> to vector<16x128xf32>
    %180 = arith.addf %178, %179 : vector<16x128xf32>
    %181 = arith.truncf %180 : vector<16x128xf32> to vector<16x128xbf16>
    %c0_65 = arith.constant 0 : index
    %c0_66 = arith.constant 0 : index
    %182 = vector.load %arg8[%c0_65, %c0_66] : memref<128x128xbf16, #tpu.memory_space<vmem>>, vector<128x128xbf16>
    %cst_67 = arith.constant dense<0.000000e+00> : vector<16x128xf32>
    %183 = tpu.matmul %181, %182, %cst_67 {dimension_numbers = #tpu.dot_dimension_numbers<[1], [0], [0], [1], [0, 0, 1, 1], [], []>} : vector<16x128xbf16>, vector<128x128xbf16>, vector<16x128xf32> -> vector<16x128xf32>
    %c0_68 = arith.constant 0 : index
    %c0_69 = arith.constant 0 : index
    %184 = vector.load %arg9[%c0_68, %c0_69] : memref<1x128xf32, #tpu.memory_space<vmem>>, vector<1x128xf32>
    %185 = vector.broadcast %184 : vector<1x128xf32> to vector<16x128xf32>
    %186 = arith.addf %183, %185 : vector<16x128xf32>
    %cst_70 = arith.constant 5.000000e-01 : f32
    %187 = vector.broadcast %cst_70 : f32 to vector<16x128xf32>
    %188 = arith.mulf %187, %186 : vector<16x128xf32>
    %cst_71 = arith.constant 0.707106769 : f32
    %189 = vector.broadcast %cst_71 : f32 to vector<16x128xf32>
    %190 = arith.mulf %186, %189 : vector<16x128xf32>
    %191 = math.erf %190 : vector<16x128xf32>
    %cst_72 = arith.constant 1.000000e+00 : f32
    %192 = vector.broadcast %cst_72 : f32 to vector<16x128xf32>
    %193 = arith.addf %192, %191 : vector<16x128xf32>
    %194 = arith.mulf %188, %193 : vector<16x128xf32>
    %195 = arith.truncf %194 : vector<16x128xf32> to vector<16x128xbf16>
    %c0_73 = arith.constant 0 : index
    %c0_74 = arith.constant 0 : index
    %196 = vector.load %arg10[%c0_73, %c0_74] : memref<128x128xbf16, #tpu.memory_space<vmem>>, vector<128x128xbf16>
    %cst_75 = arith.constant dense<0.000000e+00> : vector<16x128xf32>
    %197 = tpu.matmul %195, %196, %cst_75 {dimension_numbers = #tpu.dot_dimension_numbers<[1], [0], [0], [1], [0, 0, 1, 1], [], []>} : vector<16x128xbf16>, vector<128x128xbf16>, vector<16x128xf32> -> vector<16x128xf32>
    %c0_76 = arith.constant 0 : index
    %c0_77 = arith.constant 0 : index
    %198 = vector.load %arg11[%c0_76, %c0_77] : memref<1x128xf32, #tpu.memory_space<vmem>>, vector<1x128xf32>
    %199 = vector.broadcast %198 : vector<1x128xf32> to vector<16x128xf32>
    %200 = arith.addf %197, %199 : vector<16x128xf32>
    %201 = arith.addf %180, %200 : vector<16x128xf32>
    %c0_78 = arith.constant 0 : index
    %c0_79 = arith.constant 0 : index
    %202 = vector.load %arg12[%c0_78, %c0_79] : memref<1x128xf32, #tpu.memory_space<vmem>>, vector<1x128xf32>
    %c0_80 = arith.constant 0 : index
    %c0_81 = arith.constant 0 : index
    %203 = vector.load %arg13[%c0_80, %c0_81] : memref<1x128xf32, #tpu.memory_space<vmem>>, vector<1x128xf32>
    %cst_82 = arith.constant dense<0.000000e+00> : vector<16xf32>
    %204 = vector.multi_reduction <add>, %201, %cst_82 [1] : vector<16x128xf32> to vector<16xf32>
    %205 = vector.shape_cast %204 : vector<16xf32> to vector<16x1xf32>
    %cst_83 = arith.constant 3.125000e-02 : f32
    %206 = vector.broadcast %cst_83 : f32 to vector<16x1xf32>
    %207 = arith.mulf %205, %206 : vector<16x1xf32>
    %208 = vector.broadcast %207 : vector<16x1xf32> to vector<16x128xf32>
    %209 = arith.subf %201, %208 : vector<16x128xf32>
    %210 = vector.broadcast %4 : vector<1x128xf32> to vector<16x128xf32>
    %211 = arith.mulf %209, %210 : vector<16x128xf32>
    %212 = arith.mulf %211, %211 : vector<16x128xf32>
    %cst_84 = arith.constant dense<0.000000e+00> : vector<16xf32>
    %213 = vector.multi_reduction <add>, %212, %cst_84 [1] : vector<16x128xf32> to vector<16xf32>
    %214 = vector.shape_cast %213 : vector<16xf32> to vector<16x1xf32>
    %cst_85 = arith.constant 3.125000e-02 : f32
    %215 = vector.broadcast %cst_85 : f32 to vector<16x1xf32>
    %216 = arith.mulf %214, %215 : vector<16x1xf32>
    %cst_86 = arith.constant 9.99999974E-6 : f32
    %217 = vector.broadcast %cst_86 : f32 to vector<16x1xf32>
    %218 = arith.addf %216, %217 : vector<16x1xf32>
    %219 = math.rsqrt %218 : vector<16x1xf32>
    %220 = vector.broadcast %219 : vector<16x1xf32> to vector<16x128xf32>
    %221 = arith.mulf %211, %220 : vector<16x128xf32>
    %222 = vector.broadcast %202 : vector<1x128xf32> to vector<16x128xf32>
    %223 = arith.mulf %221, %222 : vector<16x128xf32>
    %224 = vector.broadcast %203 : vector<1x128xf32> to vector<16x128xf32>
    %225 = arith.addf %223, %224 : vector<16x128xf32>
    %c0_87 = arith.constant 0 : index
    %c0_88 = arith.constant 0 : index
    %226 = vector.load %arg14[%c0_87, %c0_88] : memref<1x128xf32, #tpu.memory_space<vmem>>, vector<1x128xf32>
    %c0_89 = arith.constant 0 : index
    %c0_90 = arith.constant 0 : index
    %227 = vector.load %arg15[%c0_89, %c0_90] : memref<1x128xf32, #tpu.memory_space<vmem>>, vector<1x128xf32>
    %cst_91 = arith.constant dense<0.000000e+00> : vector<16xf32>
    %228 = vector.multi_reduction <add>, %225, %cst_91 [1] : vector<16x128xf32> to vector<16xf32>
    %229 = vector.shape_cast %228 : vector<16xf32> to vector<16x1xf32>
    %cst_92 = arith.constant 3.125000e-02 : f32
    %230 = vector.broadcast %cst_92 : f32 to vector<16x1xf32>
    %231 = arith.mulf %229, %230 : vector<16x1xf32>
    %232 = vector.broadcast %231 : vector<16x1xf32> to vector<16x128xf32>
    %233 = arith.subf %225, %232 : vector<16x128xf32>
    %234 = vector.broadcast %4 : vector<1x128xf32> to vector<16x128xf32>
    %235 = arith.mulf %233, %234 : vector<16x128xf32>
    %236 = arith.mulf %235, %235 : vector<16x128xf32>
    %cst_93 = arith.constant dense<0.000000e+00> : vector<16xf32>
    %237 = vector.multi_reduction <add>, %236, %cst_93 [1] : vector<16x128xf32> to vector<16xf32>
    %238 = vector.shape_cast %237 : vector<16xf32> to vector<16x1xf32>
    %cst_94 = arith.constant 3.125000e-02 : f32
    %239 = vector.broadcast %cst_94 : f32 to vector<16x1xf32>
    %240 = arith.mulf %238, %239 : vector<16x1xf32>
    %cst_95 = arith.constant 9.99999974E-6 : f32
    %241 = vector.broadcast %cst_95 : f32 to vector<16x1xf32>
    %242 = arith.addf %240, %241 : vector<16x1xf32>
    %243 = math.rsqrt %242 : vector<16x1xf32>
    %244 = vector.broadcast %243 : vector<16x1xf32> to vector<16x128xf32>
    %245 = arith.mulf %235, %244 : vector<16x128xf32>
    %246 = vector.broadcast %226 : vector<1x128xf32> to vector<16x128xf32>
    %247 = arith.mulf %245, %246 : vector<16x128xf32>
    %248 = vector.broadcast %227 : vector<1x128xf32> to vector<16x128xf32>
    %249 = arith.addf %247, %248 : vector<16x128xf32>
    %250 = vector.shape_cast %249 : vector<16x128xf32> to vector<1x16x128xf32>
    %251 = vector.extract_strided_slice %250 {offsets = [0, 0, 0], sizes = [1, 8, 128], strides = [1, 1, 1]} : vector<1x16x128xf32> to vector<1x8x128xf32>
    %c0_96 = arith.constant 0 : index
    %c0_97 = arith.constant 0 : index
    %c0_98 = arith.constant 0 : index
    %252 = vector.load %arg16[%c0_96, %c0_97, %c0_98] : memref<1x8x128xf32, #tpu.memory_space<vmem>>, vector<1x8x128xf32>
    tpu.vector_store %arg16[%c0_96, %c0_97, %c0_98], %251 {strides = array<i32>} : memref<1x8x128xf32, #tpu.memory_space<vmem>>, vector<1x8x128xf32>,
    return
  }
  func.func @transform_0(%arg0: i32) -> (i32, i32, i32) {
    %c0_i32 = arith.constant 0 : i32
    %c0_i32_0 = arith.constant 0 : i32
    %c0_i32_1 = arith.constant 0 : i32
    return %arg0, %c0_i32, %c0_i32_0 : i32, i32, i32
  }
  func.func @transform_1(%arg0: i32) -> (i32, i32, i32) {
    %c0_i32 = arith.constant 0 : i32
    %c0_i32_0 = arith.constant 0 : i32
    %c0_i32_1 = arith.constant 0 : i32
    %c0_i32_2 = arith.constant 0 : i32
    return %c0_i32, %c0_i32_0, %c0_i32_1 : i32, i32, i32
  }
  func.func @transform_2(%arg0: i32) -> (i32, i32, i32) {
    %c0_i32 = arith.constant 0 : i32
    %c0_i32_0 = arith.constant 0 : i32
    %c0_i32_1 = arith.constant 0 : i32
    %c0_i32_2 = arith.constant 0 : i32
    return %c0_i32, %c0_i32_0, %c0_i32_1 : i32, i32, i32
  }
  func.func @transform_3(%arg0: i32) -> (i32, i32) {
    %c0_i32 = arith.constant 0 : i32
    %c0_i32_0 = arith.constant 0 : i32
    %c0_i32_1 = arith.constant 0 : i32
    return %c0_i32, %c0_i32_0 : i32, i32
  }
  func.func @transform_4(%arg0: i32) -> (i32, i32) {
    %c0_i32 = arith.constant 0 : i32
    %c0_i32_0 = arith.constant 0 : i32
    %c0_i32_1 = arith.constant 0 : i32
    return %c0_i32, %c0_i32_0 : i32, i32
  }
  func.func @transform_5(%arg0: i32) -> (i32, i32) {
    %c0_i32 = arith.constant 0 : i32
    %c0_i32_0 = arith.constant 0 : i32
    %c0_i32_1 = arith.constant 0 : i32
    return %c0_i32, %c0_i32_0 : i32, i32
  }
  func.func @transform_6(%arg0: i32) -> (i32, i32) {
    %c0_i32 = arith.constant 0 : i32
    %c0_i32_0 = arith.constant 0 : i32
    %c0_i32_1 = arith.constant 0 : i32
    return %c0_i32, %c0_i32_0 : i32, i32
  }
  func.func @transform_7(%arg0: i32) -> (i32, i32) {
    %c0_i32 = arith.constant 0 : i32
    %c0_i32_0 = arith.constant 0 : i32
    %c0_i32_1 = arith.constant 0 : i32
    return %c0_i32, %c0_i32_0 : i32, i32
  }
  func.func @transform_8(%arg0: i32) -> (i32, i32) {
    %c0_i32 = arith.constant 0 : i32
    %c0_i32_0 = arith.constant 0 : i32
    %c0_i32_1 = arith.constant 0 : i32
    return %c0_i32, %c0_i32_0 : i32, i32
  }
  func.func @transform_9(%arg0: i32) -> (i32, i32) {
    %c0_i32 = arith.constant 0 : i32
    %c0_i32_0 = arith.constant 0 : i32
    %c0_i32_1 = arith.constant 0 : i32
    return %c0_i32, %c0_i32_0 : i32, i32
  }
  func.func @transform_10(%arg0: i32) -> (i32, i32) {
    %c0_i32 = arith.constant 0 : i32
    %c0_i32_0 = arith.constant 0 : i32
    %c0_i32_1 = arith.constant 0 : i32
    return %c0_i32, %c0_i32_0 : i32, i32
  }
  func.func @transform_11(%arg0: i32) -> (i32, i32) {
    %c0_i32 = arith.constant 0 : i32
    %c0_i32_0 = arith.constant 0 : i32
    %c0_i32_1 = arith.constant 0 : i32
    return %c0_i32, %c0_i32_0 : i32, i32
  }
  func.func @transform_12(%arg0: i32) -> (i32, i32) {
    %c0_i32 = arith.constant 0 : i32
    %c0_i32_0 = arith.constant 0 : i32
    %c0_i32_1 = arith.constant 0 : i32
    return %c0_i32, %c0_i32_0 : i32, i32
  }
  func.func @transform_13(%arg0: i32) -> (i32, i32) {
    %c0_i32 = arith.constant 0 : i32
    %c0_i32_0 = arith.constant 0 : i32
    %c0_i32_1 = arith.constant 0 : i32
    return %c0_i32, %c0_i32_0 : i32, i32
  }
  func.func @transform_14(%arg0: i32) -> (i32, i32) {
    %c0_i32 = arith.constant 0 : i32
    %c0_i32_0 = arith.constant 0 : i32
    %c0_i32_1 = arith.constant 0 : i32
    return %c0_i32, %c0_i32_0 : i32, i32
  }
  func.func @transform_15(%arg0: i32) -> (i32, i32, i32) {
    %c0_i32 = arith.constant 0 : i32
    %c0_i32_0 = arith.constant 0 : i32
    %c0_i32_1 = arith.constant 0 : i32
    return %arg0, %c0_i32, %c0_i32_0 : i32, i32, i32
  }
}

</mosaic_0001>

<bundles_post_ra>
// kernel: tpu_custom_call.1
= control target key start
LH: loop header
LB: loop body
LE: loop exit
PB: predicated region body
PF: predicated region fallthrough
CT: control target
= control target key end

     0   :  { %s3232_s0 = inlined_call_operand.vmem [shape: bf16[2,16,128], index: 0, kind: input, shape index: {}]   ;;  %s3233_s1 = inlined_call_operand.vmem [shape: bf16[4,128,96], index: 1, kind: input, shape index: {}]   ;;  %s3234_s2 = inlined_call_operand.vmem [shape: f32[4,1,96], index: 2, kind: input, shape index: {}]   ;;  %s3235_s3 = inlined_call_operand.vmem [shape: bf16[128,128], index: 3, kind: input, shape index: {}]   ;;  %s3236_s4 = inlined_call_operand.vmem [shape: f32[1,128], index: 4, kind: input, shape index: {}]   ;;  %s3237_s5 = inlined_call_operand.vmem [shape: f32[1,128], index: 5, kind: input, shape index: {}]   ;;  %s3238_s6 = inlined_call_operand.vmem [shape: f32[1,128], index: 6, kind: input, shape index: {}]   ;;  %s3239_s7 = inlined_call_operand.vmem [shape: bf16[128,128], index: 7, kind: input, shape index: {}]   ;;  %s3240_s8 = inlined_call_operand.vmem [shape: f32[1,128], index: 8, kind: input, shape index: {}]   ;;  %s3241_s9 = inlined_call_operand.vmem [shape: bf16[128,128], index: 9, kind: input, shape index: {}]   ;;  %s3242_s10 = inlined_call_operand.vmem [shape: f32[1,128], index: 10, kind: input, shape index: {}]   ;;  %s3243_s11 = inlined_call_operand.vmem [shape: f32[1,128], index: 11, kind: input, shape index: {}]   ;;  %s3244_s12 = inlined_call_operand.vmem [shape: f32[1,128], index: 12, kind: input, shape index: {}]   ;;  %s3245_s13 = inlined_call_operand.vmem [shape: f32[1,128], index: 13, kind: input, shape index: {}]   ;;  %s3246_s14 = inlined_call_operand.vmem [shape: f32[1,128], index: 14, kind: input, shape index: {}]   ;;  %s3247_s15 = inlined_call_operand.hbm [shape: f32[2,8,128], index: 15, kind: output, shape index: {}]  }
   0x1   :  { %3252 = sst [smem:[#allocation10_spill]] %s3232_s0 }
   0x2   :  { %3253 = sst [smem:[#allocation11_spill]] %s3233_s1 }
   0x3   :  { %3254 = sst [smem:[#allocation12_spill]] %s3234_s2 }
   0x4   :  { %3255 = sst [smem:[#allocation13_spill]] %s3235_s3 }
   0x5   :  { %20 = vsyncpa [#allocation4], 0 }
   0x6   :  { %22 = vsyncpa [#allocation4 + $0x1], 0  ;;  %s2760_s18 = smov 0   ;;  %s2762_s19 = smov 0  }
   0x7   :  { %s2764_s20 = smov 0   ;;  %s2766_s21 = smov 0  }
   0x8 LB: > { %3256 = sst [smem:[#allocation6_spill]] %s2667_s20  ;;  %s2781_s22 = sadd.s32 4294967295, %s2671_s21   ;;  %s2671_s21 = sphi %s2766_s21, %s3267_s21   ;;  %s2667_s20 = sphi %s2764_s20, %s3269_s20   ;;  %s2663_s19 = sphi %s2762_s19, %s3271_s19   ;;  %s2659_s18 = sphi %s2760_s18, %s3270_s18  }
   0x9   : > { %s2037_s23 = sadd.s32 4294967294, %s2671_s21   ;;  %s2785_s24 = sadd.s32 1, %s2671_s21  }
   0xa   : > { %3257 = sst [smem:[#allocation7_spill]] %s2785_s24  ;;  %s355_s25 = sadd.s32 1, %s2667_s20 }
   0xb   : > { %s352_s26 = ssub.s32 %s2671_s21, %s2785_s24  ;;  %p365_p0 = scmp.ne.s32.totalorder %s2667_s20, %s2663_s19 }
   0xc   : > { %p353_p1 = scmp.eq.s32.totalorder %s352_s26, 0  ;;  %p366_p2 = scmp.eq.s32.totalorder %s2781_s22, 1 }
   0xd   : > { %p371_p3 = scmp.ne.s32.totalorder %s2663_s19, %s2659_s18  ;;  %p372_p4 = scmp.eq.s32.totalorder %s2037_s23, 1 }
   0xe   : > { %s2796_s27 = scalar_select %p353_p1, %s2667_s20, %s355_s25  }
   0xf   : > { %p2798_p5 = por %p366_p2, %p365_p0  ;;  %p2802_p6 = por %p372_p4, %p371_p3 }
  0x10   : > { %3258 = sst [smem:[#allocation8_spill]] %s2796_s27  ;;  %p2040_p7 = scmp.ge.s32.totalorder %s2671_s21, 1 }
  0x11   : > { %s3260_s29 = scalar_select %p2802_p6, 1, 0 }
  0x12   : > { %p440_p8 = scmp.lt.s32.totalorder %s2671_s21, 3 }
  0x13   : > { %3261 = sst [smem:[#allocation9_spill]] %s3260_s29 }
  0x14   : > { %p441_p9 = pnand %p2040_p7, %p440_p8 }
  0x15   : > { %s3262_s1 = sld [smem:[#allocation11_spill]] (!%p441_p9)  ;;  %p488_p10 = scmp.lt.s32.totalorder (!%p441_p9), %s2781_s22, 1 }
  0x16   : > { %444 = sbr.rel (%p441_p9) target bundleno = 5036 (0x13ac), region = 80  ;;  %s3263_s0 = sld [smem:[#allocation10_spill]] (!%p441_p9) }
  0x17   : > { %s3264_s2 = sld [smem:[#allocation12_spill]] (!%p441_p9)  ;;  %s2677_s26 = smov (!%p441_p9), 64  }
  0x18   : > { %s2678_s24 = smov (!%p441_p9), 32   ;;  %s3265_s3 = sld [smem:[#allocation13_spill]] (!%p441_p9) }
  0x19   : > { %s485_s16 = sand.u32 (!%p441_p9), 1, %s2663_s19   ;;  %s2679_s17 = smov (!%p441_p9), [#allocation3]  }
  0x1a   : > { %s2615_s20 = sshll.u32 (!%p441_p9), %s2679_s17, 4  ;;  %s2616_s20 = int_to_ptr.vmem [resolvable:$false] %s2615_s20 }
  0x1b   : > { %v2508_v0 = vld [vmem:[%s3262_s1 + $0x38] sm:$0xff]   ;;  %v2673_v1 = vmov 0.0   ;;  %v2509_v2 = vld [vmem:[%s3262_s1 + $0x30] sm:$0xff]   ;;  %vm2674_vm0 = vmmov 0   ;;  %s489_s25 = scalar_select %p488_p10, %s2781_s22, 1  ;;  %v2510_v3 = vld [vmem:[%s3262_s1 + $0x28] sm:$0xff]   ;;  %v494_v20 = vlaneseq }
  0x1c   : > { %2275 = vmatprep.subr.bf16.mxu0 %v2673_v1  ;;  %2295 = vmatprep.subr.bf16.mxu1 %v2673_v1  ;;  %v2511_v4 = vld [vmem:[%s3262_s1 + $0x20] sm:$0xff]   ;;  %v2512_v5 = vld [vmem:[%s3262_s1 + $0x18] sm:$0xff]   ;;  %v2513_v6 = vld [vmem:[%s3262_s1 + $0x10] sm:$0xff]   ;;  %vm627_vm1 = vcmask 261120   ;;  %v2676_v22 = vmov -1e+30  }
  0x1d   : > { %2276 = vmatpush3.bf16.msra.mxu0 %v2508_v0  ;;  %2291 = vmatprep.mubr.msk.bf16.mxu0 %vm2674_vm0, %v2673_v1  ;;  %s2187_s23 = sshll.u32 %s489_s25, 3  ;;  %v2514_v7 = vld [vmem:[%s3262_s1 + $0x8] sm:$0xff]   ;;  %v2515_v8 = vld [vmem:[%s3262_s1] sm:$0xff]   ;;  %v2865_v21 = vand.u32 127, %v494_v20  ;;  %vm675_vm3 = vcmask 130048   ;;  %v2517_v49 = vld [vmem:[%s3262_s1 + $0x78] sm:$0xff]  }
  0x1e   : > { %2277 = vmatprep.subr.bf16.mxu0 %v2673_v1  ;;  %2297 = vmatprep.mubr.msk.bf16.mxu1 %vm2674_vm0, %v2673_v1  ;;  %s492_s29 = scalar_lea.vmem %s3263_s0, %s2187_s23  ;;  %v2045_v11 = vld [vmem:[%s3264_s2] ss:$0 sm:$0xff]  ;;  %v2518_v51 = vld [vmem:[%s3262_s1 + $0x70] sm:$0xff]   ;;  %v2519_v52 = vld [vmem:[%s3262_s1 + $0x68] sm:$0xff]   ;;  %vm754_vm4 = vcmask 257024   ;;  %vm1004_vm5 = vcmask 519424  }
  0x1f   : > { %v2849_v9 = vld [vmem:[%s492_s29] sm:$0xff]   ;;  %s2675_s29 = smov 96   ;;  %vm499_vm2 = vcmp.lt.s32.totalorder %v2865_v21, 8  ;;  %v2521_v54 = vld [vmem:[%s3262_s1 + $0x58] sm:$0xff]   ;;  %v2522_v55 = vld [vmem:[%s3262_s1 + $0x50] sm:$0xff]   ;;  %vm1254_vm6 = vcmask 781824  }
  0x20   : > { %v2868_v23 = vsel %vm499_vm2, 0.0, %v2676_v22  ;;  %v2520_v53 = vld [vmem:[%s3262_s1 + $0x60] sm:$0xff]   ;;  %v2523_v56 = vld [vmem:[%s3262_s1 + $0x48] sm:$0xff]   ;;  %vm1504_vm7 = vcmask 1044224   ;;  %vm496_vm8 = vcmp.lt.s32.totalorder %v2865_v21, 32  ;;  %v2551_v21 = vld [vmem:[%s3239_s7 + $0x30] sm:$0xff]  }
  0x21   : > { %2278 = vmatpush3.bf16.msra.mxu0 %v2509_v2  ;;  %v2524_v57 = vld [vmem:[%s3262_s1 + $0x40] sm:$0xff]   ;;  %s2041_s25 = sshll.u32 %s485_s16, 3 }
  0x22   : > { %2279 = vmatprep.subr.bf16.mxu0 %v2673_v1  ;;  %v2076_v2 = vld [vmem:[%s3264_s2 + $0x1] ss:$0 sm:$0xff] }
  0x25   : > { %2280 = vmatpush3.bf16.msra.mxu0 %v2510_v3 }
  0x26   : > { %2281 = vmatprep.subr.bf16.mxu0 %v2673_v1 }
  0x29   : > { %2282 = vmatpush3.bf16.msra.mxu0 %v2511_v4 }
  0x2a   : > { %2283 = vmatprep.subr.bf16.mxu0 %v2673_v1 }
  0x2d   : > { %2284 = vmatpush3.bf16.msra.mxu0 %v2512_v5  ;;  %v2525_v5 = vld [vmem:[%s3262_s1 + $0xb8] sm:$0xff]  }
  0x2e   : > { %2285 = vmatprep.subr.bf16.mxu0 %v2673_v1 }
  0x31   : > { %2286 = vmatpush3.bf16.msra.mxu0 %v2513_v6 }
  0x32   : > { %2287 = vmatprep.subr.bf16.mxu0 %v2673_v1 }
  0x35   : > { %2288 = vmatpush3.bf16.msra.mxu0 %v2514_v7 }
  0x36   : > { %2289 = vmatprep.subr.bf16.mxu0 %v2673_v1 }
  0x39   : > { %2290 = vmatpush3.bf16.msra.mxu0 %v2515_v8 }
  0x3a   : > { %2339 = vmatprep.subr.bf16.mxu0 %v2673_v1 }
  0x3c   : > { %2292 = vmatmul.mubr.bf16.vlgmr.msra.gmra.mxu0 %v2849_v9 }
  0x3d   : > { %2355 = vmatprep.mubr.msk.bf16.mxu0 %vm2674_vm0, %v2673_v1  ;;  %2340 = vmatpush3.bf16.msra.mxu0 %v2525_v5 }
  0x3e   : > { %2341 = vmatprep.subr.bf16.mxu0 %v2673_v1 }
  0xfc   : > { %v616_v10 = vpop.f32.mrf.mxu0 }
  0xfd   : > { %v617_v14 = vadd.f32 %v2045_v11, %v616_v10  ;;  %v2526_v10 = vld [vmem:[%s3262_s1 + $0xb0] sm:$0xff]  }
  0xfe   : > { %v2293_v12 = vpop.f32.mrf.mxu0  ;;  %2342 = vmatpush3.bf16.msra.mxu0 %v2526_v10 }
  0xff   : > { %v2527_v12 = vld [vmem:[%s3262_s1 + $0xa8] sm:$0xff]   ;;  %2343 = vmatprep.subr.bf16.mxu0 %v2673_v1 }
 0x100   : > { %v619_v13 = vpop.f32.mrf.mxu0 }
 0x101   : > { %v620_v15 = vadd.f32 %v2045_v11, %v619_v13  ;;  %v2528_v13 = vld [vmem:[%s3262_s1 + $0xa0] sm:$0xff]  }
 0x102   : > { %v2294_v16 = vpop.f32.mrf.mxu0  ;;  %2344 = vmatpush3.bf16.msra.mxu0 %v2527_v12 }
 0x103   : > { %v623_v17 = vpack.c.bf16 %v620_v15, %v617_v14  ;;  %2345 = vmatprep.subr.bf16.mxu0 %v2673_v1  ;;  %v2529_v14 = vld [vmem:[%s3262_s1 + $0x98] sm:$0xff]   ;;  %v2530_v15 = vld [vmem:[%s3262_s1 + $0x90] sm:$0xff]   ;;  %v2531_v16 = vld [vmem:[%s3262_s1 + $0x88] sm:$0xff]  }
 0x105   : > { %625 = vrot.lane.b32.xlu0 %v623_v17, %s2675_s29 }
 0x106   : > { %2346 = vmatpush3.bf16.msra.mxu0 %v2528_v13 }
 0x107   : > { %2347 = vmatprep.subr.bf16.mxu0 %v2673_v1 }
 0x10a   : > { %2348 = vmatpush3.bf16.msra.mxu0 %v2529_v14 }
 0x10b   : > { %2349 = vmatprep.subr.bf16.mxu0 %v2673_v1 }
 0x10e   : > { %2350 = vmatpush3.bf16.msra.mxu0 %v2530_v15 }
 0x10f   : > { %2351 = vmatprep.subr.bf16.mxu0 %v2673_v1 }
 0x112   : > { %2352 = vmatpush3.bf16.msra.mxu0 %v2531_v16 }
 0x113   : > { %2353 = vmatprep.subr.bf16.mxu0 %v2673_v1 }
 0x177   : > { %v626_v18 = vpop.permute.xlu0 %625 }
 0x178   : > { %v632_v19 = vsel %vm627_vm1, %v626_v18, 0 }
 0x179   : > { %2296 = vmatpush3.bf16.xpose.msra.mxu1 %v632_v19 }
 0x17a   : > { %2301 = vmatprep.subr.bf16.mxu1 %v2673_v1 }
 0x180   : > { %2298 = vmatmul.mubr.msk.bf16.vlgmr.msra.gmra.mxu1 %vm627_vm1, %v623_v17 }
 0x181   : > { %2303 = vmatprep.mubr.msk.bf16.mxu1 %vm2674_vm0, %v2673_v1 }
 0x240   : > { %v668_v24 = vpop.f32.mrf.mxu1 }
 0x241   : > { %v669_v25 = vadd.f32 %v668_v24, %v2868_v23 }
 0x242   : > { %v2299_v26 = vpop.f32.mrf.mxu1 }
 0x243   : > { %v676_v27 = vsel %vm675_vm3, %v669_v25, -inf }
 0x244   : > { %677 = vmax.xlane.f32.xlu0 %v676_v27  ;;  %v671_v28 = vpop.f32.mrf.mxu1 }
 0x245   : > { %v672_v29 = vadd.f32 %v671_v28, %v2868_v23 }
 0x246   : > { %v2300_v30 = vpop.f32.mrf.mxu1 }
 0x247   : > { %v679_v31 = vsel %vm675_vm3, %v672_v29, -inf  ;;  %v2106_v30 = vld [vmem:[%s3264_s2 + $0x2] ss:$0 sm:$0xff] }
 0x248   : > { %680 = vmax.xlane.f32.xlu1 %v679_v31 }
 0x2cd   : > { %v678_v32 = vpop.xlane.xlu0 %677 }
 0x2ce   : > { %v682_v33 = vsub.f32 %v669_v25, %v678_v32 }
 0x2d0   : > { %v684_v34 = vmul.f32 1.442695, %v682_v33 }
 0x2d1   : > { %v681_v35 = vpop.xlane.xlu1 %680 }
 0x2d2   : > { %2567 = vpow2.f32 %v684_v34  ;;  %v683_v36 = vsub.f32 %v672_v29, %v681_v35 }
 0x2d4   : > { %v686_v37 = vmul.f32 1.442695, %v683_v36 }
 0x2d6   : > { %2569 = vpow2.f32 %v686_v37 }
 0x2df   : > { %v2568_v38 = vpop.eup %2567 }
 0x2e0   : > { %v688_v39 = vsel %vm675_vm3, %v2568_v38, 0.0 }
 0x2e1   : > { %689 = vadd.xlane.f32.xlu1 %v688_v39 }
 0x2e3   : > { %v2570_v40 = vpop.eup %2569 }
 0x2e4   : > { %v691_v41 = vsel %vm675_vm3, %v2570_v40, 0.0 }
 0x2e5   : > { %692 = vadd.xlane.f32.xlu1 %v691_v41 }
 0x2f6   : > { %699 = vrot.lane.b32.xlu1 %v623_v17, %s2677_s26  ;;  %v2532_v17 = vld [vmem:[%s3262_s1 + $0x80] sm:$0xff]  }
 0x2f7   : > { %2354 = vmatpush3.bf16.msra.mxu0 %v2532_v17 }
 0x2f8   : > { %2391 = vmatprep.subr.bf16.mxu0 %v2673_v1 }
 0x2fa   : > { %2356 = vmatmul.mubr.bf16.vlgmr.msra.gmra.mxu0 %v2849_v9 }
 0x2fb   : > { %2393 = vmatprep.mubr.msk.bf16.mxu0 %vm2674_vm0, %v2673_v1 }
 0x36a   : > { %v690_v42 = vpop.xlane.xlu1 %689 }
 0x36b   : > { %2571 = vrcp.f32 %v690_v42 }
 0x36e   : > { %v693_v43 = vpop.xlane.xlu1 %692 }
 0x36f   : > { %2573 = vrcp.f32 %v693_v43 }
 0x372   : > { %v700_v44 = vpop.permute.xlu1 %699 }
 0x373   : > { %2302 = vmatpush3.bf16.msra.mxu1 %v700_v44 }
 0x374   : > { %2307 = vmatprep.subr.bf16.mxu1 %v2673_v1 }
 0x378   : > { %v2572_v45 = vpop.eup %2571 }
 0x379   : > { %v696_v47 = vmul.f32 %v2572_v45, %v2568_v38 }
 0x37c   : > { %v2574_v46 = vpop.eup %2573 }
 0x37d   : > { %v697_v48 = vmul.f32 %v2574_v46, %v2570_v40 }
 0x37f   : > { %v698_v50 = vpack.c.bf16 %v697_v48, %v696_v47 }
 0x381   : > { %2304 = vmatmul.mubr.msk.bf16.vlgmr.msra.gmra.mxu1 %vm675_vm3, %v698_v50 }
 0x382   : > { %2308 = vmatpush3.bf16.msra.mxu1 %v2517_v49  ;;  %2323 = vmatprep.mubr.msk.bf16.mxu1 %vm2674_vm0, %v2673_v1 }
 0x383   : > { %2309 = vmatprep.subr.bf16.mxu1 %v2673_v1 }
 0x386   : > { %2310 = vmatpush3.bf16.msra.mxu1 %v2518_v51 }
 0x387   : > { %2311 = vmatprep.subr.bf16.mxu1 %v2673_v1 }
 0x38a   : > { %2312 = vmatpush3.bf16.msra.mxu1 %v2519_v52 }
 0x38b   : > { %2313 = vmatprep.subr.bf16.mxu1 %v2673_v1 }
 0x38e   : > { %2314 = vmatpush3.bf16.msra.mxu1 %v2520_v53 }
 0x38f   : > { %2315 = vmatprep.subr.bf16.mxu1 %v2673_v1 }
 0x392   : > { %2316 = vmatpush3.bf16.msra.mxu1 %v2521_v54 }
 0x393   : > { %2317 = vmatprep.subr.bf16.mxu1 %v2673_v1 }
 0x396   : > { %2318 = vmatpush3.bf16.msra.mxu1 %v2522_v55 }
 0x397   : > { %2319 = vmatprep.subr.bf16.mxu1 %v2673_v1 }
 0x39a   : > { %2320 = vmatpush3.bf16.msra.mxu1 %v2523_v56 }
 0x39b   : > { %2321 = vmatprep.subr.bf16.mxu1 %v2673_v1 }
 0x39e   : > { %2322 = vmatpush3.bf16.msra.mxu1 %v2524_v57 }
 0x39f   : > { %2327 = vmatprep.subr.bf16.mxu1 %v2673_v1 }
 0x3a1   : > { %2324 = vmatmul.mubr.bf16.vlgmr.msra.gmra.mxu1 %v2849_v9 }
 0x3a2   : > { %2329 = vmatprep.mubr.msk.bf16.mxu1 %vm2674_vm0, %v2673_v1 }
 0x3ba   : > { %v1114_v31 = vpop.f32.mrf.mxu0 }
 0x3bb   : > { %v1115_v33 = vadd.f32 %v2106_v30, %v1114_v31  ;;  %v2536_v31 = vld [vmem:[%s3262_s1 + $0xe0] sm:$0xff]  }
 0x3bc   : > { %v2357_v32 = vpop.f32.mrf.mxu0 }
 0x3bd   : > { %v2537_v32 = vld [vmem:[%s3262_s1 + $0xd8] sm:$0xff]  }
 0x3be   : > { %v1117_v34 = vpop.f32.mrf.mxu0 }
 0x3bf   : > { %v1118_v35 = vadd.f32 %v2106_v30, %v1117_v34  ;;  %v2535_v30 = vld [vmem:[%s3262_s1 + $0xe8] sm:$0xff]  }
 0x3c0   : > { %v2358_v36 = vpop.f32.mrf.mxu0  ;;  %v2539_v34 = vld [vmem:[%s3262_s1 + $0xc8] sm:$0xff]  }
 0x3c1   : > { %v2968_v37 = vpack.c.bf16 %v1118_v35, %v1115_v33  ;;  %v2538_v33 = vld [vmem:[%s3262_s1 + $0xd0] sm:$0xff]   ;;  %v2540_v35 = vld [vmem:[%s3262_s1 + $0xc0] sm:$0xff]  }
 0x441   : > { %v739_v58 = vpop.f32.mrf.mxu1 }
 0x442   : > { %v2188_v59 = vpack.c.bf16 %v739_v58, %v739_v58 }
 0x443   : > { %v2305_v60 = vpop.f32.mrf.mxu1 }
 0x444   : > { %755 = vst.msk [vmem:[#allocation2] sm:$0xf] %vm754_vm4, %v2188_v59 }
 0x445   : > { %v742_v61 = vpop.f32.mrf.mxu1 }
 0x446   : > { %v2189_v62 = vpack.c.bf16 %v742_v61, %v742_v61 }
 0x447   : > { %v2306_v63 = vpop.f32.mrf.mxu1 }
 0x448   : > { %756 = vst.msk [vmem:[#allocation2 + $0x4] sm:$0xf] %vm754_vm4, %v2189_v62 }
 0x461   : > { %v864_v0 = vpop.f32.mrf.mxu1 }
 0x462   : > { %v865_v6 = vadd.f32 %v2076_v2, %v864_v0 }
 0x463   : > { %v2325_v3 = vpop.f32.mrf.mxu1 }
 0x465   : > { %v867_v4 = vpop.f32.mrf.mxu1 }
 0x466   : > { %v868_v7 = vadd.f32 %v2076_v2, %v867_v4 }
 0x467   : > { %v2326_v8 = vpop.f32.mrf.mxu1 }
 0x468   : > { %v871_v11 = vpack.c.bf16 %v868_v7, %v865_v6 }
 0x46a   : > { %873 = vrot.lane.b32.xlu1 %v871_v11, %s2675_s29 }
 0x4dc   : > { %v874_v18 = vpop.permute.xlu1 %873 }
 0x4dd   : > { %v879_v19 = vsel %vm627_vm1, %v874_v18, 0 }
 0x4de   : > { %2328 = vmatpush3.bf16.xpose.msra.mxu1 %v879_v19 }
 0x4df   : > { %2333 = vmatprep.subr.bf16.mxu1 %v2673_v1 }
 0x4e5   : > { %2330 = vmatmul.mubr.msk.bf16.vlgmr.msra.gmra.mxu1 %vm627_vm1, %v871_v11 }
 0x4e6   : > { %2335 = vmatprep.mubr.msk.bf16.mxu1 %vm2674_vm0, %v2673_v1 }
 0x5a5   : > { %v915_v20 = vpop.f32.mrf.mxu1 }
 0x5a6   : > { %v916_v22 = vadd.f32 %v915_v20, %v2868_v23 }
 0x5a7   : > { %v2331_v24 = vpop.f32.mrf.mxu1 }
 0x5a8   : > { %v922_v25 = vsel %vm675_vm3, %v916_v22, -inf }
 0x5a9   : > { %923 = vmax.xlane.f32.xlu1 %v922_v25  ;;  %v918_v26 = vpop.f32.mrf.mxu1 }
 0x5aa   : > { %v919_v27 = vadd.f32 %v918_v26, %v2868_v23 }
 0x5ab   : > { %v2332_v28 = vpop.f32.mrf.mxu1 }
 0x5ac   : > { %v925_v29 = vsel %vm675_vm3, %v919_v27, -inf }
 0x5ad   : > { %926 = vmax.xlane.f32.xlu0 %v925_v29  ;;  %v2534_v29 = vld [vmem:[%s3262_s1 + $0xf0] sm:$0xff]  }
 0x5c3   : > { %945 = vrot.lane.b32.xlu0 %v871_v11, %s2677_s26 }
 0x632   : > { %v924_v38 = vpop.xlane.xlu1 %923 }
 0x633   : > { %v928_v39 = vsub.f32 %v916_v22, %v924_v38 }
 0x635   : > { %v930_v40 = vmul.f32 1.442695, %v928_v39 }
 0x636   : > { %v927_v41 = vpop.xlane.xlu0 %926 }
 0x637   : > { %2575 = vpow2.f32 %v930_v40  ;;  %v929_v42 = vsub.f32 %v919_v27, %v927_v41  ;;  %v2533_v27 = vld [vmem:[%s3262_s1 + $0xf8] sm:$0xff]   ;;  %v2136_v41 = vld [vmem:[%s3264_s2 + $0x3] ss:$0 sm:$0xff]  ;;  %s1965_s2 = scalar_lea.sflag [#allocation4], %s485_s16 }
 0x639   : > { %v932_v43 = vmul.f32 1.442695, %v929_v42 }
 0x63a   : > { %v946_v44 = vpop.permute.xlu0 %945 }
 0x63b   : > { %2577 = vpow2.f32 %v932_v43  ;;  %2334 = vmatpush3.bf16.msra.mxu1 %v946_v44 }
 0x63c   : > { %2359 = vmatprep.subr.bf16.mxu1 %v2673_v1 }
 0x644   : > { %v2576_v45 = vpop.eup %2575 }
 0x645   : > { %v934_v46 = vsel %vm675_vm3, %v2576_v45, 0.0 }
 0x646   : > { %935 = vadd.xlane.f32.xlu0 %v934_v46 }
 0x648   : > { %v2578_v47 = vpop.eup %2577 }
 0x649   : > { %v937_v48 = vsel %vm675_vm3, %v2578_v47, 0.0 }
 0x64a   : > { %938 = vadd.xlane.f32.xlu0 %v937_v48 }
 0x660   : > { %1123 = vrot.lane.b32.xlu0 %v2968_v37, %s2675_s29 }
 0x6cf   : > { %v936_v49 = vpop.xlane.xlu0 %935 }
 0x6d0   : > { %2579 = vrcp.f32 %v936_v49 }
 0x6d3   : > { %v939_v50 = vpop.xlane.xlu0 %938 }
 0x6d4   : > { %2581 = vrcp.f32 %v939_v50 }
 0x6d7   : > { %v1124_v55 = vpop.permute.xlu0 %1123 }
 0x6d8   : > { %v1129_v57 = vsel %vm627_vm1, %v1124_v55, 0 }
 0x6dd   : > { %v2580_v51 = vpop.eup %2579 }
 0x6de   : > { %v942_v53 = vmul.f32 %v2580_v51, %v2576_v45 }
 0x6e1   : > { %v2582_v52 = vpop.eup %2581 }
 0x6e2   : > { %v943_v54 = vmul.f32 %v2582_v52, %v2578_v47 }
 0x6e4   : > { %v944_v56 = vpack.c.bf16 %v943_v54, %v942_v53 }
 0x6e6   : > { %2336 = vmatmul.mubr.msk.bf16.vlgmr.msra.gmra.mxu1 %vm675_vm3, %v944_v56 }
 0x6e7   : > { %2360 = vmatpush3.bf16.xpose.msra.mxu1 %v1129_v57  ;;  %2361 = vmatprep.mubr.msk.bf16.mxu1 %vm2674_vm0, %v2673_v1 }
 0x6e8   : > { %2365 = vmatprep.subr.bf16.mxu1 %v2673_v1 }
 0x6ee   : > { %2362 = vmatmul.mubr.msk.bf16.vlgmr.msra.gmra.mxu1 %vm627_vm1, %v2968_v37 }
 0x6ef   : > { %2367 = vmatprep.mubr.msk.bf16.mxu1 %vm2674_vm0, %v2673_v1 }
 0x7a6   : > { %v2984_v58 = vpop.f32.mrf.mxu1 }
 0x7a8   : > { %v2337_v59 = vpop.f32.mrf.mxu1 }
 0x7aa   : > { %v2986_v60 = vpop.f32.mrf.mxu1 }
 0x7ab   : > { %v2191_v59 = vpack.c.bf16 %v2986_v60, %v2986_v60 }
 0x7ac   : > { %v2338_v61 = vpop.f32.mrf.mxu1 }
 0x7ae   : > { %v1165_v62 = vpop.f32.mrf.mxu1 }
 0x7af   : > { %v1166_v63 = vadd.f32 %v1165_v62, %v2868_v23 }
 0x7b0   : > { %v2363_v0 = vpop.f32.mrf.mxu1 }
 0x7b1   : > { %v1172_v2 = vsel %vm675_vm3, %v1166_v63, -inf }
 0x7b2   : > { %1173 = vmax.xlane.f32.xlu1 %v1172_v2  ;;  %v1168_v3 = vpop.f32.mrf.mxu1 }
 0x7b3   : > { %v1169_v4 = vadd.f32 %v1168_v3, %v2868_v23 }
 0x7b4   : > { %v2364_v5 = vpop.f32.mrf.mxu1 }
 0x7b5   : > { %v1175_v6 = vsel %vm675_vm3, %v1169_v4, -inf }
 0x7b6   : > { %1176 = vmax.xlane.f32.xlu0 %v1175_v6 }
 0x83b   : > { %v1174_v7 = vpop.xlane.xlu1 %1173 }
 0x83c   : > { %v1178_v8 = vsub.f32 %v1166_v63, %v1174_v7  ;;  %v2190_v7 = vpack.c.bf16 %v2984_v58, %v2984_v58 }
 0x83e   : > { %v1180_v10 = vmul.f32 1.442695, %v1178_v8 }
 0x83f   : > { %v1177_v11 = vpop.xlane.xlu0 %1176 }
 0x840   : > { %2583 = vpow2.f32 %v1180_v10  ;;  %v1179_v12 = vsub.f32 %v1169_v4, %v1177_v11 }
 0x842   : > { %v1182_v13 = vmul.f32 1.442695, %v1179_v12 }
 0x844   : > { %2585 = vpow2.f32 %v1182_v13 }
 0x84d   : > { %v2584_v14 = vpop.eup %2583 }
 0x84e   : > { %v1184_v15 = vsel %vm675_vm3, %v2584_v14, 0.0 }
 0x84f   : > { %1185 = vadd.xlane.f32.xlu1 %v1184_v15 }
 0x851   : > { %v2586_v16 = vpop.eup %2585 }
 0x852   : > { %v1187_v17 = vsel %vm675_vm3, %v2586_v16, 0.0 }
 0x853   : > { %1188 = vadd.xlane.f32.xlu1 %v1187_v17 }
 0x864   : > { %1195 = vrot.lane.b32.xlu1 %v2968_v37, %s2677_s26 }
 0x8d8   : > { %v1186_v18 = vpop.xlane.xlu1 %1185 }
 0x8d9   : > { %2587 = vrcp.f32 %v1186_v18 }
 0x8dc   : > { %v1189_v19 = vpop.xlane.xlu1 %1188 }
 0x8dd   : > { %2589 = vrcp.f32 %v1189_v19 }
 0x8e0   : > { %v1196_v20 = vpop.permute.xlu1 %1195 }
 0x8e1   : > { %2366 = vmatpush3.bf16.msra.mxu1 %v1196_v20 }
 0x8e2   : > { %2371 = vmatprep.subr.bf16.mxu1 %v2673_v1 }
 0x8e6   : > { %v2588_v22 = vpop.eup %2587 }
 0x8e7   : > { %v1192_v25 = vmul.f32 %v2588_v22, %v2584_v14  ;;  %v2541_v22 = vld [vmem:[%s3265_s3 + $0x38] sm:$0xff]  }
 0x8ea   : > { %v2590_v24 = vpop.eup %2589 }
 0x8eb   : > { %v1193_v26 = vmul.f32 %v2590_v24, %v2586_v16  ;;  %v2542_v24 = vld [vmem:[%s3265_s3 + $0x30] sm:$0xff]  }
 0x8ed   : > { %v1194_v28 = vpack.c.bf16 %v1193_v26, %v1192_v25  ;;  %v2543_v25 = vld [vmem:[%s3265_s3 + $0x28] sm:$0xff]   ;;  %v2544_v26 = vld [vmem:[%s3265_s3 + $0x20] sm:$0xff]  }
 0x8ef   : > { %2368 = vmatmul.mubr.msk.bf16.vlgmr.msra.gmra.mxu1 %vm675_vm3, %v1194_v28  ;;  %v2546_v28 = vld [vmem:[%s3265_s3 + $0x10] sm:$0xff]  }
 0x8f0   : > { %2372 = vmatpush3.bf16.msra.mxu1 %v2533_v27  ;;  %2387 = vmatprep.mubr.msk.bf16.mxu1 %vm2674_vm0, %v2673_v1  ;;  %v2545_v27 = vld [vmem:[%s3265_s3 + $0x18] sm:$0xff]  }
 0x8f1   : > { %2373 = vmatprep.subr.bf16.mxu1 %v2673_v1 }
 0x8f4   : > { %2374 = vmatpush3.bf16.msra.mxu1 %v2534_v29  ;;  %v2547_v29 = vld [vmem:[%s3265_s3 + $0x8] sm:$0xff]  }
 0x8f5   : > { %2375 = vmatprep.subr.bf16.mxu1 %v2673_v1 }
 0x8f8   : > { %2376 = vmatpush3.bf16.msra.mxu1 %v2535_v30  ;;  %v2548_v30 = vld [vmem:[%s3265_s3] sm:$0xff]  }
 0x8f9   : > { %2377 = vmatprep.subr.bf16.mxu1 %v2673_v1 }
 0x8fc   : > { %2378 = vmatpush3.bf16.msra.mxu1 %v2536_v31 }
 0x8fd   : > { %2379 = vmatprep.subr.bf16.mxu1 %v2673_v1 }
 0x900   : > { %2380 = vmatpush3.bf16.msra.mxu1 %v2537_v32 }
 0x901   : > { %2381 = vmatprep.subr.bf16.mxu1 %v2673_v1 }
 0x904   : > { %2382 = vmatpush3.bf16.msra.mxu1 %v2538_v33 }
 0x905   : > { %2383 = vmatprep.subr.bf16.mxu1 %v2673_v1 }
 0x908   : > { %2384 = vmatpush3.bf16.msra.mxu1 %v2539_v34 }
 0x909   : > { %2385 = vmatprep.subr.bf16.mxu1 %v2673_v1 }
 0x90c   : > { %2386 = vmatpush3.bf16.msra.mxu1 %v2540_v35 }
 0x90d   : > { %2423 = vmatprep.subr.bf16.mxu1 %v2673_v1 }
 0x90f   : > { %2388 = vmatmul.mubr.bf16.vlgmr.msra.gmra.mxu1 %v2849_v9 }
 0x910   : > { %2439 = vmatprep.mubr.msk.bf16.mxu1 %vm2674_vm0, %v2673_v1 }
 0x9af   : > { %v1235_v36 = vpop.f32.mrf.mxu1 }
 0x9b0   : > { %v2192_v8 = vpack.c.bf16 %v1235_v36, %v1235_v36 }
 0x9b1   : > { %v2369_v37 = vpop.f32.mrf.mxu1 }
 0x9b3   : > { %v1238_v38 = vpop.f32.mrf.mxu1 }
 0x9b4   : > { %v2193_v10 = vpack.c.bf16 %v1238_v38, %v1238_v38 }
 0x9b5   : > { %v2370_v39 = vpop.f32.mrf.mxu1 }
 0x9cf   : > { %v1364_v40 = vpop.f32.mrf.mxu1 }
 0x9d0   : > { %v1365_v44 = vadd.f32 %v2136_v41, %v1364_v40  ;;  %v2149_v40 = vld [vmem:[%s3236_s4] ss:$0 sm:$0xff] }
 0x9d1   : > { %v2389_v42 = vpop.f32.mrf.mxu1 }
 0x9d3   : > { %v1367_v43 = vpop.f32.mrf.mxu1 }
 0x9d4   : > { %v1368_v45 = vadd.f32 %v2136_v41, %v1367_v43  ;;  %v503_v41 = vunpack.c.l.bf16 %v2849_v9 }
 0x9d5   : > { %v2390_v46 = vpop.f32.mrf.mxu1 }
 0x9d6   : > { %v1371_v47 = vpack.c.bf16 %v1368_v45, %v1365_v44  ;;  %v504_v46 = vunpack.c.h.bf16 %v2849_v9 }
 0x9d8   : > { %1373 = vrot.lane.b32.xlu1 %v1371_v47, %s2675_s29 }
 0xa4a   : > { %v1374_v48 = vpop.permute.xlu1 %1373 }
 0xa4b   : > { %v1379_v49 = vsel %vm627_vm1, %v1374_v48, 0 }
 0xa4c   : > { %2392 = vmatpush3.bf16.xpose.msra.mxu0 %v1379_v49 }
 0xa4d   : > { %2397 = vmatprep.subr.bf16.mxu0 %v2673_v1 }
 0xa53   : > { %2394 = vmatmul.mubr.msk.bf16.vlgmr.msra.gmra.mxu0 %vm627_vm1, %v1371_v47 }
 0xa54   : > { %2399 = vmatprep.mubr.msk.bf16.mxu0 %vm2674_vm0, %v2673_v1 }
 0xb13   : > { %v1415_v50 = vpop.f32.mrf.mxu0 }
 0xb14   : > { %v1416_v51 = vadd.f32 %v1415_v50, %v2868_v23 }
 0xb15   : > { %v2395_v52 = vpop.f32.mrf.mxu0 }
 0xb16   : > { %v1422_v53 = vsel %vm675_vm3, %v1416_v51, -inf }
 0xb17   : > { %1423 = vmax.xlane.f32.xlu1 %v1422_v53  ;;  %v1418_v54 = vpop.f32.mrf.mxu0 }
 0xb18   : > { %v1419_v55 = vadd.f32 %v1418_v54, %v2868_v23  ;;  %v3110_v54 = vsel %vm496_vm8, 1.0, %v2673_v1 }
 0xb19   : > { %v2396_v56 = vpop.f32.mrf.mxu0 }
 0xb1a   : > { %v1425_v57 = vsel %vm675_vm3, %v1419_v55, -inf }
 0xb1b   : > { %1426 = vmax.xlane.f32.xlu0 %v1425_v57 }
 0xb28   : > { %1000 = vrot.lane.b32.xlu1 %v2191_v59, %s2678_s24 }
 0xba0   : > { %v1424_v61 = vpop.xlane.xlu1 %1423 }
 0xba1   : > { %v1428_v62 = vsub.f32 %v1416_v51, %v1424_v61  ;;  %v2550_v51 = vld [vmem:[%s3239_s7 + $0x38] sm:$0xff]  }
 0xba2   : > { %2424 = vmatpush3.bf16.msra.mxu1 %v2550_v51 }
 0xba3   : > { %v1430_v63 = vmul.f32 1.442695, %v1428_v62  ;;  %2425 = vmatprep.subr.bf16.mxu1 %v2673_v1 }
 0xba4   : > { %v1001_v0 = vpop.permute.xlu1 %1000  ;;  %v1427_v2 = vpop.xlane.xlu0 %1426 }
 0xba5   : > { %2591 = vpow2.f32 %v1430_v63  ;;  %1006 = vst.msk [vmem:[#allocation2 + $0x4] sm:$0xf] %vm1004_vm5, %v1001_v0  ;;  %v1429_v3 = vsub.f32 %v1419_v55, %v1427_v2  ;;  %v2552_v0 = vld [vmem:[%s3239_s7 + $0x28] sm:$0xff]   ;;  %v2553_v2 = vld [vmem:[%s3239_s7 + $0x20] sm:$0xff]  }
 0xba6   : > { %2426 = vmatpush3.bf16.msra.mxu1 %v2551_v21 }
 0xba7   : > { %v1432_v23 = vmul.f32 1.442695, %v1429_v3  ;;  %2427 = vmatprep.subr.bf16.mxu1 %v2673_v1  ;;  %v2554_v3 = vld [vmem:[%s3239_s7 + $0x18] sm:$0xff]  }
 0xba9   : > { %2593 = vpow2.f32 %v1432_v23  ;;  %v2555_v23 = vld [vmem:[%s3239_s7 + $0x10] sm:$0xff]  }
 0xbaa   : > { %2428 = vmatpush3.bf16.msra.mxu1 %v2552_v0 }
 0xbab   : > { %2429 = vmatprep.subr.bf16.mxu1 %v2673_v1 }
 0xbae   : > { %2430 = vmatpush3.bf16.msra.mxu1 %v2553_v2 }
 0xbaf   : > { %2431 = vmatprep.subr.bf16.mxu1 %v2673_v1 }
 0xbb2   : > { %v2592_v4 = vpop.eup %2591  ;;  %2432 = vmatpush3.bf16.msra.mxu1 %v2554_v3  ;;  %v2179_v3 = vld [vmem:[%s3243_s11] ss:$0 sm:$0xff] }
 0xbb3   : > { %v1434_v5 = vsel %vm675_vm3, %v2592_v4, 0.0  ;;  %2433 = vmatprep.subr.bf16.mxu1 %v2673_v1 }
 0xbb4   : > { %1435 = vadd.xlane.f32.xlu0 %v1434_v5  ;;  %v2557_v5 = vld [vmem:[%s3239_s7] sm:$0xff]  }
 0xbb6   : > { %v2594_v6 = vpop.eup %2593  ;;  %2434 = vmatpush3.bf16.msra.mxu1 %v2555_v23 }
 0xbb7   : > { %v1437_v60 = vsel %vm675_vm3, %v2594_v6, 0.0  ;;  %2435 = vmatprep.subr.bf16.mxu1 %v2673_v1 }
 0xbb8   : > { %1438 = vadd.xlane.f32.xlu0 %v1437_v60 }
 0xbce   : > { %1445 = vrot.lane.b32.xlu0 %v1371_v47, %s2677_s26 }
 0xbd2   : > { %998 = vrot.lane.b32.xlu0 %v2190_v7, %s2678_s24 }
 0xbd6   : > { %1248 = vrot.lane.b32.xlu0 %v2192_v8, %s2677_s26 }
 0xbda   : > { %1250 = vrot.lane.b32.xlu0 %v2193_v10, %s2677_s26  ;;  %s487_s26 = scalar_lea.vmem [#allocation3], %s2041_s25 }
 0xbdb   : > { %s1978_s23 = sshll.u32 %s487_s26, 4  ;;  %s1979_s23 = int_to_ptr.vmem [resolvable:$true] %s1978_s23 }
 0xbdc   : > { %s2611_s3 = scalar_lea.vmem %s1979_s23, 128  ;;  %p2618_p0 = scmp.lt.s32.totalorder %s1979_s23, %s2616_s20 }
 0xbdd   : > { %p2612_p11 = scmp.ne.s32.totalorder %s1979_s23, %s2611_s3 }
 0xbdf   : > { %p2613_p12 = pnand %p2612_p11, %p2798_p5 }
 0xbe1   : > { %p2614_p13 = pneg %p2613_p12 }
 0xc3d   : > { %v1436_v11 = vpop.xlane.xlu0 %1435 }
 0xc3e   : > { %2595 = vrcp.f32 %v1436_v11 }
 0xc41   : > { %v1439_v12 = vpop.xlane.xlu0 %1438 }
 0xc42   : > { %2597 = vrcp.f32 %v1439_v12 }
 0xc45   : > { %v1446_v13 = vpop.permute.xlu0 %1445 }
 0xc46   : > { %2398 = vmatpush3.bf16.msra.mxu0 %v1446_v13 }
 0xc47   : > { %2403 = vmatprep.subr.bf16.mxu0 %v2673_v1 }
 0xc49   : > { %v999_v14 = vpop.permute.xlu0 %998 }
 0xc4a   : > { %1005 = vst.msk [vmem:[#allocation2] sm:$0xf] %vm1004_vm5, %v999_v14 }
 0xc4b   : > { %v2596_v58 = vpop.eup %2595 }
 0xc4c   : > { %v1442_v17 = vmul.f32 %v2596_v58, %v2592_v4  ;;  %v2556_v4 = vld [vmem:[%s3239_s7 + $0x8] sm:$0xff]   ;;  %v2159_v58 = vld [vmem:[%s3237_s5] ss:$0 sm:$0xff] }
 0xc4d   : > { %v1249_v15 = vpop.permute.xlu0 %1248  ;;  %2436 = vmatpush3.bf16.msra.mxu1 %v2556_v4  ;;  %v2180_v4 = vld [vmem:[%s3244_s12] ss:$0 sm:$0xff] }
 0xc4e   : > { %1255 = vst.msk [vmem:[#allocation2] sm:$0xf] %vm1254_vm6, %v1249_v15  ;;  %2437 = vmatprep.subr.bf16.mxu1 %v2673_v1 }
 0xc4f   : > { %v2598_v16 = vpop.eup %2597 }
 0xc50   : > { %v1443_v18 = vmul.f32 %v2598_v16, %v2594_v6  ;;  %v2558_v6 = vld [vmem:[%s3241_s9 + $0x38] sm:$0xff]  }
 0xc51   : > { %v1251_v19 = vpop.permute.xlu0 %1250  ;;  %2438 = vmatpush3.bf16.msra.mxu1 %v2557_v5 }
 0xc52   : > { %1256 = vst.msk [vmem:[#allocation2 + $0x4] sm:$0xf] %vm1254_vm6, %v1251_v19  ;;  %v1444_v20 = vpack.c.bf16 %v1443_v18, %v1442_v17  ;;  %v2160_v18 = vld [vmem:[%s3238_s6] ss:$0 sm:$0xff] }
 0xc54   : > { %2400 = vmatmul.mubr.msk.bf16.vlgmr.msra.gmra.mxu0 %vm675_vm3, %v1444_v20 }
 0xc55   : > { %2419 = vmatprep.mubr.msk.bf16.mxu0 %vm2674_vm0, %v2673_v1  ;;  %2404 = vmatpush3.bf16.msra.mxu0 %v2541_v22 }
 0xc56   : > { %2405 = vmatprep.subr.bf16.mxu0 %v2673_v1 }
 0xc59   : > { %2406 = vmatpush3.bf16.msra.mxu0 %v2542_v24 }
 0xc5a   : > { %2407 = vmatprep.subr.bf16.mxu0 %v2673_v1 }
 0xc5d   : > { %2408 = vmatpush3.bf16.msra.mxu0 %v2543_v25  ;;  %v2559_v25 = vld [vmem:[%s3241_s9 + $0x30] sm:$0xff]  }
 0xc5e   : > { %2409 = vmatprep.subr.bf16.mxu0 %v2673_v1 }
 0xc61   : > { %2410 = vmatpush3.bf16.msra.mxu0 %v2544_v26  ;;  %v2560_v26 = vld [vmem:[%s3241_s9 + $0x28] sm:$0xff]  }
 0xc62   : > { %2411 = vmatprep.subr.bf16.mxu0 %v2673_v1 }
 0xc65   : > { %2412 = vmatpush3.bf16.msra.mxu0 %v2545_v27  ;;  %v2561_v27 = vld [vmem:[%s3241_s9 + $0x20] sm:$0xff]  }
 0xc66   : > { %2413 = vmatprep.subr.bf16.mxu0 %v2673_v1 }
 0xc69   : > { %2414 = vmatpush3.bf16.msra.mxu0 %v2546_v28  ;;  %v2562_v28 = vld [vmem:[%s3241_s9 + $0x18] sm:$0xff]  }
 0xc6a   : > { %2415 = vmatprep.subr.bf16.mxu0 %v2673_v1 }
 0xc6d   : > { %2416 = vmatpush3.bf16.msra.mxu0 %v2547_v29  ;;  %v2563_v29 = vld [vmem:[%s3241_s9 + $0x10] sm:$0xff]  }
 0xc6e   : > { %2417 = vmatprep.subr.bf16.mxu0 %v2673_v1 }
 0xc71   : > { %2418 = vmatpush3.bf16.msra.mxu0 %v2548_v30  ;;  %v2564_v30 = vld [vmem:[%s3241_s9 + $0x8] sm:$0xff]  }
 0xc72   : > { %2443 = vmatprep.subr.bf16.mxu0 %v2673_v1 }
 0xd14   : > { %v1485_v31 = vpop.f32.mrf.mxu0 }
 0xd15   : > { %v2194_v32 = vpack.c.bf16 %v1485_v31, %v1485_v31  ;;  %v2565_v31 = vld [vmem:[%s3241_s9] sm:$0xff]  }
 0xd16   : > { %v2401_v33 = vpop.f32.mrf.mxu0 }
 0xd17   : > { %1498 = vrot.lane.b32.xlu0 %v2194_v32, %s2675_s29  ;;  %v2161_v32 = vld [vmem:[%s3240_s8] ss:$0 sm:$0xff] }
 0xd18   : > { %v1488_v34 = vpop.f32.mrf.mxu0 }
 0xd19   : > { %v2195_v35 = vpack.c.bf16 %v1488_v34, %v1488_v34 }
 0xd1a   : > { %v2402_v36 = vpop.f32.mrf.mxu0 }
 0xd1b   : > { %1500 = vrot.lane.b32.xlu0 %v2195_v35, %s2675_s29  ;;  %s2184_s29 = sshll.u32 %s2781_s22, 7  ;;  %s2617_s22 = scalar_lea.vmem %s2616_s20, 256 }
 0xd1c   : > { %s1976_s1 = scalar_lea.hbm %s3247_s15, %s2184_s29  ;;  %p2619_p1 = scmp.lt.s32.totalorder %s2617_s22, %s2611_s3 }
 0xd1e   : > { %p2620_p2 = por %p2619_p1, %p2618_p0 }
 0xd20   : > { %p2621_p3 = pnand %p2620_p2, %p2614_p13 }
 0xd89   : > { %v1499_v37 = vpop.permute.xlu0 %1498 }
 0xd8a   : > { %1505 = vst.msk [vmem:[#allocation2] sm:$0xf] %vm1504_vm7, %v1499_v37 }
 0xd8d   : > { %v1501_v38 = vpop.permute.xlu0 %1500 }
 0xd8e   : > { %1506 = vst.msk [vmem:[#allocation2 + $0x4] sm:$0xf] %vm1504_vm7, %v1501_v38 }
 0xd95   : > { %v2549_v39 = vld [vmem:[#allocation2] sm:$0xff]  }
 0xd96   : > { %2420 = vmatmul.mubr.bf16.vlgmr.msra.gmra.mxu0 %v2549_v39 }
 0xd97   : > { %2459 = vmatprep.mubr.msk.bf16.mxu0 %vm2674_vm0, %v2673_v1  ;;  %2444 = vmatpush3.bf16.msra.mxu0 %v2558_v6 }
 0xd98   : > { %2445 = vmatprep.subr.bf16.mxu0 %v2673_v1 }
 0xd9b   : > { %2446 = vmatpush3.bf16.msra.mxu0 %v2559_v25 }
 0xd9c   : > { %2447 = vmatprep.subr.bf16.mxu0 %v2673_v1 }
 0xd9f   : > { %2448 = vmatpush3.bf16.msra.mxu0 %v2560_v26 }
 0xda0   : > { %2449 = vmatprep.subr.bf16.mxu0 %v2673_v1 }
 0xda3   : > { %2450 = vmatpush3.bf16.msra.mxu0 %v2561_v27 }
 0xda4   : > { %2451 = vmatprep.subr.bf16.mxu0 %v2673_v1 }
 0xda7   : > { %2452 = vmatpush3.bf16.msra.mxu0 %v2562_v28 }
 0xda8   : > { %2453 = vmatprep.subr.bf16.mxu0 %v2673_v1 }
 0xdab   : > { %2454 = vmatpush3.bf16.msra.mxu0 %v2563_v29 }
 0xdac   : > { %2455 = vmatprep.subr.bf16.mxu0 %v2673_v1 }
 0xdaf   : > { %2456 = vmatpush3.bf16.msra.mxu0 %v2564_v30 }
 0xdb0   : > { %2457 = vmatprep.subr.bf16.mxu0 %v2673_v1 }
 0xdb3   : > { %2458 = vmatpush3.bf16.msra.mxu0 %v2565_v31 }
 0xe56   : > { %v1620_v42 = vpop.f32.mrf.mxu0 }
 0xe57   : > { %v1621_v43 = vadd.f32 %v2149_v40, %v1620_v42 }
 0xe58   : > { %v2421_v44 = vpop.f32.mrf.mxu0 }
 0xe59   : > { %v1627_v45 = vadd.f32 %v1621_v43, %v503_v41 }
 0xe5a   : > { %v1623_v47 = vpop.f32.mrf.mxu0 }
 0xe5b   : > { %v1624_v48 = vadd.f32 %v2149_v40, %v1623_v47  ;;  %1631 = vadd.xlane.f32.xlu1 %v1627_v45 }
 0xe5c   : > { %v2422_v49 = vpop.f32.mrf.mxu0 }
 0xe5d   : > { %v1628_v50 = vadd.f32 %v1624_v48, %v504_v46  ;;  %v2170_v49 = vld [vmem:[%s3242_s10] ss:$0 sm:$0xff] }
 0xe5f   : > { %1633 = vadd.xlane.f32.xlu0 %v1628_v50 }
 0xee4   : > { %v1632_v52 = vpop.xlane.xlu1 %1631 }
 0xee5   : > { %v1635_v53 = vmul.f32 0.03125, %v1632_v52 }
 0xee7   : > { %v1637_v9 = vsub.f32 %v1627_v45, %v1635_v53 }
 0xee8   : > { %v1634_v55 = vpop.xlane.xlu0 %1633 }
 0xee9   : > { %v1636_v56 = vmul.f32 0.03125, %v1634_v55  ;;  %v1639_v57 = vmul.f32 %v3110_v54, %v1637_v9 }
 0xeeb   : > { %v1638_v59 = vsub.f32 %v1628_v50, %v1636_v56  ;;  %v1641_v61 = vmul.f32 %v1639_v57, %v1639_v57 }
 0xeed   : > { %1643 = vadd.xlane.f32.xlu0 %v1641_v61  ;;  %v1640_v62 = vmul.f32 %v3110_v54, %v1638_v59 }
 0xeef   : > { %v1642_v63 = vmul.f32 %v1640_v62, %v1640_v62 }
 0xef1   : > { %1645 = vadd.xlane.f32.xlu1 %v1642_v63 }
 0xf76   : > { %v1644_v60 = vpop.xlane.xlu0 %1643 }
 0xf77   : > { %v1647_v7 = vmul.f32 0.03125, %v1644_v60 }
 0xf79   : > { %v1649_v8 = vadd.f32 1e-05, %v1647_v7 }
 0xf7a   : > { %v1646_v10 = vpop.xlane.xlu1 %1645 }
 0xf7b   : > { %2599 = vrsqrt.f32 %v1649_v8  ;;  %v1648_v11 = vmul.f32 0.03125, %v1646_v10 }
 0xf7d   : > { %v1650_v12 = vadd.f32 1e-05, %v1648_v11 }
 0xf7f   : > { %2601 = vrsqrt.f32 %v1650_v12 }
 0xf88   : > { %v2600_v13 = vpop.eup %2599 }
 0xf89   : > { %v1653_v14 = vmul.f32 %v2600_v13, %v1639_v57 }
 0xf8b   : > { %v1661_v17 = vmul.f32 %v2159_v58, %v1653_v14 }
 0xf8c   : > { %v2602_v15 = vpop.eup %2601 }
 0xf8d   : > { %v1654_v16 = vmul.f32 %v2602_v15, %v1640_v62  ;;  %v1669_v20 = vadd.f32 %v2160_v18, %v1661_v17  ;;  %v2181_v15 = vld [vmem:[%s3245_s13] ss:$0 sm:$0xff] }
 0xf8e   : > { %v2182_v17 = vld [vmem:[%s3246_s14] ss:$0 sm:$0xff] }
 0xf8f   : > { %v1662_v19 = vmul.f32 %v2159_v58, %v1654_v16 }
 0xf91   : > { %v1670_v22 = vadd.f32 %v2160_v18, %v1662_v19 }
 0xf93   : > { %v1671_v24 = vpack.c.bf16 %v1670_v22, %v1669_v20 }
 0xf95   : > { %2440 = vmatmul.mubr.bf16.vlgmr.msra.gmra.mxu1 %v1671_v24 }
0x1055   : > { %v1777_v33 = vpop.f32.mrf.mxu1 }
0x1056   : > { %v1778_v34 = vadd.f32 %v2161_v32, %v1777_v33 }
0x1057   : > { %v2441_v35 = vpop.f32.mrf.mxu1 }
0x1058   : > { %v1786_v36 = vmul.f32 0.70710677, %v1778_v34  ;;  %v1784_v43 = vmul.f32 0.5, %v1778_v34 }
0x1059   : > { %v1780_v37 = vpop.f32.mrf.mxu1 }
0x105a   : > { %2603 = verf.f32 %v1786_v36  ;;  %v1781_v38 = vadd.f32 %v2161_v32, %v1780_v37 }
0x105b   : > { %v2442_v39 = vpop.f32.mrf.mxu1 }
0x105c   : > { %v1787_v40 = vmul.f32 0.70710677, %v1781_v38  ;;  %v1785_v44 = vmul.f32 0.5, %v1781_v38 }
0x105e   : > { %2605 = verf.f32 %v1787_v40 }
0x1067   : > { %v2604_v1 = vpop.eup %2603 }
0x1068   : > { %v1790_v41 = vadd.f32 1.0, %v2604_v1 }
0x106a   : > { %v1792_v46 = vmul.f32 %v1790_v41, %v1784_v43 }
0x106b   : > { %v2606_v42 = vpop.eup %2605 }
0x106c   : > { %v1791_v45 = vadd.f32 1.0, %v2606_v42 }
0x106e   : > { %v1793_v47 = vmul.f32 %v1791_v45, %v1785_v44 }
0x1070   : > { %v1794_v48 = vpack.c.bf16 %v1793_v47, %v1792_v46 }
0x1072   : > { %2460 = vmatmul.mubr.bf16.vlgmr.msra.gmra.mxu0 %v1794_v48 }
0x1132   : > { %v1900_v50 = vpop.f32.mrf.mxu0 }
0x1133   : > { %v1901_v51 = vadd.f32 %v2170_v49, %v1900_v50 }
0x1134   : > { %v2461_v52 = vpop.f32.mrf.mxu0 }
0x1135   : > { %v1906_v53 = vadd.f32 %v1901_v51, %v1669_v20 }
0x1136   : > { %v1903_v9 = vpop.f32.mrf.mxu0 }
0x1137   : > { %1909 = vadd.xlane.f32.xlu0 %v1906_v53 }
0x1138   : > { %v2462_v55 = vpop.f32.mrf.mxu0 }
0x11c0   : > { %v1910_v56 = vpop.xlane.xlu0 %1909 }
0x11c1   : > { %v1911_v57 = vmul.f32 0.03125, %v1910_v56 }
0x11c3   : > { %v1912_v59 = vsub.f32 %v1906_v53, %v1911_v57 }
0x11c5   : > { %v1913_v61 = vmul.f32 %v3110_v54, %v1912_v59 }
0x11c7   : > { %v1914_v62 = vmul.f32 %v1913_v61, %v1913_v61 }
0x11c9   : > { %1915 = vadd.xlane.f32.xlu1 %v1914_v62 }
0x1252   : > { %v1916_v63 = vpop.xlane.xlu1 %1915 }
0x1253   : > { %v1917_v21 = vmul.f32 0.03125, %v1916_v63 }
0x1255   : > { %v1918_v0 = vadd.f32 1e-05, %v1917_v21 }
0x1257   : > { %2607 = vrsqrt.f32 %v1918_v0 }
0x1264   : > { %v2608_v2 = vpop.eup %2607 }
0x1265   : > { %v1920_v23 = vmul.f32 %v2608_v2, %v1913_v61 }
0x1267   : > { %v1927_v5 = vmul.f32 %v2179_v3, %v1920_v23 }
0x1269   : > { %v1934_v6 = vadd.f32 %v2180_v4, %v1927_v5 }
0x126b   : > { %1937 = vadd.xlane.f32.xlu0 %v1934_v6 }
0x12f4   : > { %v1938_v60 = vpop.xlane.xlu0 %1937 }
0x12f5   : > { %v1939_v7 = vmul.f32 0.03125, %v1938_v60 }
0x12f7   : > { %v1940_v8 = vsub.f32 %v1934_v6, %v1939_v7 }
0x12f9   : > { %v1941_v10 = vmul.f32 %v3110_v54, %v1940_v8 }
0x12fb   : > { %v1942_v11 = vmul.f32 %v1941_v10, %v1941_v10 }
0x12fd   : > { %1943 = vadd.xlane.f32.xlu1 %v1942_v11 }
0x1386   : > { %v1944_v12 = vpop.xlane.xlu1 %1943 }
0x1387   : > { %v1945_v13 = vmul.f32 0.03125, %v1944_v12 }
0x1389   : > { %v1946_v14 = vadd.f32 1e-05, %v1945_v13 }
0x138b   : > { %2609 = vrsqrt.f32 %v1946_v14 }
0x1398   : > { %v2610_v58 = vpop.eup %2609 }
0x1399   : > { %v1948_v16 = vmul.f32 %v2610_v58, %v1941_v10 }
0x139b   : > { %v1955_v54 = vmul.f32 %v2181_v15, %v1948_v16 }
0x139d   : > { %v1962_v18 = vadd.f32 %v2182_v17, %v1955_v54 }
0x139f   : > { %1963 = vst [vmem:[%s487_s26] sm:$0xff] %v1962_v18 }
0x13a0   : > { %2624 = shalt.err (!%p2621_p3)
}
0x13a1   : > { %s2625_s25 = scalar_lea.hbm %s1976_s1, 128  ;;  %s2629_s27 = scalar_lea.hbm %s3247_s15, 256 }
0x13a2   : > { %p2626_p4 = scmp.ne.s32.totalorder %s1976_s1, %s2625_s25  ;;  %p2630_p9 = scmp.lt.s32.totalorder %s1976_s1, %s3247_s15 }
0x13a3   : > { %p2631_p10 = scmp.lt.s32.totalorder %s2629_s27, %s2625_s25 }
0x13a4   : > { %p2627_p7 = pnand %p2626_p4, %p2798_p5 }
0x13a5   : > { %p2632_p11 = por %p2631_p10, %p2630_p9 }
0x13a6   : > { %p2628_p8 = pneg %p2627_p7 }
0x13a8   : > { %p2633_p12 = pnand %p2632_p11, %p2628_p8 }
0x13aa   : > { %2636 = shalt.err (!%p2633_p12)
}
0x13ab   : > { %2463 = dma.vmem_to_hbm [thread:$0]  (%p2798_p5), %s1979_s23, 128, %s1976_s1, %s1965_s2  }
0x13ac PF: > { %p2469_p13 = scmp.ge.s32.totalorder %s2671_s21, 2  ;;  %s1990_s26 = sand.u32 1, %s2659_s18  }
0x13ad   : > { %s1991_s30 = scalar_lea.sflag [#allocation4], %s1990_s26 }
0x13ae   : > { %p2466_p0 = pnand %p2469_p13, %p2802_p6 }
0x13b0   : > { %p2467_p1 = pneg %p2466_p0 }
0x13b2   : > { %2654 = dma.done.wait (%p2467_p1), %s1991_s30, 128  }
0x13b3   : > { %2656 = vsyncadd (%p2467_p1), %s1991_s30, 4294967168  ;;  %s3267_s21 = sld [smem:[#allocation7_spill]]  ;;  %s3270_s18 = smov %s2663_s19 }
0x13b4   : > { %s3268_s17 = sld [smem:[#allocation6_spill]] }
0x13b5   : > { %s3269_s20 = sld [smem:[#allocation8_spill]] }
0x13b9   : > { %p25_p2 = scmp.ge.s32.totalorder %s3267_s21, 4  }
0x13ba   : > { %s3271_s19 = smov %s3268_s17 }
0x13bb   :  { %27 = sbr.rel (!%p25_p2) target bundleno = 8 (0x8), region = 121 }
0x13c0   :  { %1996 = vsyncpa [#allocation4], 1 }
0x13c1   :  { %1998 = vsyncpa [#allocation4 + $0x1], 1 }

// kernel: tpu_custom_call.1
= control target key start
LH: loop header
LB: loop body
LE: loop exit
PB: predicated region body
PF: predicated region fallthrough
CT: control target
= control target key end

     0   :  { %s3232_s0 = inlined_call_operand.vmem [shape: bf16[2,16,128], index: 0, kind: input, shape index: {}]   ;;  %s3233_s1 = inlined_call_operand.vmem [shape: bf16[4,128,96], index: 1, kind: input, shape index: {}]   ;;  %s3234_s2 = inlined_call_operand.vmem [shape: f32[4,1,96], index: 2, kind: input, shape index: {}]   ;;  %s3235_s3 = inlined_call_operand.vmem [shape: bf16[128,128], index: 3, kind: input, shape index: {}]   ;;  %s3236_s4 = inlined_call_operand.vmem [shape: f32[1,128], index: 4, kind: input, shape index: {}]   ;;  %s3237_s5 = inlined_call_operand.vmem [shape: f32[1,128], index: 5, kind: input, shape index: {}]   ;;  %s3238_s6 = inlined_call_operand.vmem [shape: f32[1,128], index: 6, kind: input, shape index: {}]   ;;  %s3239_s7 = inlined_call_operand.vmem [shape: bf16[128,128], index: 7, kind: input, shape index: {}]   ;;  %s3240_s8 = inlined_call_operand.vmem [shape: f32[1,128], index: 8, kind: input, shape index: {}]   ;;  %s3241_s9 = inlined_call_operand.vmem [shape: bf16[128,128], index: 9, kind: input, shape index: {}]   ;;  %s3242_s10 = inlined_call_operand.vmem [shape: f32[1,128], index: 10, kind: input, shape index: {}]   ;;  %s3243_s11 = inlined_call_operand.vmem [shape: f32[1,128], index: 11, kind: input, shape index: {}]   ;;  %s3244_s12 = inlined_call_operand.vmem [shape: f32[1,128], index: 12, kind: input, shape index: {}]   ;;  %s3245_s13 = inlined_call_operand.vmem [shape: f32[1,128], index: 13, kind: input, shape index: {}]   ;;  %s3246_s14 = inlined_call_operand.vmem [shape: f32[1,128], index: 14, kind: input, shape index: {}]   ;;  %s3247_s15 = inlined_call_operand.hbm [shape: f32[2,8,128], index: 15, kind: output, shape index: {}]  }
   0x1   :  { %3252 = sst [smem:[#allocation10_spill]] %s3232_s0 }
   0x2   :  { %3253 = sst [smem:[#allocation11_spill]] %s3233_s1 }
   0x3   :  { %3254 = sst [smem:[#allocation12_spill]] %s3234_s2 }
   0x4   :  { %3255 = sst [smem:[#allocation13_spill]] %s3235_s3 }
   0x5   :  { %20 = vsyncpa [#allocation4], 0 }
   0x6   :  { %22 = vsyncpa [#allocation4 + $0x1], 0  ;;  %s2760_s18 = smov 0   ;;  %s2762_s19 = smov 0  }
   0x7   :  { %s2764_s20 = smov 0   ;;  %s2766_s21 = smov 0  }
   0x8 LB: > { %3256 = sst [smem:[#allocation6_spill]] %s2667_s20  ;;  %s2781_s22 = sadd.s32 4294967295, %s2671_s21   ;;  %s2671_s21 = sphi %s2766_s21, %s3267_s21   ;;  %s2667_s20 = sphi %s2764_s20, %s3269_s20   ;;  %s2663_s19 = sphi %s2762_s19, %s3271_s19   ;;  %s2659_s18 = sphi %s2760_s18, %s3270_s18  }
   0x9   : > { %s2037_s23 = sadd.s32 4294967294, %s2671_s21   ;;  %s2785_s24 = sadd.s32 1, %s2671_s21  }
   0xa   : > { %3257 = sst [smem:[#allocation7_spill]] %s2785_s24  ;;  %s355_s25 = sadd.s32 1, %s2667_s20 }
   0xb   : > { %s352_s26 = ssub.s32 %s2671_s21, %s2785_s24  ;;  %p365_p0 = scmp.ne.s32.totalorder %s2667_s20, %s2663_s19 }
   0xc   : > { %p353_p1 = scmp.eq.s32.totalorder %s352_s26, 0  ;;  %p366_p2 = scmp.eq.s32.totalorder %s2781_s22, 1 }
   0xd   : > { %p371_p3 = scmp.ne.s32.totalorder %s2663_s19, %s2659_s18  ;;  %p372_p4 = scmp.eq.s32.totalorder %s2037_s23, 1 }
   0xe   : > { %s2796_s27 = scalar_select %p353_p1, %s2667_s20, %s355_s25  }
   0xf   : > { %p2798_p5 = por %p366_p2, %p365_p0  ;;  %p2802_p6 = por %p372_p4, %p371_p3 }
  0x10   : > { %3258 = sst [smem:[#allocation8_spill]] %s2796_s27  ;;  %p2040_p7 = scmp.ge.s32.totalorder %s2671_s21, 1 }
  0x11   : > { %s3260_s29 = scalar_select %p2802_p6, 1, 0 }
  0x12   : > { %p440_p8 = scmp.lt.s32.totalorder %s2671_s21, 3 }
  0x13   : > { %3261 = sst [smem:[#allocation9_spill]] %s3260_s29 }
  0x14   : > { %p441_p9 = pnand %p2040_p7, %p440_p8 }
  0x15   : > { %s3262_s1 = sld [smem:[#allocation11_spill]] (!%p441_p9)  ;;  %p488_p10 = scmp.lt.s32.totalorder (!%p441_p9), %s2781_s22, 1 }
  0x16   : > { %444 = sbr.rel (%p441_p9) target bundleno = 5036 (0x13ac), region = 80  ;;  %s3263_s0 = sld [smem:[#allocation10_spill]] (!%p441_p9) }
  0x17   : > { %s3264_s2 = sld [smem:[#allocation12_spill]] (!%p441_p9)  ;;  %s2677_s26 = smov (!%p441_p9), 64  }
  0x18   : > { %s2678_s24 = smov (!%p441_p9), 32   ;;  %s3265_s3 = sld [smem:[#allocation13_spill]] (!%p441_p9) }
  0x19   : > { %s485_s16 = sand.u32 (!%p441_p9), 1, %s2663_s19   ;;  %s2679_s17 = smov (!%p441_p9), [#allocation3]  }
  0x1a   : > { %s2615_s20 = sshll.u32 (!%p441_p9), %s2679_s17, 4  ;;  %s2616_s20 = int_to_ptr.vmem [resolvable:$false] %s2615_s20 }
  0x1b   : > { %v2508_v0 = vld [vmem:[%s3262_s1 + $0x38] sm:$0xff]   ;;  %v2673_v1 = vmov 0.0   ;;  %v2509_v2 = vld [vmem:[%s3262_s1 + $0x30] sm:$0xff]   ;;  %vm2674_vm0 = vmmov 0   ;;  %s489_s25 = scalar_select %p488_p10, %s2781_s22, 1  ;;  %v2510_v3 = vld [vmem:[%s3262_s1 + $0x28] sm:$0xff]   ;;  %v494_v20 = vlaneseq }
  0x1c   : > { %2275 = vmatprep.subr.bf16.mxu0 %v2673_v1  ;;  %2295 = vmatprep.subr.bf16.mxu1 %v2673_v1  ;;  %v2511_v4 = vld [vmem:[%s3262_s1 + $0x20] sm:$0xff]   ;;  %v2512_v5 = vld [vmem:[%s3262_s1 + $0x18] sm:$0xff]   ;;  %v2513_v6 = vld [vmem:[%s3262_s1 + $0x10] sm:$0xff]   ;;  %vm627_vm1 = vcmask 261120   ;;  %v2676_v22 = vmov -1e+30  }
  0x1d   : > { %2276 = vmatpush3.bf16.msra.mxu0 %v2508_v0  ;;  %2291 = vmatprep.mubr.msk.bf16.mxu0 %vm2674_vm0, %v2673_v1  ;;  %s2187_s23 = sshll.u32 %s489_s25, 3  ;;  %v2514_v7 = vld [vmem:[%s3262_s1 + $0x8] sm:$0xff]   ;;  %v2515_v8 = vld [vmem:[%s3262_s1] sm:$0xff]   ;;  %v2865_v21 = vand.u32 127, %v494_v20  ;;  %vm675_vm3 = vcmask 130048   ;;  %v2517_v49 = vld [vmem:[%s3262_s1 + $0x78] sm:$0xff]  }
  0x1e   : > { %2277 = vmatprep.subr.bf16.mxu0 %v2673_v1  ;;  %2297 = vmatprep.mubr.msk.bf16.mxu1 %vm2674_vm0, %v2673_v1  ;;  %s492_s29 = scalar_lea.vmem %s3263_s0, %s2187_s23  ;;  %v2045_v11 = vld [vmem:[%s3264_s2] ss:$0 sm:$0xff]  ;;  %v2518_v51 = vld [vmem:[%s3262_s1 + $0x70] sm:$0xff]   ;;  %v2519_v52 = vld [vmem:[%s3262_s1 + $0x68] sm:$0xff]   ;;  %vm754_vm4 = vcmask 257024   ;;  %vm1004_vm5 = vcmask 519424  }
  0x1f   : > { %v2849_v9 = vld [vmem:[%s492_s29] sm:$0xff]   ;;  %s2675_s29 = smov 96   ;;  %vm499_vm2 = vcmp.lt.s32.totalorder %v2865_v21, 8  ;;  %v2521_v54 = vld [vmem:[%s3262_s1 + $0x58] sm:$0xff]   ;;  %v2522_v55 = vld [vmem:[%s3262_s1 + $0x50] sm:$0xff]   ;;  %vm1254_vm6 = vcmask 781824  }
  0x20   : > { %v2868_v23 = vsel %vm499_vm2, 0.0, %v2676_v22  ;;  %v2520_v53 = vld [vmem:[%s3262_s1 + $0x60] sm:$0xff]   ;;  %v2523_v56 = vld [vmem:[%s3262_s1 + $0x48] sm:$0xff]   ;;  %vm1504_vm7 = vcmask 1044224   ;;  %vm496_vm8 = vcmp.lt.s32.totalorder %v2865_v21, 32  ;;  %v2551_v21 = vld [vmem:[%s3239_s7 + $0x30] sm:$0xff]  }
  0x21   : > { %2278 = vmatpush3.bf16.msra.mxu0 %v2509_v2  ;;  %v2524_v57 = vld [vmem:[%s3262_s1 + $0x40] sm:$0xff]   ;;  %s2041_s25 = sshll.u32 %s485_s16, 3 }
  0x22   : > { %2279 = vmatprep.subr.bf16.mxu0 %v2673_v1  ;;  %v2076_v2 = vld [vmem:[%s3264_s2 + $0x1] ss:$0 sm:$0xff] }
  0x25   : > { %2280 = vmatpush3.bf16.msra.mxu0 %v2510_v3 }
  0x26   : > { %2281 = vmatprep.subr.bf16.mxu0 %v2673_v1 }
  0x29   : > { %2282 = vmatpush3.bf16.msra.mxu0 %v2511_v4 }
  0x2a   : > { %2283 = vmatprep.subr.bf16.mxu0 %v2673_v1 }
  0x2d   : > { %2284 = vmatpush3.bf16.msra.mxu0 %v2512_v5  ;;  %v2525_v5 = vld [vmem:[%s3262_s1 + $0xb8] sm:$0xff]  }
  0x2e   : > { %2285 = vmatprep.subr.bf16.mxu0 %v2673_v1 }
  0x31   : > { %2286 = vmatpush3.bf16.msra.mxu0 %v2513_v6 }
  0x32   : > { %2287 = vmatprep.subr.bf16.mxu0 %v2673_v1 }
  0x35   : > { %2288 = vmatpush3.bf16.msra.mxu0 %v2514_v7 }
  0x36   : > { %2289 = vmatprep.subr.bf16.mxu0 %v2673_v1 }
  0x39   : > { %2290 = vmatpush3.bf16.msra.mxu0 %v2515_v8 }
  0x3a   : > { %2339 = vmatprep.subr.bf16.mxu0 %v2673_v1 }
  0x3c   : > { %2292 = vmatmul.mubr.bf16.vlgmr.msra.gmra.mxu0 %v2849_v9 }
  0x3d   : > { %2355 = vmatprep.mubr.msk.bf16.mxu0 %vm2674_vm0, %v2673_v1  ;;  %2340 = vmatpush3.bf16.msra.mxu0 %v2525_v5 }
  0x3e   : > { %2341 = vmatprep.subr.bf16.mxu0 %v2673_v1 }
  0xfc   : > { %v616_v10 = vpop.f32.mrf.mxu0 }
  0xfd   : > { %v617_v14 = vadd.f32 %v2045_v11, %v616_v10  ;;  %v2526_v10 = vld [vmem:[%s3262_s1 + $0xb0] sm:$0xff]  }
  0xfe   : > { %v2293_v12 = vpop.f32.mrf.mxu0  ;;  %2342 = vmatpush3.bf16.msra.mxu0 %v2526_v10 }
  0xff   : > { %v2527_v12 = vld [vmem:[%s3262_s1 + $0xa8] sm:$0xff]   ;;  %2343 = vmatprep.subr.bf16.mxu0 %v2673_v1 }
 0x100   : > { %v619_v13 = vpop.f32.mrf.mxu0 }
 0x101   : > { %v620_v15 = vadd.f32 %v2045_v11, %v619_v13  ;;  %v2528_v13 = vld [vmem:[%s3262_s1 + $0xa0] sm:$0xff]  }
 0x102   : > { %v2294_v16 = vpop.f32.mrf.mxu0  ;;  %2344 = vmatpush3.bf16.msra.mxu0 %v2527_v12 }
 0x103   : > { %v623_v17 = vpack.c.bf16 %v620_v15, %v617_v14  ;;  %2345 = vmatprep.subr.bf16.mxu0 %v2673_v1  ;;  %v2529_v14 = vld [vmem:[%s3262_s1 + $0x98] sm:$0xff]   ;;  %v2530_v15 = vld [vmem:[%s3262_s1 + $0x90] sm:$0xff]   ;;  %v2531_v16 = vld [vmem:[%s3262_s1 + $0x88] sm:$0xff]  }
 0x105   : > { %625 = vrot.lane.b32.xlu0 %v623_v17, %s2675_s29 }
 0x106   : > { %2346 = vmatpush3.bf16.msra.mxu0 %v2528_v13 }
 0x107   : > { %2347 = vmatprep.subr.bf16.mxu0 %v2673_v1 }
 0x10a   : > { %2348 = vmatpush3.bf16.msra.mxu0 %v2529_v14 }
 0x10b   : > { %2349 = vmatprep.subr.bf16.mxu0 %v2673_v1 }
 0x10e   : > { %2350 = vmatpush3.bf16.msra.mxu0 %v2530_v15 }
 0x10f   : > { %2351 = vmatprep.subr.bf16.mxu0 %v2673_v1 }
 0x112   : > { %2352 = vmatpush3.bf16.msra.mxu0 %v2531_v16 }
 0x113   : > { %2353 = vmatprep.subr.bf16.mxu0 %v2673_v1 }
 0x177   : > { %v626_v18 = vpop.permute.xlu0 %625 }
 0x178   : > { %v632_v19 = vsel %vm627_vm1, %v626_v18, 0 }
 0x179   : > { %2296 = vmatpush3.bf16.xpose.msra.mxu1 %v632_v19 }
 0x17a   : > { %2301 = vmatprep.subr.bf16.mxu1 %v2673_v1 }
 0x180   : > { %2298 = vmatmul.mubr.msk.bf16.vlgmr.msra.gmra.mxu1 %vm627_vm1, %v623_v17 }
 0x181   : > { %2303 = vmatprep.mubr.msk.bf16.mxu1 %vm2674_vm0, %v2673_v1 }
 0x240   : > { %v668_v24 = vpop.f32.mrf.mxu1 }
 0x241   : > { %v669_v25 = vadd.f32 %v668_v24, %v2868_v23 }
 0x242   : > { %v2299_v26 = vpop.f32.mrf.mxu1 }
 0x243   : > { %v676_v27 = vsel %vm675_vm3, %v669_v25, -inf }
 0x244   : > { %677 = vmax.xlane.f32.xlu0 %v676_v27  ;;  %v671_v28 = vpop.f32.mrf.mxu1 }
 0x245   : > { %v672_v29 = vadd.f32 %v671_v28, %v2868_v23 }
 0x246   : > { %v2300_v30 = vpop.f32.mrf.mxu1 }
 0x247   : > { %v679_v31 = vsel %vm675_vm3, %v672_v29, -inf  ;;  %v2106_v30 = vld [vmem:[%s3264_s2 + $0x2] ss:$0 sm:$0xff] }
 0x248   : > { %680 = vmax.xlane.f32.xlu1 %v679_v31 }
 0x2cd   : > { %v678_v32 = vpop.xlane.xlu0 %677 }
 0x2ce   : > { %v682_v33 = vsub.f32 %v669_v25, %v678_v32 }
 0x2d0   : > { %v684_v34 = vmul.f32 1.442695, %v682_v33 }
 0x2d1   : > { %v681_v35 = vpop.xlane.xlu1 %680 }
 0x2d2   : > { %2567 = vpow2.f32 %v684_v34  ;;  %v683_v36 = vsub.f32 %v672_v29, %v681_v35 }
 0x2d4   : > { %v686_v37 = vmul.f32 1.442695, %v683_v36 }
 0x2d6   : > { %2569 = vpow2.f32 %v686_v37 }
 0x2df   : > { %v2568_v38 = vpop.eup %2567 }
 0x2e0   : > { %v688_v39 = vsel %vm675_vm3, %v2568_v38, 0.0 }
 0x2e1   : > { %689 = vadd.xlane.f32.xlu1 %v688_v39 }
 0x2e3   : > { %v2570_v40 = vpop.eup %2569 }
 0x2e4   : > { %v691_v41 = vsel %vm675_vm3, %v2570_v40, 0.0 }
 0x2e5   : > { %692 = vadd.xlane.f32.xlu1 %v691_v41 }
 0x2f6   : > { %699 = vrot.lane.b32.xlu1 %v623_v17, %s2677_s26  ;;  %v2532_v17 = vld [vmem:[%s3262_s1 + $0x80] sm:$0xff]  }
 0x2f7   : > { %2354 = vmatpush3.bf16.msra.mxu0 %v2532_v17 }
 0x2f8   : > { %2391 = vmatprep.subr.bf16.mxu0 %v2673_v1 }
 0x2fa   : > { %2356 = vmatmul.mubr.bf16.vlgmr.msra.gmra.mxu0 %v2849_v9 }
 0x2fb   : > { %2393 = vmatprep.mubr.msk.bf16.mxu0 %vm2674_vm0, %v2673_v1 }
 0x36a   : > { %v690_v42 = vpop.xlane.xlu1 %689 }
 0x36b   : > { %2571 = vrcp.f32 %v690_v42 }
 0x36e   : > { %v693_v43 = vpop.xlane.xlu1 %692 }
 0x36f   : > { %2573 = vrcp.f32 %v693_v43 }
 0x372   : > { %v700_v44 = vpop.permute.xlu1 %699 }
 0x373   : > { %2302 = vmatpush3.bf16.msra.mxu1 %v700_v44 }
 0x374   : > { %2307 = vmatprep.subr.bf16.mxu1 %v2673_v1 }
 0x378   : > { %v2572_v45 = vpop.eup %2571 }
 0x379   : > { %v696_v47 = vmul.f32 %v2572_v45, %v2568_v38 }
 0x37c   : > { %v2574_v46 = vpop.eup %2573 }
 0x37d   : > { %v697_v48 = vmul.f32 %v2574_v46, %v2570_v40 }
 0x37f   : > { %v698_v50 = vpack.c.bf16 %v697_v48, %v696_v47 }
 0x381   : > { %2304 = vmatmul.mubr.msk.bf16.vlgmr.msra.gmra.mxu1 %vm675_vm3, %v698_v50 }
 0x382   : > { %2308 = vmatpush3.bf16.msra.mxu1 %v2517_v49  ;;  %2323 = vmatprep.mubr.msk.bf16.mxu1 %vm2674_vm0, %v2673_v1 }
 0x383   : > { %2309 = vmatprep.subr.bf16.mxu1 %v2673_v1 }
 0x386   : > { %2310 = vmatpush3.bf16.msra.mxu1 %v2518_v51 }
 0x387   : > { %2311 = vmatprep.subr.bf16.mxu1 %v2673_v1 }
 0x38a   : > { %2312 = vmatpush3.bf16.msra.mxu1 %v2519_v52 }
 0x38b   : > { %2313 = vmatprep.subr.bf16.mxu1 %v2673_v1 }
 0x38e   : > { %2314 = vmatpush3.bf16.msra.mxu1 %v2520_v53 }
 0x38f   : > { %2315 = vmatprep.subr.bf16.mxu1 %v2673_v1 }
 0x392   : > { %2316 = vmatpush3.bf16.msra.mxu1 %v2521_v54 }
 0x393   : > { %2317 = vmatprep.subr.bf16.mxu1 %v2673_v1 }
 0x396   : > { %2318 = vmatpush3.bf16.msra.mxu1 %v2522_v55 }
 0x397   : > { %2319 = vmatprep.subr.bf16.mxu1 %v2673_v1 }
 0x39a   : > { %2320 = vmatpush3.bf16.msra.mxu1 %v2523_v56 }
 0x39b   : > { %2321 = vmatprep.subr.bf16.mxu1 %v2673_v1 }
 0x39e   : > { %2322 = vmatpush3.bf16.msra.mxu1 %v2524_v57 }
 0x39f   : > { %2327 = vmatprep.subr.bf16.mxu1 %v2673_v1 }
 0x3a1   : > { %2324 = vmatmul.mubr.bf16.vlgmr.msra.gmra.mxu1 %v2849_v9 }
 0x3a2   : > { %2329 = vmatprep.mubr.msk.bf16.mxu1 %vm2674_vm0, %v2673_v1 }
 0x3ba   : > { %v1114_v31 = vpop.f32.mrf.mxu0 }
 0x3bb   : > { %v1115_v33 = vadd.f32 %v2106_v30, %v1114_v31  ;;  %v2536_v31 = vld [vmem:[%s3262_s1 + $0xe0] sm:$0xff]  }
 0x3bc   : > { %v2357_v32 = vpop.f32.mrf.mxu0 }
 0x3bd   : > { %v2537_v32 = vld [vmem:[%s3262_s1 + $0xd8] sm:$0xff]  }
 0x3be   : > { %v1117_v34 = vpop.f32.mrf.mxu0 }
 0x3bf   : > { %v1118_v35 = vadd.f32 %v2106_v30, %v1117_v34  ;;  %v2535_v30 = vld [vmem:[%s3262_s1 + $0xe8] sm:$0xff]  }
 0x3c0   : > { %v2358_v36 = vpop.f32.mrf.mxu0  ;;  %v2539_v34 = vld [vmem:[%s3262_s1 + $0xc8] sm:$0xff]  }
 0x3c1   : > { %v2968_v37 = vpack.c.bf16 %v1118_v35, %v1115_v33  ;;  %v2538_v33 = vld [vmem:[%s3262_s1 + $0xd0] sm:$0xff]   ;;  %v2540_v35 = vld [vmem:[%s3262_s1 + $0xc0] sm:$0xff]  }
 0x441   : > { %v739_v58 = vpop.f32.mrf.mxu1 }
 0x442   : > { %v2188_v59 = vpack.c.bf16 %v739_v58, %v739_v58 }
 0x443   : > { %v2305_v60 = vpop.f32.mrf.mxu1 }
 0x444   : > { %755 = vst.msk [vmem:[#allocation2] sm:$0xf] %vm754_vm4, %v2188_v59 }
 0x445   : > { %v742_v61 = vpop.f32.mrf.mxu1 }
 0x446   : > { %v2189_v62 = vpack.c.bf16 %v742_v61, %v742_v61 }
 0x447   : > { %v2306_v63 = vpop.f32.mrf.mxu1 }
 0x448   : > { %756 = vst.msk [vmem:[#allocation2 + $0x4] sm:$0xf] %vm754_vm4, %v2189_v62 }
 0x461   : > { %v864_v0 = vpop.f32.mrf.mxu1 }
 0x462   : > { %v865_v6 = vadd.f32 %v2076_v2, %v864_v0 }
 0x463   : > { %v2325_v3 = vpop.f32.mrf.mxu1 }
 0x465   : > { %v867_v4 = vpop.f32.mrf.mxu1 }
 0x466   : > { %v868_v7 = vadd.f32 %v2076_v2, %v867_v4 }
 0x467   : > { %v2326_v8 = vpop.f32.mrf.mxu1 }
 0x468   : > { %v871_v11 = vpack.c.bf16 %v868_v7, %v865_v6 }
 0x46a   : > { %873 = vrot.lane.b32.xlu1 %v871_v11, %s2675_s29 }
 0x4dc   : > { %v874_v18 = vpop.permute.xlu1 %873 }
 0x4dd   : > { %v879_v19 = vsel %vm627_vm1, %v874_v18, 0 }
 0x4de   : > { %2328 = vmatpush3.bf16.xpose.msra.mxu1 %v879_v19 }
 0x4df   : > { %2333 = vmatprep.subr.bf16.mxu1 %v2673_v1 }
 0x4e5   : > { %2330 = vmatmul.mubr.msk.bf16.vlgmr.msra.gmra.mxu1 %vm627_vm1, %v871_v11 }
 0x4e6   : > { %2335 = vmatprep.mubr.msk.bf16.mxu1 %vm2674_vm0, %v2673_v1 }
 0x5a5   : > { %v915_v20 = vpop.f32.mrf.mxu1 }
 0x5a6   : > { %v916_v22 = vadd.f32 %v915_v20, %v2868_v23 }
 0x5a7   : > { %v2331_v24 = vpop.f32.mrf.mxu1 }
 0x5a8   : > { %v922_v25 = vsel %vm675_vm3, %v916_v22, -inf }
 0x5a9   : > { %923 = vmax.xlane.f32.xlu1 %v922_v25  ;;  %v918_v26 = vpop.f32.mrf.mxu1 }
 0x5aa   : > { %v919_v27 = vadd.f32 %v918_v26, %v2868_v23 }
 0x5ab   : > { %v2332_v28 = vpop.f32.mrf.mxu1 }
 0x5ac   : > { %v925_v29 = vsel %vm675_vm3, %v919_v27, -inf }
 0x5ad   : > { %926 = vmax.xlane.f32.xlu0 %v925_v29  ;;  %v2534_v29 = vld [vmem:[%s3262_s1 + $0xf0] sm:$0xff]  }
 0x5c3   : > { %945 = vrot.lane.b32.xlu0 %v871_v11, %s2677_s26 }
 0x632   : > { %v924_v38 = vpop.xlane.xlu1 %923 }
 0x633   : > { %v928_v39 = vsub.f32 %v916_v22, %v924_v38 }
 0x635   : > { %v930_v40 = vmul.f32 1.442695, %v928_v39 }
 0x636   : > { %v927_v41 = vpop.xlane.xlu0 %926 }
 0x637   : > { %2575 = vpow2.f32 %v930_v40  ;;  %v929_v42 = vsub.f32 %v919_v27, %v927_v41  ;;  %v2533_v27 = vld [vmem:[%s3262_s1 + $0xf8] sm:$0xff]   ;;  %v2136_v41 = vld [vmem:[%s3264_s2 + $0x3] ss:$0 sm:$0xff]  ;;  %s1965_s2 = scalar_lea.sflag [#allocation4], %s485_s16 }
 0x639   : > { %v932_v43 = vmul.f32 1.442695, %v929_v42 }
 0x63a   : > { %v946_v44 = vpop.permute.xlu0 %945 }
 0x63b   : > { %2577 = vpow2.f32 %v932_v43  ;;  %2334 = vmatpush3.bf16.msra.mxu1 %v946_v44 }
 0x63c   : > { %2359 = vmatprep.subr.bf16.mxu1 %v2673_v1 }
 0x644   : > { %v2576_v45 = vpop.eup %2575 }
 0x645   : > { %v934_v46 = vsel %vm675_vm3, %v2576_v45, 0.0 }
 0x646   : > { %935 = vadd.xlane.f32.xlu0 %v934_v46 }
 0x648   : > { %v2578_v47 = vpop.eup %2577 }
 0x649   : > { %v937_v48 = vsel %vm675_vm3, %v2578_v47, 0.0 }
 0x64a   : > { %938 = vadd.xlane.f32.xlu0 %v937_v48 }
 0x660   : > { %1123 = vrot.lane.b32.xlu0 %v2968_v37, %s2675_s29 }
 0x6cf   : > { %v936_v49 = vpop.xlane.xlu0 %935 }
 0x6d0   : > { %2579 = vrcp.f32 %v936_v49 }
 0x6d3   : > { %v939_v50 = vpop.xlane.xlu0 %938 }
 0x6d4   : > { %2581 = vrcp.f32 %v939_v50 }
 0x6d7   : > { %v1124_v55 = vpop.permute.xlu0 %1123 }
 0x6d8   : > { %v1129_v57 = vsel %vm627_vm1, %v1124_v55, 0 }
 0x6dd   : > { %v2580_v51 = vpop.eup %2579 }
 0x6de   : > { %v942_v53 = vmul.f32 %v2580_v51, %v2576_v45 }
 0x6e1   : > { %v2582_v52 = vpop.eup %2581 }
 0x6e2   : > { %v943_v54 = vmul.f32 %v2582_v52, %v2578_v47 }
 0x6e4   : > { %v944_v56 = vpack.c.bf16 %v943_v54, %v942_v53 }
 0x6e6   : > { %2336 = vmatmul.mubr.msk.bf16.vlgmr.msra.gmra.mxu1 %vm675_vm3, %v944_v56 }
 0x6e7   : > { %2360 = vmatpush3.bf16.xpose.msra.mxu1 %v1129_v57  ;;  %2361 = vmatprep.mubr.msk.bf16.mxu1 %vm2674_vm0, %v2673_v1 }
 0x6e8   : > { %2365 = vmatprep.subr.bf16.mxu1 %v2673_v1 }
 0x6ee   : > { %2362 = vmatmul.mubr.msk.bf16.vlgmr.msra.gmra.mxu1 %vm627_vm1, %v2968_v37 }
 0x6ef   : > { %2367 = vmatprep.mubr.msk.bf16.mxu1 %vm2674_vm0, %v2673_v1 }
 0x7a6   : > { %v2984_v58 = vpop.f32.mrf.mxu1 }
 0x7a8   : > { %v2337_v59 = vpop.f32.mrf.mxu1 }
 0x7aa   : > { %v2986_v60 = vpop.f32.mrf.mxu1 }
 0x7ab   : > { %v2191_v59 = vpack.c.bf16 %v2986_v60, %v2986_v60 }
 0x7ac   : > { %v2338_v61 = vpop.f32.mrf.mxu1 }
 0x7ae   : > { %v1165_v62 = vpop.f32.mrf.mxu1 }
 0x7af   : > { %v1166_v63 = vadd.f32 %v1165_v62, %v2868_v23 }
 0x7b0   : > { %v2363_v0 = vpop.f32.mrf.mxu1 }
 0x7b1   : > { %v1172_v2 = vsel %vm675_vm3, %v1166_v63, -inf }
 0x7b2   : > { %1173 = vmax.xlane.f32.xlu1 %v1172_v2  ;;  %v1168_v3 = vpop.f32.mrf.mxu1 }
 0x7b3   : > { %v1169_v4 = vadd.f32 %v1168_v3, %v2868_v23 }
 0x7b4   : > { %v2364_v5 = vpop.f32.mrf.mxu1 }
 0x7b5   : > { %v1175_v6 = vsel %vm675_vm3, %v1169_v4, -inf }
 0x7b6   : > { %1176 = vmax.xlane.f32.xlu0 %v1175_v6 }
 0x83b   : > { %v1174_v7 = vpop.xlane.xlu1 %1173 }
 0x83c   : > { %v1178_v8 = vsub.f32 %v1166_v63, %v1174_v7  ;;  %v2190_v7 = vpack.c.bf16 %v2984_v58, %v2984_v58 }
 0x83e   : > { %v1180_v10 = vmul.f32 1.442695, %v1178_v8 }
 0x83f   : > { %v1177_v11 = vpop.xlane.xlu0 %1176 }
 0x840   : > { %2583 = vpow2.f32 %v1180_v10  ;;  %v1179_v12 = vsub.f32 %v1169_v4, %v1177_v11 }
 0x842   : > { %v1182_v13 = vmul.f32 1.442695, %v1179_v12 }
 0x844   : > { %2585 = vpow2.f32 %v1182_v13 }
 0x84d   : > { %v2584_v14 = vpop.eup %2583 }
 0x84e   : > { %v1184_v15 = vsel %vm675_vm3, %v2584_v14, 0.0 }
 0x84f   : > { %1185 = vadd.xlane.f32.xlu1 %v1184_v15 }
 0x851   : > { %v2586_v16 = vpop.eup %2585 }
 0x852   : > { %v1187_v17 = vsel %vm675_vm3, %v2586_v16, 0.0 }
 0x853   : > { %1188 = vadd.xlane.f32.xlu1 %v1187_v17 }
 0x864   : > { %1195 = vrot.lane.b32.xlu1 %v2968_v37, %s2677_s26 }
 0x8d8   : > { %v1186_v18 = vpop.xlane.xlu1 %1185 }
 0x8d9   : > { %2587 = vrcp.f32 %v1186_v18 }
 0x8dc   : > { %v1189_v19 = vpop.xlane.xlu1 %1188 }
 0x8dd   : > { %2589 = vrcp.f32 %v1189_v19 }
 0x8e0   : > { %v1196_v20 = vpop.permute.xlu1 %1195 }
 0x8e1   : > { %2366 = vmatpush3.bf16.msra.mxu1 %v1196_v20 }
 0x8e2   : > { %2371 = vmatprep.subr.bf16.mxu1 %v2673_v1 }
 0x8e6   : > { %v2588_v22 = vpop.eup %2587 }
 0x8e7   : > { %v1192_v25 = vmul.f32 %v2588_v22, %v2584_v14  ;;  %v2541_v22 = vld [vmem:[%s3265_s3 + $0x38] sm:$0xff]  }
 0x8ea   : > { %v2590_v24 = vpop.eup %2589 }
 0x8eb   : > { %v1193_v26 = vmul.f32 %v2590_v24, %v2586_v16  ;;  %v2542_v24 = vld [vmem:[%s3265_s3 + $0x30] sm:$0xff]  }
 0x8ed   : > { %v1194_v28 = vpack.c.bf16 %v1193_v26, %v1192_v25  ;;  %v2543_v25 = vld [vmem:[%s3265_s3 + $0x28] sm:$0xff]   ;;  %v2544_v26 = vld [vmem:[%s3265_s3 + $0x20] sm:$0xff]  }
 0x8ef   : > { %2368 = vmatmul.mubr.msk.bf16.vlgmr.msra.gmra.mxu1 %vm675_vm3, %v1194_v28  ;;  %v2546_v28 = vld [vmem:[%s3265_s3 + $0x10] sm:$0xff]  }
 0x8f0   : > { %2372 = vmatpush3.bf16.msra.mxu1 %v2533_v27  ;;  %2387 = vmatprep.mubr.msk.bf16.mxu1 %vm2674_vm0, %v2673_v1  ;;  %v2545_v27 = vld [vmem:[%s3265_s3 + $0x18] sm:$0xff]  }
 0x8f1   : > { %2373 = vmatprep.subr.bf16.mxu1 %v2673_v1 }
 0x8f4   : > { %2374 = vmatpush3.bf16.msra.mxu1 %v2534_v29  ;;  %v2547_v29 = vld [vmem:[%s3265_s3 + $0x8] sm:$0xff]  }
 0x8f5   : > { %2375 = vmatprep.subr.bf16.mxu1 %v2673_v1 }
 0x8f8   : > { %2376 = vmatpush3.bf16.msra.mxu1 %v2535_v30  ;;  %v2548_v30 = vld [vmem:[%s3265_s3] sm:$0xff]  }
 0x8f9   : > { %2377 = vmatprep.subr.bf16.mxu1 %v2673_v1 }
 0x8fc   : > { %2378 = vmatpush3.bf16.msra.mxu1 %v2536_v31 }
 0x8fd   : > { %2379 = vmatprep.subr.bf16.mxu1 %v2673_v1 }
 0x900   : > { %2380 = vmatpush3.bf16.msra.mxu1 %v2537_v32 }
 0x901   : > { %2381 = vmatprep.subr.bf16.mxu1 %v2673_v1 }
 0x904   : > { %2382 = vmatpush3.bf16.msra.mxu1 %v2538_v33 }
 0x905   : > { %2383 = vmatprep.subr.bf16.mxu1 %v2673_v1 }
 0x908   : > { %2384 = vmatpush3.bf16.msra.mxu1 %v2539_v34 }
 0x909   : > { %2385 = vmatprep.subr.bf16.mxu1 %v2673_v1 }
 0x90c   : > { %2386 = vmatpush3.bf16.msra.mxu1 %v2540_v35 }
 0x90d   : > { %2423 = vmatprep.subr.bf16.mxu1 %v2673_v1 }
 0x90f   : > { %2388 = vmatmul.mubr.bf16.vlgmr.msra.gmra.mxu1 %v2849_v9 }
 0x910   : > { %2439 = vmatprep.mubr.msk.bf16.mxu1 %vm2674_vm0, %v2673_v1 }
 0x9af   : > { %v1235_v36 = vpop.f32.mrf.mxu1 }
 0x9b0   : > { %v2192_v8 = vpack.c.bf16 %v1235_v36, %v1235_v36 }
 0x9b1   : > { %v2369_v37 = vpop.f32.mrf.mxu1 }
 0x9b3   : > { %v1238_v38 = vpop.f32.mrf.mxu1 }
 0x9b4   : > { %v2193_v10 = vpack.c.bf16 %v1238_v38, %v1238_v38 }
 0x9b5   : > { %v2370_v39 = vpop.f32.mrf.mxu1 }
 0x9cf   : > { %v1364_v40 = vpop.f32.mrf.mxu1 }
 0x9d0   : > { %v1365_v44 = vadd.f32 %v2136_v41, %v1364_v40  ;;  %v2149_v40 = vld [vmem:[%s3236_s4] ss:$0 sm:$0xff] }
 0x9d1   : > { %v2389_v42 = vpop.f32.mrf.mxu1 }
 0x9d3   : > { %v1367_v43 = vpop.f32.mrf.mxu1 }
 0x9d4   : > { %v1368_v45 = vadd.f32 %v2136_v41, %v1367_v43  ;;  %v503_v41 = vunpack.c.l.bf16 %v2849_v9 }
 0x9d5   : > { %v2390_v46 = vpop.f32.mrf.mxu1 }
 0x9d6   : > { %v1371_v47 = vpack.c.bf16 %v1368_v45, %v1365_v44  ;;  %v504_v46 = vunpack.c.h.bf16 %v2849_v9 }
 0x9d8   : > { %1373 = vrot.lane.b32.xlu1 %v1371_v47, %s2675_s29 }
 0xa4a   : > { %v1374_v48 = vpop.permute.xlu1 %1373 }
 0xa4b   : > { %v1379_v49 = vsel %vm627_vm1, %v1374_v48, 0 }
 0xa4c   : > { %2392 = vmatpush3.bf16.xpose.msra.mxu0 %v1379_v49 }
 0xa4d   : > { %2397 = vmatprep.subr.bf16.mxu0 %v2673_v1 }
 0xa53   : > { %2394 = vmatmul.mubr.msk.bf16.vlgmr.msra.gmra.mxu0 %vm627_vm1, %v1371_v47 }
 0xa54   : > { %2399 = vmatprep.mubr.msk.bf16.mxu0 %vm2674_vm0, %v2673_v1 }
 0xb13   : > { %v1415_v50 = vpop.f32.mrf.mxu0 }
 0xb14   : > { %v1416_v51 = vadd.f32 %v1415_v50, %v2868_v23 }
 0xb15   : > { %v2395_v52 = vpop.f32.mrf.mxu0 }
 0xb16   : > { %v1422_v53 = vsel %vm675_vm3, %v1416_v51, -inf }
 0xb17   : > { %1423 = vmax.xlane.f32.xlu1 %v1422_v53  ;;  %v1418_v54 = vpop.f32.mrf.mxu0 }
 0xb18   : > { %v1419_v55 = vadd.f32 %v1418_v54, %v2868_v23  ;;  %v3110_v54 = vsel %vm496_vm8, 1.0, %v2673_v1 }
 0xb19   : > { %v2396_v56 = vpop.f32.mrf.mxu0 }
 0xb1a   : > { %v1425_v57 = vsel %vm675_vm3, %v1419_v55, -inf }
 0xb1b   : > { %1426 = vmax.xlane.f32.xlu0 %v1425_v57 }
 0xb28   : > { %1000 = vrot.lane.b32.xlu1 %v2191_v59, %s2678_s24 }
 0xba0   : > { %v1424_v61 = vpop.xlane.xlu1 %1423 }
 0xba1   : > { %v1428_v62 = vsub.f32 %v1416_v51, %v1424_v61  ;;  %v2550_v51 = vld [vmem:[%s3239_s7 + $0x38] sm:$0xff]  }
 0xba2   : > { %2424 = vmatpush3.bf16.msra.mxu1 %v2550_v51 }
 0xba3   : > { %v1430_v63 = vmul.f32 1.442695, %v1428_v62  ;;  %2425 = vmatprep.subr.bf16.mxu1 %v2673_v1 }
 0xba4   : > { %v1001_v0 = vpop.permute.xlu1 %1000  ;;  %v1427_v2 = vpop.xlane.xlu0 %1426 }
 0xba5   : > { %2591 = vpow2.f32 %v1430_v63  ;;  %1006 = vst.msk [vmem:[#allocation2 + $0x4] sm:$0xf] %vm1004_vm5, %v1001_v0  ;;  %v1429_v3 = vsub.f32 %v1419_v55, %v1427_v2  ;;  %v2552_v0 = vld [vmem:[%s3239_s7 + $0x28] sm:$0xff]   ;;  %v2553_v2 = vld [vmem:[%s3239_s7 + $0x20] sm:$0xff]  }
 0xba6   : > { %2426 = vmatpush3.bf16.msra.mxu1 %v2551_v21 }
 0xba7   : > { %v1432_v23 = vmul.f32 1.442695, %v1429_v3  ;;  %2427 = vmatprep.subr.bf16.mxu1 %v2673_v1  ;;  %v2554_v3 = vld [vmem:[%s3239_s7 + $0x18] sm:$0xff]  }
 0xba9   : > { %2593 = vpow2.f32 %v1432_v23  ;;  %v2555_v23 = vld [vmem:[%s3239_s7 + $0x10] sm:$0xff]  }
 0xbaa   : > { %2428 = vmatpush3.bf16.msra.mxu1 %v2552_v0 }
 0xbab   : > { %2429 = vmatprep.subr.bf16.mxu1 %v2673_v1 }
 0xbae   : > { %2430 = vmatpush3.bf16.msra.mxu1 %v2553_v2 }
 0xbaf   : > { %2431 = vmatprep.subr.bf16.mxu1 %v2673_v1 }
 0xbb2   : > { %v2592_v4 = vpop.eup %2591  ;;  %2432 = vmatpush3.bf16.msra.mxu1 %v2554_v3  ;;  %v2179_v3 = vld [vmem:[%s3243_s11] ss:$0 sm:$0xff] }
 0xbb3   : > { %v1434_v5 = vsel %vm675_vm3, %v2592_v4, 0.0  ;;  %2433 = vmatprep.subr.bf16.mxu1 %v2673_v1 }
 0xbb4   : > { %1435 = vadd.xlane.f32.xlu0 %v1434_v5  ;;  %v2557_v5 = vld [vmem:[%s3239_s7] sm:$0xff]  }
 0xbb6   : > { %v2594_v6 = vpop.eup %2593  ;;  %2434 = vmatpush3.bf16.msra.mxu1 %v2555_v23 }
 0xbb7   : > { %v1437_v60 = vsel %vm675_vm3, %v2594_v6, 0.0  ;;  %2435 = vmatprep.subr.bf16.mxu1 %v2673_v1 }
 0xbb8   : > { %1438 = vadd.xlane.f32.xlu0 %v1437_v60 }
 0xbce   : > { %1445 = vrot.lane.b32.xlu0 %v1371_v47, %s2677_s26 }
 0xbd2   : > { %998 = vrot.lane.b32.xlu0 %v2190_v7, %s2678_s24 }
 0xbd6   : > { %1248 = vrot.lane.b32.xlu0 %v2192_v8, %s2677_s26 }
 0xbda   : > { %1250 = vrot.lane.b32.xlu0 %v2193_v10, %s2677_s26  ;;  %s487_s26 = scalar_lea.vmem [#allocation3], %s2041_s25 }
 0xbdb   : > { %s1978_s23 = sshll.u32 %s487_s26, 4  ;;  %s1979_s23 = int_to_ptr.vmem [resolvable:$true] %s1978_s23 }
 0xbdc   : > { %s2611_s3 = scalar_lea.vmem %s1979_s23, 128  ;;  %p2618_p0 = scmp.lt.s32.totalorder %s1979_s23, %s2616_s20 }
 0xbdd   : > { %p2612_p11 = scmp.ne.s32.totalorder %s1979_s23, %s2611_s3 }
 0xbdf   : > { %p2613_p12 = pnand %p2612_p11, %p2798_p5 }
 0xbe1   : > { %p2614_p13 = pneg %p2613_p12 }
 0xc3d   : > { %v1436_v11 = vpop.xlane.xlu0 %1435 }
 0xc3e   : > { %2595 = vrcp.f32 %v1436_v11 }
 0xc41   : > { %v1439_v12 = vpop.xlane.xlu0 %1438 }
 0xc42   : > { %2597 = vrcp.f32 %v1439_v12 }
 0xc45   : > { %v1446_v13 = vpop.permute.xlu0 %1445 }
 0xc46   : > { %2398 = vmatpush3.bf16.msra.mxu0 %v1446_v13 }
 0xc47   : > { %2403 = vmatprep.subr.bf16.mxu0 %v2673_v1 }
 0xc49   : > { %v999_v14 = vpop.permute.xlu0 %998 }
 0xc4a   : > { %1005 = vst.msk [vmem:[#allocation2] sm:$0xf] %vm1004_vm5, %v999_v14 }
 0xc4b   : > { %v2596_v58 = vpop.eup %2595 }
 0xc4c   : > { %v1442_v17 = vmul.f32 %v2596_v58, %v2592_v4  ;;  %v2556_v4 = vld [vmem:[%s3239_s7 + $0x8] sm:$0xff]   ;;  %v2159_v58 = vld [vmem:[%s3237_s5] ss:$0 sm:$0xff] }
 0xc4d   : > { %v1249_v15 = vpop.permute.xlu0 %1248  ;;  %2436 = vmatpush3.bf16.msra.mxu1 %v2556_v4  ;;  %v2180_v4 = vld [vmem:[%s3244_s12] ss:$0 sm:$0xff] }
 0xc4e   : > { %1255 = vst.msk [vmem:[#allocation2] sm:$0xf] %vm1254_vm6, %v1249_v15  ;;  %2437 = vmatprep.subr.bf16.mxu1 %v2673_v1 }
 0xc4f   : > { %v2598_v16 = vpop.eup %2597 }
 0xc50   : > { %v1443_v18 = vmul.f32 %v2598_v16, %v2594_v6  ;;  %v2558_v6 = vld [vmem:[%s3241_s9 + $0x38] sm:$0xff]  }
 0xc51   : > { %v1251_v19 = vpop.permute.xlu0 %1250  ;;  %2438 = vmatpush3.bf16.msra.mxu1 %v2557_v5 }
 0xc52   : > { %1256 = vst.msk [vmem:[#allocation2 + $0x4] sm:$0xf] %vm1254_vm6, %v1251_v19  ;;  %v1444_v20 = vpack.c.bf16 %v1443_v18, %v1442_v17  ;;  %v2160_v18 = vld [vmem:[%s3238_s6] ss:$0 sm:$0xff] }
 0xc54   : > { %2400 = vmatmul.mubr.msk.bf16.vlgmr.msra.gmra.mxu0 %vm675_vm3, %v1444_v20 }
 0xc55   : > { %2419 = vmatprep.mubr.msk.bf16.mxu0 %vm2674_vm0, %v2673_v1  ;;  %2404 = vmatpush3.bf16.msra.mxu0 %v2541_v22 }
 0xc56   : > { %2405 = vmatprep.subr.bf16.mxu0 %v2673_v1 }
 0xc59   : > { %2406 = vmatpush3.bf16.msra.mxu0 %v2542_v24 }
 0xc5a   : > { %2407 = vmatprep.subr.bf16.mxu0 %v2673_v1 }
 0xc5d   : > { %2408 = vmatpush3.bf16.msra.mxu0 %v2543_v25  ;;  %v2559_v25 = vld [vmem:[%s3241_s9 + $0x30] sm:$0xff]  }
 0xc5e   : > { %2409 = vmatprep.subr.bf16.mxu0 %v2673_v1 }
 0xc61   : > { %2410 = vmatpush3.bf16.msra.mxu0 %v2544_v26  ;;  %v2560_v26 = vld [vmem:[%s3241_s9 + $0x28] sm:$0xff]  }
 0xc62   : > { %2411 = vmatprep.subr.bf16.mxu0 %v2673_v1 }
 0xc65   : > { %2412 = vmatpush3.bf16.msra.mxu0 %v2545_v27  ;;  %v2561_v27 = vld [vmem:[%s3241_s9 + $0x20] sm:$0xff]  }
 0xc66   : > { %2413 = vmatprep.subr.bf16.mxu0 %v2673_v1 }
 0xc69   : > { %2414 = vmatpush3.bf16.msra.mxu0 %v2546_v28  ;;  %v2562_v28 = vld [vmem:[%s3241_s9 + $0x18] sm:$0xff]  }
 0xc6a   : > { %2415 = vmatprep.subr.bf16.mxu0 %v2673_v1 }
 0xc6d   : > { %2416 = vmatpush3.bf16.msra.mxu0 %v2547_v29  ;;  %v2563_v29 = vld [vmem:[%s3241_s9 + $0x10] sm:$0xff]  }
 0xc6e   : > { %2417 = vmatprep.subr.bf16.mxu0 %v2673_v1 }
 0xc71   : > { %2418 = vmatpush3.bf16.msra.mxu0 %v2548_v30  ;;  %v2564_v30 = vld [vmem:[%s3241_s9 + $0x8] sm:$0xff]  }
 0xc72   : > { %2443 = vmatprep.subr.bf16.mxu0 %v2673_v1 }
 0xd14   : > { %v1485_v31 = vpop.f32.mrf.mxu0 }
 0xd15   : > { %v2194_v32 = vpack.c.bf16 %v1485_v31, %v1485_v31  ;;  %v2565_v31 = vld [vmem:[%s3241_s9] sm:$0xff]  }
 0xd16   : > { %v2401_v33 = vpop.f32.mrf.mxu0 }
 0xd17   : > { %1498 = vrot.lane.b32.xlu0 %v2194_v32, %s2675_s29  ;;  %v2161_v32 = vld [vmem:[%s3240_s8] ss:$0 sm:$0xff] }
 0xd18   : > { %v1488_v34 = vpop.f32.mrf.mxu0 }
 0xd19   : > { %v2195_v35 = vpack.c.bf16 %v1488_v34, %v1488_v34 }
 0xd1a   : > { %v2402_v36 = vpop.f32.mrf.mxu0 }
 0xd1b   : > { %1500 = vrot.lane.b32.xlu0 %v2195_v35, %s2675_s29  ;;  %s2184_s29 = sshll.u32 %s2781_s22, 7  ;;  %s2617_s22 = scalar_lea.vmem %s2616_s20, 256 }
 0xd1c   : > { %s1976_s1 = scalar_lea.hbm %s3247_s15, %s2184_s29  ;;  %p2619_p1 = scmp.lt.s32.totalorder %s2617_s22, %s2611_s3 }
 0xd1e   : > { %p2620_p2 = por %p2619_p1, %p2618_p0 }
 0xd20   : > { %p2621_p3 = pnand %p2620_p2, %p2614_p13 }
 0xd89   : > { %v1499_v37 = vpop.permute.xlu0 %1498 }
 0xd8a   : > { %1505 = vst.msk [vmem:[#allocation2] sm:$0xf] %vm1504_vm7, %v1499_v37 }
 0xd8d   : > { %v1501_v38 = vpop.permute.xlu0 %1500 }
 0xd8e   : > { %1506 = vst.msk [vmem:[#allocation2 + $0x4] sm:$0xf] %vm1504_vm7, %v1501_v38 }
 0xd95   : > { %v2549_v39 = vld [vmem:[#allocation2] sm:$0xff]  }
 0xd96   : > { %2420 = vmatmul.mubr.bf16.vlgmr.msra.gmra.mxu0 %v2549_v39 }
 0xd97   : > { %2459 = vmatprep.mubr.msk.bf16.mxu0 %vm2674_vm0, %v2673_v1  ;;  %2444 = vmatpush3.bf16.msra.mxu0 %v2558_v6 }
 0xd98   : > { %2445 = vmatprep.subr.bf16.mxu0 %v2673_v1 }
 0xd9b   : > { %2446 = vmatpush3.bf16.msra.mxu0 %v2559_v25 }
 0xd9c   : > { %2447 = vmatprep.subr.bf16.mxu0 %v2673_v1 }
 0xd9f   : > { %2448 = vmatpush3.bf16.msra.mxu0 %v2560_v26 }
 0xda0   : > { %2449 = vmatprep.subr.bf16.mxu0 %v2673_v1 }
 0xda3   : > { %2450 = vmatpush3.bf16.msra.mxu0 %v2561_v27 }
 0xda4   : > { %2451 = vmatprep.subr.bf16.mxu0 %v2673_v1 }
 0xda7   : > { %2452 = vmatpush3.bf16.msra.mxu0 %v2562_v28 }
 0xda8   : > { %2453 = vmatprep.subr.bf16.mxu0 %v2673_v1 }
 0xdab   : > { %2454 = vmatpush3.bf16.msra.mxu0 %v2563_v29 }
 0xdac   : > { %2455 = vmatprep.subr.bf16.mxu0 %v2673_v1 }
 0xdaf   : > { %2456 = vmatpush3.bf16.msra.mxu0 %v2564_v30 }
 0xdb0   : > { %2457 = vmatprep.subr.bf16.mxu0 %v2673_v1 }
 0xdb3   : > { %2458 = vmatpush3.bf16.msra.mxu0 %v2565_v31 }
 0xe56   : > { %v1620_v42 = vpop.f32.mrf.mxu0 }
 0xe57   : > { %v1621_v43 = vadd.f32 %v2149_v40, %v1620_v42 }
 0xe58   : > { %v2421_v44 = vpop.f32.mrf.mxu0 }
 0xe59   : > { %v1627_v45 = vadd.f32 %v1621_v43, %v503_v41 }
 0xe5a   : > { %v1623_v47 = vpop.f32.mrf.mxu0 }
 0xe5b   : > { %v1624_v48 = vadd.f32 %v2149_v40, %v1623_v47  ;;  %1631 = vadd.xlane.f32.xlu1 %v1627_v45 }
 0xe5c   : > { %v2422_v49 = vpop.f32.mrf.mxu0 }
 0xe5d   : > { %v1628_v50 = vadd.f32 %v1624_v48, %v504_v46  ;;  %v2170_v49 = vld [vmem:[%s3242_s10] ss:$0 sm:$0xff] }
 0xe5f   : > { %1633 = vadd.xlane.f32.xlu0 %v1628_v50 }
 0xee4   : > { %v1632_v52 = vpop.xlane.xlu1 %1631 }
 0xee5   : > { %v1635_v53 = vmul.f32 0.03125, %v1632_v52 }
 0xee7   : > { %v1637_v9 = vsub.f32 %v1627_v45, %v1635_v53 }
 0xee8   : > { %v1634_v55 = vpop.xlane.xlu0 %1633 }
 0xee9   : > { %v1636_v56 = vmul.f32 0.03125, %v1634_v55  ;;  %v1639_v57 = vmul.f32 %v3110_v54, %v1637_v9 }
 0xeeb   : > { %v1638_v59 = vsub.f32 %v1628_v50, %v1636_v56  ;;  %v1641_v61 = vmul.f32 %v1639_v57, %v1639_v57 }
 0xeed   : > { %1643 = vadd.xlane.f32.xlu0 %v1641_v61  ;;  %v1640_v62 = vmul.f32 %v3110_v54, %v1638_v59 }
 0xeef   : > { %v1642_v63 = vmul.f32 %v1640_v62, %v1640_v62 }
 0xef1   : > { %1645 = vadd.xlane.f32.xlu1 %v1642_v63 }
 0xf76   : > { %v1644_v60 = vpop.xlane.xlu0 %1643 }
 0xf77   : > { %v1647_v7 = vmul.f32 0.03125, %v1644_v60 }
 0xf79   : > { %v1649_v8 = vadd.f32 1e-05, %v1647_v7 }
 0xf7a   : > { %v1646_v10 = vpop.xlane.xlu1 %1645 }
 0xf7b   : > { %2599 = vrsqrt.f32 %v1649_v8  ;;  %v1648_v11 = vmul.f32 0.03125, %v1646_v10 }
 0xf7d   : > { %v1650_v12 = vadd.f32 1e-05, %v1648_v11 }
 0xf7f   : > { %2601 = vrsqrt.f32 %v1650_v12 }
 0xf88   : > { %v2600_v13 = vpop.eup %2599 }
 0xf89   : > { %v1653_v14 = vmul.f32 %v2600_v13, %v1639_v57 }
 0xf8b   : > { %v1661_v17 = vmul.f32 %v2159_v58, %v1653_v14 }
 0xf8c   : > { %v2602_v15 = vpop.eup %2601 }
 0xf8d   : > { %v1654_v16 = vmul.f32 %v2602_v15, %v1640_v62  ;;  %v1669_v20 = vadd.f32 %v2160_v18, %v1661_v17  ;;  %v2181_v15 = vld [vmem:[%s3245_s13] ss:$0 sm:$0xff] }
 0xf8e   : > { %v2182_v17 = vld [vmem:[%s3246_s14] ss:$0 sm:$0xff] }
 0xf8f   : > { %v1662_v19 = vmul.f32 %v2159_v58, %v1654_v16 }
 0xf91   : > { %v1670_v22 = vadd.f32 %v2160_v18, %v1662_v19 }
 0xf93   : > { %v1671_v24 = vpack.c.bf16 %v1670_v22, %v1669_v20 }
 0xf95   : > { %2440 = vmatmul.mubr.bf16.vlgmr.msra.gmra.mxu1 %v1671_v24 }
0x1055   : > { %v1777_v33 = vpop.f32.mrf.mxu1 }
0x1056   : > { %v1778_v34 = vadd.f32 %v2161_v32, %v1777_v33 }
0x1057   : > { %v2441_v35 = vpop.f32.mrf.mxu1 }
0x1058   : > { %v1786_v36 = vmul.f32 0.70710677, %v1778_v34  ;;  %v1784_v43 = vmul.f32 0.5, %v1778_v34 }
0x1059   : > { %v1780_v37 = vpop.f32.mrf.mxu1 }
0x105a   : > { %2603 = verf.f32 %v1786_v36  ;;  %v1781_v38 = vadd.f32 %v2161_v32, %v1780_v37 }
0x105b   : > { %v2442_v39 = vpop.f32.mrf.mxu1 }
0x105c   : > { %v1787_v40 = vmul.f32 0.70710677, %v1781_v38  ;;  %v1785_v44 = vmul.f32 0.5, %v1781_v38 }
0x105e   : > { %2605 = verf.f32 %v1787_v40 }
0x1067   : > { %v2604_v1 = vpop.eup %2603 }
0x1068   : > { %v1790_v41 = vadd.f32 1.0, %v2604_v1 }
0x106a   : > { %v1792_v46 = vmul.f32 %v1790_v41, %v1784_v43 }
0x106b   : > { %v2606_v42 = vpop.eup %2605 }
0x106c   : > { %v1791_v45 = vadd.f32 1.0, %v2606_v42 }
0x106e   : > { %v1793_v47 = vmul.f32 %v1791_v45, %v1785_v44 }
0x1070   : > { %v1794_v48 = vpack.c.bf16 %v1793_v47, %v1792_v46 }
0x1072   : > { %2460 = vmatmul.mubr.bf16.vlgmr.msra.gmra.mxu0 %v1794_v48 }
0x1132   : > { %v1900_v50 = vpop.f32.mrf.mxu0 }
0x1133   : > { %v1901_v51 = vadd.f32 %v2170_v49, %v1900_v50 }
0x1134   : > { %v2461_v52 = vpop.f32.mrf.mxu0 }
0x1135   : > { %v1906_v53 = vadd.f32 %v1901_v51, %v1669_v20 }
0x1136   : > { %v1903_v9 = vpop.f32.mrf.mxu0 }
0x1137   : > { %1909 = vadd.xlane.f32.xlu0 %v1906_v53 }
0x1138   : > { %v2462_v55 = vpop.f32.mrf.mxu0 }
0x11c0   : > { %v1910_v56 = vpop.xlane.xlu0 %1909 }
0x11c1   : > { %v1911_v57 = vmul.f32 0.03125, %v1910_v56 }
0x11c3   : > { %v1912_v59 = vsub.f32 %v1906_v53, %v1911_v57 }
0x11c5   : > { %v1913_v61 = vmul.f32 %v3110_v54, %v1912_v59 }
0x11c7   : > { %v1914_v62 = vmul.f32 %v1913_v61, %v1913_v61 }
0x11c9   : > { %1915 = vadd.xlane.f32.xlu1 %v1914_v62 }
0x1252   : > { %v1916_v63 = vpop.xlane.xlu1 %1915 }
0x1253   : > { %v1917_v21 = vmul.f32 0.03125, %v1916_v63 }
0x1255   : > { %v1918_v0 = vadd.f32 1e-05, %v1917_v21 }
0x1257   : > { %2607 = vrsqrt.f32 %v1918_v0 }
0x1264   : > { %v2608_v2 = vpop.eup %2607 }
0x1265   : > { %v1920_v23 = vmul.f32 %v2608_v2, %v1913_v61 }
0x1267   : > { %v1927_v5 = vmul.f32 %v2179_v3, %v1920_v23 }
0x1269   : > { %v1934_v6 = vadd.f32 %v2180_v4, %v1927_v5 }
0x126b   : > { %1937 = vadd.xlane.f32.xlu0 %v1934_v6 }
0x12f4   : > { %v1938_v60 = vpop.xlane.xlu0 %1937 }
0x12f5   : > { %v1939_v7 = vmul.f32 0.03125, %v1938_v60 }
0x12f7   : > { %v1940_v8 = vsub.f32 %v1934_v6, %v1939_v7 }
0x12f9   : > { %v1941_v10 = vmul.f32 %v3110_v54, %v1940_v8 }
0x12fb   : > { %v1942_v11 = vmul.f32 %v1941_v10, %v1941_v10 }
0x12fd   : > { %1943 = vadd.xlane.f32.xlu1 %v1942_v11 }
0x1386   : > { %v1944_v12 = vpop.xlane.xlu1 %1943 }
0x1387   : > { %v1945_v13 = vmul.f32 0.03125, %v1944_v12 }
0x1389   : > { %v1946_v14 = vadd.f32 1e-05, %v1945_v13 }
0x138b   : > { %2609 = vrsqrt.f32 %v1946_v14 }
0x1398   : > { %v2610_v58 = vpop.eup %2609 }
0x1399   : > { %v1948_v16 = vmul.f32 %v2610_v58, %v1941_v10 }
0x139b   : > { %v1955_v54 = vmul.f32 %v2181_v15, %v1948_v16 }
0x139d   : > { %v1962_v18 = vadd.f32 %v2182_v17, %v1955_v54 }
0x139f   : > { %1963 = vst [vmem:[%s487_s26] sm:$0xff] %v1962_v18 }
0x13a0   : > { %2624 = shalt.err (!%p2621_p3)
}
0x13a1   : > { %s2625_s25 = scalar_lea.hbm %s1976_s1, 128  ;;  %s2629_s27 = scalar_lea.hbm %s3247_s15, 256 }
0x13a2   : > { %p2626_p4 = scmp.ne.s32.totalorder %s1976_s1, %s2625_s25  ;;  %p2630_p9 = scmp.lt.s32.totalorder %s1976_s1, %s3247_s15 }
0x13a3   : > { %p2631_p10 = scmp.lt.s32.totalorder %s2629_s27, %s2625_s25 }
0x13a4   : > { %p2627_p7 = pnand %p2626_p4, %p2798_p5 }
0x13a5   : > { %p2632_p11 = por %p2631_p10, %p2630_p9 }
0x13a6   : > { %p2628_p8 = pneg %p2627_p7 }
0x13a8   : > { %p2633_p12 = pnand %p2632_p11, %p2628_p8 }
0x13aa   : > { %2636 = shalt.err (!%p2633_p12)
}
0x13ab   : > { %2463 = dma.vmem_to_hbm [thread:$0]  (%p2798_p5), %s1979_s23, 128, %s1976_s1, %s1965_s2  }
0x13ac PF: > { %p2469_p13 = scmp.ge.s32.totalorder %s2671_s21, 2  ;;  %s1990_s26 = sand.u32 1, %s2659_s18  }
0x13ad   : > { %s1991_s30 = scalar_lea.sflag [#allocation4], %s1990_s26 }
0x13ae   : > { %p2466_p0 = pnand %p2469_p13, %p2802_p6 }
0x13b0   : > { %p2467_p1 = pneg %p2466_p0 }
0x13b2   : > { %2654 = dma.done.wait (%p2467_p1), %s1991_s30, 128  }
0x13b3   : > { %2656 = vsyncadd (%p2467_p1), %s1991_s30, 4294967168  ;;  %s3267_s21 = sld [smem:[#allocation7_spill]]  ;;  %s3270_s18 = smov %s2663_s19 }
0x13b4   : > { %s3268_s17 = sld [smem:[#allocation6_spill]] }
0x13b5   : > { %s3269_s20 = sld [smem:[#allocation8_spill]] }
0x13b9   : > { %p25_p2 = scmp.ge.s32.totalorder %s3267_s21, 4  }
0x13ba   : > { %s3271_s19 = smov %s3268_s17 }
0x13bb   :  { %27 = sbr.rel (!%p25_p2) target bundleno = 8 (0x8), region = 121 }
0x13c0   :  { %1996 = vsyncpa [#allocation4], 1 }
0x13c1   :  { %1998 = vsyncpa [#allocation4 + $0x1], 1 }

</bundles_post_ra>
